<compile_context>
chip_gen: v5e
topology: v5e:2x2
jax: 0.10.0
libtpu: 0.0.40
codegen_flags: <defaults>
</compile_context>

<pallas_src>
import functools

import jax
import jax.numpy as jnp
from jax.experimental import pallas as pl
from jax.experimental.pallas import tpu as pltpu


GROUP = 64                     # original rows folded into one lane-dense row
F_IN = 24
F_OUT = 2
PACKED_IN = GROUP * F_IN       # 1536
PACKED_OUT = GROUP * F_OUT     # 128  == exactly one lane dimension


def lr_kernel(x_ref, w_ref, b_ref, o_ref):
    # x: (tile_rows, 1536)        streamed, lane-dense
    # w: (1536, 128)              block-diagonal weight, VMEM-resident
    # b: (1, 128)                 tiled bias, VMEM-resident
    # o: (tile_rows, 128)         == (tile_rows*64, 2) in row-major order
    logits = jnp.dot(
        x_ref[...],
        w_ref[...],
        preferred_element_type=jnp.float32,
        precision=jax.lax.Precision.HIGHEST,
    ) + b_ref[...]
    # Exact sigmoid (no approx reciprocal): lane-dense, so EUP cost is tiny.
    o_ref[...] = 1.0 / (1.0 + jnp.exp(-logits))


def _round_up(a: int, m: int) -> int:
    return (a + m - 1) // m * m


def _pack_params(w, b):
    """w: (2, 24) PyTorch layout, b: (2,) -> block-diag (1536, 128), (1, 128)."""
    eye = jnp.eye(GROUP, dtype=w.dtype)
    # w_blk[g*24 + k, h*2 + c] = eye[g, h] * w[c, k]
    w_blk = jnp.einsum("gh,ck->gkhc", eye, w).reshape(PACKED_IN, PACKED_OUT)
    b_blk = jnp.tile(b, GROUP).reshape(1, PACKED_OUT)   # [h*2 + c] = b[c]
    return w_blk, b_blk


@functools.partial(jax.jit, static_argnames=("tile_rows",))
def lr_forward(x, w, b, *, tile_rows: int = 256):
    """x: (N, 24) f32, w: (2, 24) f32 (PyTorch layout), b: (2,) f32 -> (N, 2)."""
    n, f_in = x.shape
    assert f_in == F_IN and w.shape == (F_OUT, F_IN) and b.shape == (F_OUT,)

    # Pad only the batch tail up to a multiple of GROUP (no-op when N%64==0).
    n64 = _round_up(n, GROUP)
    if n64 != n:
        x = jnp.pad(x, ((0, n64 - n), (0, 0)))
    rows = n64 // GROUP
    # (N, 24) -> (rows, 1536): identical row-major bytes.
    x_packed = x.reshape(rows, PACKED_IN)

    w_blk, b_blk = _pack_params(w, b)

    tile_rows = min(tile_rows, rows)          # == full dim for tiny batches
    grid = (pl.cdiv(rows, tile_rows),)        # last block may be partial

    out = pl.pallas_call(
        lr_kernel,
        out_shape=jax.ShapeDtypeStruct((rows, PACKED_OUT), jnp.float32),
        grid=grid,
        in_specs=[
            # x: streamed lane-dense batch tiles, auto double-buffered.
            pl.BlockSpec((tile_rows, PACKED_IN), lambda i: (i, 0)),
            # block-diagonal weight: constant block index -> VMEM-resident.
            pl.BlockSpec((PACKED_IN, PACKED_OUT), lambda i: (0, 0)),
            # tiled bias: constant block index -> VMEM-resident.
            pl.BlockSpec((1, PACKED_OUT), lambda i: (0, 0)),
        ],
        out_specs=pl.BlockSpec((tile_rows, PACKED_OUT), lambda i: (i, 0)),
        compiler_params=pltpu.CompilerParams(
            dimension_semantics=("parallel",),
        ),
    )(x_packed, w_blk, b_blk)

    # (rows, 128) is exactly (rows*64, 2) in row-major order.
    return out.reshape(n64, F_OUT)[:n]


if __name__ == "__main__":
    key = jax.random.PRNGKey(0)
    kx, kw, kb = jax.random.split(key, 3)

    batch = 8
    # Deterministic synthetic parameters (PyTorch nn.Linear(24, 2) shapes).
    x = jax.random.normal(kx, (batch, F_IN), dtype=jnp.float32)
    w = jax.random.normal(kw, (F_OUT, F_IN), dtype=jnp.float32) * 0.1
    b = jax.random.normal(kb, (F_OUT,), dtype=jnp.float32) * 0.1

    out = jax.block_until_ready(lr_forward(x, w, b))
    ref = jax.nn.sigmoid(x @ w.T + b)
    assert out.shape == (batch, F_OUT)
    err = float(jnp.max(jnp.abs(out - ref)))
    assert err < 1e-3, err

    # Exercise multi-step grid + partial last block + tail pad (2600 % 64 != 0).
    batch2 = 2600
    x2 = jax.random.normal(jax.random.PRNGKey(1), (batch2, F_IN), jnp.float32)
    out2 = jax.block_until_ready(lr_forward(x2, w, b, tile_rows=16))
    ref2 = jax.nn.sigmoid(x2 @ w.T + b)
    assert out2.shape == (batch2, F_OUT)
    err2 = float(jnp.max(jnp.abs(out2 - ref2)))
    assert err2 < 1e-3, err2

    print("KERNEL_OK")
</pallas_src>

<mosaic_0001>
module attributes {stable_mosaic.version = 11 : i64} {
  func.func @lr_kernel(%arg0: i32, %arg1: memref<1x1536xf32, #tpu.memory_space<vmem>>, %arg2: memref<1536x128xf32, #tpu.memory_space<vmem>>, %arg3: memref<1x128xf32, #tpu.memory_space<vmem>>, %arg4: memref<1x128xf32, #tpu.memory_space<vmem>>) attributes {dimension_semantics = [#tpu.dimension_semantics<parallel>], iteration_bounds = array<i64: 1>, scalar_prefetch = 0 : i64, scratch_operands = 0 : i64, tpu.core_type = #tpu.core_type<tc>, window_params = [{transform_indices = @transform_0, window_bounds = array<i64: 1, 1536>}, {pipeline_mode = #tpu.pipeline_mode<synchronous>, transform_indices = @transform_1, window_bounds = array<i64: 1536, 128>}, {pipeline_mode = #tpu.pipeline_mode<synchronous>, transform_indices = @transform_2, window_bounds = array<i64: 1, 128>}, {transform_indices = @transform_3, window_bounds = array<i64: 1, 128>}]} {
    %c0 = arith.constant 0 : index
    %c0_0 = arith.constant 0 : index
    %0 = vector.load %arg1[%c0, %c0_0] : memref<1x1536xf32, #tpu.memory_space<vmem>>, vector<1x1536xf32>
    %c0_1 = arith.constant 0 : index
    %c0_2 = arith.constant 0 : index
    %1 = vector.load %arg2[%c0_1, %c0_2] : memref<1536x128xf32, #tpu.memory_space<vmem>>, vector<1536x128xf32>
    %cst = arith.constant dense<0.000000e+00> : vector<1x128xf32>
    %2 = tpu.matmul %0, %1, %cst {dimension_numbers = #tpu.dot_dimension_numbers<[1], [0], [0], [1], [0, 0, 1, 1], [], []>, precision = #tpu.contract_precision<fp32>} : vector<1x1536xf32>, vector<1536x128xf32>, vector<1x128xf32> -> vector<1x128xf32>
    %c0_3 = arith.constant 0 : index
    %c0_4 = arith.constant 0 : index
    %3 = vector.load %arg3[%c0_3, %c0_4] : memref<1x128xf32, #tpu.memory_space<vmem>>, vector<1x128xf32>
    %4 = arith.addf %2, %3 : vector<1x128xf32>
    %cst_5 = arith.constant 0.000000e+00 : f32
    %5 = vector.broadcast %cst_5 : f32 to vector<1x128xf32>
    %6 = arith.subf %5, %4 : vector<1x128xf32>
    %7 = math.exp %6 : vector<1x128xf32>
    %cst_6 = arith.constant 1.000000e+00 : f32
    %8 = vector.broadcast %cst_6 : f32 to vector<1x128xf32>
    %9 = arith.addf %8, %7 : vector<1x128xf32>
    %cst_7 = arith.constant 1.000000e+00 : f32
    %10 = vector.broadcast %cst_7 : f32 to vector<1x128xf32>
    %11 = arith.divf %10, %9 : vector<1x128xf32>
    %c0_8 = arith.constant 0 : index
    %c0_9 = arith.constant 0 : index
    %12 = vector.load %arg4[%c0_8, %c0_9] : memref<1x128xf32, #tpu.memory_space<vmem>>, vector<1x128xf32>
    tpu.vector_store %arg4[%c0_8, %c0_9], %11 {strides = array<i32>} : memref<1x128xf32, #tpu.memory_space<vmem>>, vector<1x128xf32>,
    return
  }
  func.func @transform_0(%arg0: i32) -> (i32, i32) {
    %c0_i32 = arith.constant 0 : i32
    %c0_i32_0 = arith.constant 0 : i32
    return %arg0, %c0_i32 : i32, i32
  }
  func.func @transform_1(%arg0: i32) -> (i32, i32) {
    %c0_i32 = arith.constant 0 : i32
    %c0_i32_0 = arith.constant 0 : i32
    %c0_i32_1 = arith.constant 0 : i32
    return %c0_i32, %c0_i32_0 : i32, i32
  }
  func.func @transform_2(%arg0: i32) -> (i32, i32) {
    %c0_i32 = arith.constant 0 : i32
    %c0_i32_0 = arith.constant 0 : i32
    %c0_i32_1 = arith.constant 0 : i32
    return %c0_i32, %c0_i32_0 : i32, i32
  }
  func.func @transform_3(%arg0: i32) -> (i32, i32) {
    %c0_i32 = arith.constant 0 : i32
    %c0_i32_0 = arith.constant 0 : i32
    return %arg0, %c0_i32 : i32, i32
  }
}

</mosaic_0001>

<bundles_post_ra>
// kernel: tile.8
= control target key start
LH: loop header
LB: loop body
LE: loop exit
PB: predicated region body
PF: predicated region fallthrough
CT: control target
= control target key end

     0   :  { %s64_s0 = inlined_call_operand.vmem [shape: f32[2], index: 0, kind: input, shape index: {}]   ;;  %s65_s1 = inlined_call_operand.vmem [shape: f32[64,2], index: 1, kind: output, shape index: {}]  }
   0x1   :  { %v4_v0 = vld [vmem:[%s64_s0] ss:$0 sm:$0xff] }
   0x2   :  { %5 = vst [vmem:[%s65_s1] sm:$0xff] %v4_v0 }
   0x3   :  { %20 = vst [vmem:[%s65_s1 + $0x8] sm:$0xff] %v4_v0 }
   0x4   :  { %21 = vst [vmem:[%s65_s1 + $0x10] sm:$0xff] %v4_v0 }
   0x5   :  { %22 = vst [vmem:[%s65_s1 + $0x18] sm:$0xff] %v4_v0 }
   0x6   :  { %23 = vst [vmem:[%s65_s1 + $0x20] sm:$0xff] %v4_v0 }
   0x7   :  { %24 = vst [vmem:[%s65_s1 + $0x28] sm:$0xff] %v4_v0 }
   0x8   :  { %25 = vst [vmem:[%s65_s1 + $0x30] sm:$0xff] %v4_v0 }
   0x9   :  { %26 = vst [vmem:[%s65_s1 + $0x38] sm:$0xff] %v4_v0 }

// kernel: tile.9
= control target key start
LH: loop header
LB: loop body
LE: loop exit
PB: predicated region body
PF: predicated region fallthrough
CT: control target
= control target key end

     0   :  { %s515_s10 = smov 126   ;;  %s516_s11 = smov 122   ;;  %vm3_vm0 = vcmask 15360   ;;  %vm9_vm1 = vcmask 1048560   ;;  %vm15_vm2 = vcmask 1032160   ;;  %vm21_vm3 = vcmask 1015760   ;;  %s783_s0 = inlined_call_operand.vmem [shape: f32[64,2], index: 0, kind: input, shape index: {}]   ;;  %s784_s1 = inlined_call_operand.vmem [shape: f32[1,128], index: 1, kind: output, shape index: {}]  }
   0x1   :  { %v389_v0 = vld [vmem:[%s783_s0 + $0x3f] sm:$0x1]   ;;  %v391_v1 = vld [vmem:[%s783_s0 + $0x3d] sm:$0x1]   ;;  %v393_v2 = vld [vmem:[%s783_s0 + $0x3b] sm:$0x1]  }
   0x2   :  { %7 = vrot.lane.b32.xlu0 %v389_v0, %s515_s10  ;;  %19 = vrot.lane.b32.xlu1 %v391_v1, %s516_s11  ;;  %s517_s14 = smov 118   ;;  %v390_v3 = vld [vmem:[%s783_s0 + $0x3e] sm:$0x1]   ;;  %v392_v4 = vld [vmem:[%s783_s0 + $0x3c] sm:$0x1]   ;;  %s518_s19 = smov 124  }
   0x3   :  { %31 = vrot.lane.b32.xlu2 %v393_v2, %s517_s14  ;;  %s519_s20 = smov 120   ;;  %v394_v5 = vld [vmem:[%s783_s0 + $0x3a] sm:$0x1]   ;;  %s520_s23 = smov 116   ;;  %v395_v6 = vld [vmem:[%s783_s0 + $0x39] sm:$0x1]  }
   0x4   :  { %v396_v7 = vld [vmem:[%s783_s0 + $0x38] sm:$0x1]   ;;  %s521_s28 = smov 114   ;;  %s522_s29 = smov 112   ;;  %v397_v8 = vld [vmem:[%s783_s0 + $0x37] sm:$0x1]  }
   0x5   :  { %s523_s3 = smov 110   ;;  %v398_v9 = vld [vmem:[%s783_s0 + $0x36] sm:$0x1]   ;;  %v399_v10 = vld [vmem:[%s783_s0 + $0x35] sm:$0x1]   ;;  %s524_s8 = smov 108  }
   0x6   :  { %s525_s9 = smov 106   ;;  %v400_v11 = vld [vmem:[%s783_s0 + $0x34] sm:$0x1]   ;;  %s526_s12 = smov 104   ;;  %v401_v12 = vld [vmem:[%s783_s0 + $0x33] sm:$0x1]  }
   0x7   :  { %v402_v13 = vld [vmem:[%s783_s0 + $0x32] sm:$0x1]   ;;  %s527_s17 = smov 102   ;;  %s528_s18 = smov 100   ;;  %v403_v14 = vld [vmem:[%s783_s0 + $0x31] sm:$0x1]  }
   0x8   :  { %s529_s21 = smov 98   ;;  %v404_v15 = vld [vmem:[%s783_s0 + $0x30] sm:$0x1]   ;;  %v405_v16 = vld [vmem:[%s783_s0 + $0x2f] sm:$0x1]   ;;  %s530_s26 = smov 96  }
   0x9   :  { %s531_s27 = smov 94   ;;  %v406_v17 = vld [vmem:[%s783_s0 + $0x2e] sm:$0x1]   ;;  %s532_s30 = smov 92   ;;  %v407_v18 = vld [vmem:[%s783_s0 + $0x2d] sm:$0x1]  }
   0xa   :  { %13 = vrot.lane.b32.xlu0 %v390_v3, %s518_s19  ;;  %25 = vrot.lane.b32.xlu1 %v392_v4, %s519_s20  ;;  %v408_v19 = vld [vmem:[%s783_s0 + $0x2c] sm:$0x1]   ;;  %s533_s6 = smov 90   ;;  %s534_s7 = smov 88   ;;  %v409_v20 = vld [vmem:[%s783_s0 + $0x2b] sm:$0x1]  }
   0xb   :  { %37 = vrot.lane.b32.xlu2 %v394_v5, %s520_s23  ;;  %s535_s10 = smov 86   ;;  %v410_v21 = vld [vmem:[%s783_s0 + $0x2a] sm:$0x1]   ;;  %v411_v22 = vld [vmem:[%s783_s0 + $0x29] sm:$0x1]   ;;  %s536_s15 = smov 84  }
   0xc   :  { %s537_s16 = smov 82   ;;  %v412_v23 = vld [vmem:[%s783_s0 + $0x28] sm:$0x1]   ;;  %s538_s19 = smov 80   ;;  %v413_v24 = vld [vmem:[%s783_s0 + $0x27] sm:$0x1]  }
   0xd   :  { %v414_v25 = vld [vmem:[%s783_s0 + $0x26] sm:$0x1]   ;;  %s539_s24 = smov 78   ;;  %s540_s25 = smov 76   ;;  %v415_v26 = vld [vmem:[%s783_s0 + $0x25] sm:$0x1]  }
   0xe   :  { %v416_v27 = vld [vmem:[%s783_s0 + $0x24] sm:$0x1]   ;;  %v417_v28 = vld [vmem:[%s783_s0 + $0x23] sm:$0x1]   ;;  %s542_s4 = smov 72   ;;  %s543_s5 = smov 70  }
   0xf   :  { %v418_v29 = vld [vmem:[%s783_s0 + $0x22] sm:$0x1]   ;;  %v419_v30 = vld [vmem:[%s783_s0 + $0x21] sm:$0x1]   ;;  %v420_v31 = vld [vmem:[%s783_s0 + $0x20] sm:$0x1]  }
  0x10   :  { %s545_s13 = smov 66   ;;  %s546_s14 = smov 64   ;;  %v421_v32 = vld [vmem:[%s783_s0 + $0x1f] sm:$0x1]   ;;  %v2_v33 = vld [vmem:[%s783_s0] sm:$0x1]  }
  0x11   :  { %4 = vst.msk [vmem:[#allocation0] sm:$0x1] %vm3_vm0, %v2_v33   ;;  %v422_v34 = vld [vmem:[%s783_s0 + $0x1e] sm:$0x1]   ;;  %v423_v35 = vld [vmem:[%s783_s0 + $0x1d] sm:$0x1]  }
  0x12   :  { %43 = vrot.lane.b32.xlu0 %v395_v6, %s521_s28  ;;  %49 = vrot.lane.b32.xlu1 %v396_v7, %s522_s29  ;;  %s541_s28 = smov 74   ;;  %v424_v36 = vld [vmem:[%s783_s0 + $0x1c] sm:$0x1]   ;;  %v425_v37 = vld [vmem:[%s783_s0 + $0x1b] sm:$0x1]   ;;  %s557_s22 = smov 42  }
  0x13   :  { %55 = vrot.lane.b32.xlu2 %v397_v8, %s523_s3  ;;  %v426_v38 = vld [vmem:[%s783_s0 + $0x1a] sm:$0x1]   ;;  %v427_v40 = vld [vmem:[%s783_s0 + $0x19] sm:$0x1]   ;;  %v428_v41 = vld [vmem:[%s783_s0 + $0x18] sm:$0x1]  }
  0x14   :  { %v429_v42 = vld [vmem:[%s783_s0 + $0x17] sm:$0x1]   ;;  %v430_v44 = vld [vmem:[%s783_s0 + $0x16] sm:$0x1]   ;;  %v431_v45 = vld [vmem:[%s783_s0 + $0x15] sm:$0x1]  }
  0x15   :  { %v432_v46 = vld [vmem:[%s783_s0 + $0x14] sm:$0x1]   ;;  %s558_s23 = smov 40   ;;  %v433_v48 = vld [vmem:[%s783_s0 + $0x13] sm:$0x1]   ;;  %s560_s2 = smov 36  }
  0x16   :  { %v434_v51 = vld [vmem:[%s783_s0 + $0x12] sm:$0x1]   ;;  %v435_v52 = vld [vmem:[%s783_s0 + $0x11] sm:$0x1]   ;;  %s561_s3 = smov 34   ;;  %vm27_vm4 = vcmask 999360  }
  0x17   :  { %v436_v54 = vld [vmem:[%s783_s0 + $0x10] sm:$0x1]   ;;  %vm33_vm5 = vcmask 982960   ;;  %vm39_vm6 = vcmask 966560   ;;  %v437_v57 = vld [vmem:[%s783_s0 + $0xf] sm:$0x1]  }
  0x18   :  { %v438_v58 = vld [vmem:[%s783_s0 + $0xe] sm:$0x1]   ;;  %s563_s11 = smov 30   ;;  %vm45_vm7 = vcmask 950160   ;;  %vm51_vm8 = vcmask 933760   ;;  %vm57_vm9 = vcmask 917360  }
  0x19   :  { %v439_v60 = vld [vmem:[%s783_s0 + $0xd] sm:$0x1]   ;;  %v440_v63 = vld [vmem:[%s783_s0 + $0xc] sm:$0x1]   ;;  %v441_v0 = vld [vmem:[%s783_s0 + $0xb] sm:$0x1]  }
  0x1a   :  { %61 = vrot.lane.b32.xlu0 %v398_v9, %s524_s8  ;;  %67 = vrot.lane.b32.xlu1 %v399_v10, %s525_s9  ;;  %s544_s8 = smov 68   ;;  %s566_s20 = smov 24   ;;  %vm63_vm10 = vcmask 900960   ;;  %vm69_vm11 = vcmask 884560   ;;  %v442_v2 = vld [vmem:[%s783_s0 + $0xa] sm:$0x1]  }
  0x1b   :  { %73 = vrot.lane.b32.xlu2 %v400_v11, %s526_s12  ;;  %s564_s12 = smov 28   ;;  %vm75_vm12 = vcmask 868160   ;;  %v443_v5 = vld [vmem:[%s783_s0 + $0x9] sm:$0x1]   ;;  %v444_v6 = vld [vmem:[%s783_s0 + $0x8] sm:$0x1]  }
  0x1c   :  { %s569_s29 = smov 18   ;;  %vm81_vm13 = vcmask 851760   ;;  %vm87_vm14 = vcmask 835360   ;;  %v445_v8 = vld [vmem:[%s783_s0 + $0x7] sm:$0x1]   ;;  %vm93_vm15 = vcmask 818960  }
  0x1d   :  { %v446_v11 = vld [vmem:[%s783_s0 + $0x6] sm:$0x1]   ;;  %s572_s9 = smov 12   ;;  %vm99_vm0 = vcmask 802560  }
  0x22   :  { %79 = vrot.lane.b32.xlu0 %v401_v12, %s527_s17  ;;  %85 = vrot.lane.b32.xlu1 %v402_v13, %s528_s18  ;;  %s556_s17 = smov 44   ;;  %v447_v12 = vld [vmem:[%s783_s0 + $0x5] sm:$0x1]   ;;  %s575_s18 = smov 6  }
  0x23   :  { %91 = vrot.lane.b32.xlu2 %v403_v14, %s529_s21  ;;  %s567_s21 = smov 22   ;;  %v448_v14 = vld [vmem:[%s783_s0 + $0x4] sm:$0x1]  }
  0x2a   :  { %97 = vrot.lane.b32.xlu0 %v404_v15, %s530_s26  ;;  %103 = vrot.lane.b32.xlu1 %v405_v16, %s531_s27  ;;  %s559_s26 = smov 38  }
  0x2b   :  { %109 = vrot.lane.b32.xlu2 %v406_v17, %s532_s30  ;;  %s570_s30 = smov 16   ;;  %v449_v17 = vld [vmem:[%s783_s0 + $0x3] sm:$0x1]  }
  0x32   :  { %115 = vrot.lane.b32.xlu0 %v407_v18, %s533_s6  ;;  %121 = vrot.lane.b32.xlu1 %v408_v19, %s534_s7  ;;  %s562_s6 = smov 32   ;;  %v450_v18 = vld [vmem:[%s783_s0 + $0x2] sm:$0x1]  }
  0x33   :  { %127 = vrot.lane.b32.xlu2 %v409_v20, %s535_s10  ;;  %s573_s10 = smov 10   ;;  %v451_v20 = vld [vmem:[%s783_s0 + $0x1] sm:$0x1]   ;;  %s577_s0 = smov 2  }
  0x3a   :  { %133 = vrot.lane.b32.xlu0 %v410_v21, %s536_s15  ;;  %139 = vrot.lane.b32.xlu1 %v411_v22, %s537_s16  ;;  %s565_s15 = smov 26  }
  0x3b   :  { %145 = vrot.lane.b32.xlu2 %v412_v23, %s538_s19  ;;  %s547_s19 = smov 62  }
  0x42   :  { %151 = vrot.lane.b32.xlu0 %v413_v24, %s539_s24  ;;  %157 = vrot.lane.b32.xlu1 %v414_v25, %s540_s25  ;;  %s548_s24 = smov 60   ;;  %s549_s25 = smov 58  }
  0x43   :  { %163 = vrot.lane.b32.xlu2 %v415_v26, %s541_s28  ;;  %s550_s28 = smov 56  }
  0x4a   :  { %169 = vrot.lane.b32.xlu0 %v416_v27, %s542_s4  ;;  %175 = vrot.lane.b32.xlu1 %v417_v28, %s543_s5  ;;  %s551_s4 = smov 54   ;;  %s552_s5 = smov 52  }
  0x4b   :  { %181 = vrot.lane.b32.xlu2 %v418_v29, %s544_s8  ;;  %s553_s8 = smov 50  }
  0x52   :  { %187 = vrot.lane.b32.xlu0 %v419_v30, %s545_s13  ;;  %193 = vrot.lane.b32.xlu1 %v420_v31, %s546_s14  ;;  %s554_s13 = smov 48   ;;  %s555_s14 = smov 46  }
  0x53   :  { %199 = vrot.lane.b32.xlu2 %v421_v32, %s547_s19  ;;  %s576_s19 = smov 4  }
  0x5a   :  { %205 = vrot.lane.b32.xlu0 %v422_v34, %s548_s24  ;;  %211 = vrot.lane.b32.xlu1 %v423_v35, %s549_s25  ;;  %s568_s24 = smov 20  }
  0x5b   :  { %217 = vrot.lane.b32.xlu2 %v424_v36, %s550_s28 }
  0x5d   :  { %v32_v39 = vpop.permute.xlu2 %31  }
  0x62   :  { %223 = vrot.lane.b32.xlu0 %v425_v37, %s551_s4  ;;  %229 = vrot.lane.b32.xlu1 %v426_v38, %s552_s5  ;;  %s571_s4 = smov 14  }
  0x63   :  { %235 = vrot.lane.b32.xlu2 %v427_v40, %s553_s8 }
  0x65   :  { %v38_v43 = vpop.permute.xlu2 %37  }
  0x6a   :  { %241 = vrot.lane.b32.xlu0 %v428_v41, %s554_s13  ;;  %247 = vrot.lane.b32.xlu1 %v429_v42, %s555_s14  ;;  %s574_s13 = smov 8  }
  0x6b   :  { %253 = vrot.lane.b32.xlu2 %v430_v44, %s556_s17 }
  0x6d   :  { %v56_v47 = vpop.permute.xlu2 %55  }
  0x72   :  { %259 = vrot.lane.b32.xlu0 %v431_v45, %s557_s22  ;;  %265 = vrot.lane.b32.xlu1 %v432_v46, %s558_s23 }
  0x73   :  { %271 = vrot.lane.b32.xlu2 %v433_v48, %s559_s26 }
  0x74   :  { %v8_v49 = vpop.permute.xlu0 %7   ;;  %v20_v50 = vpop.permute.xlu1 %19  }
  0x75   :  { %10 = vst.msk [vmem:[#allocation0] sm:$0x1] %vm9_vm1, %v8_v49   ;;  %v74_v53 = vpop.permute.xlu2 %73   ;;  %vm105_vm1 = vcmask 786160  }
  0x7a   :  { %277 = vrot.lane.b32.xlu0 %v434_v51, %s560_s2  ;;  %283 = vrot.lane.b32.xlu1 %v435_v52, %s561_s3 }
  0x7b   :  { %289 = vrot.lane.b32.xlu2 %v436_v54, %s562_s6 }
  0x7c   :  { %v14_v55 = vpop.permute.xlu0 %13   ;;  %v26_v56 = vpop.permute.xlu1 %25  }
  0x7d   :  { %16 = vst.msk [vmem:[#allocation0] sm:$0x1] %vm15_vm2, %v14_v55   ;;  %v92_v59 = vpop.permute.xlu2 %91   ;;  %vm111_vm2 = vcmask 769760  }
  0x7e   :  { %22 = vst.msk [vmem:[#allocation0] sm:$0x1] %vm21_vm3, %v20_v50   ;;  %vm117_vm3 = vcmask 753360  }
  0x7f   :  { %28 = vst.msk [vmem:[#allocation0] sm:$0x1] %vm27_vm4, %v26_v56   ;;  %vm123_vm4 = vcmask 736960  }
  0x80   :  { %34 = vst.msk [vmem:[#allocation0] sm:$0x1] %vm33_vm5, %v32_v39   ;;  %vm129_vm5 = vcmask 720560  }
  0x81   :  { %40 = vst.msk [vmem:[#allocation0] sm:$0x1] %vm39_vm6, %v38_v43   ;;  %vm135_vm6 = vcmask 704160  }
  0x82   :  { %295 = vrot.lane.b32.xlu0 %v437_v57, %s563_s11  ;;  %301 = vrot.lane.b32.xlu1 %v438_v58, %s564_s12 }
  0x83   :  { %307 = vrot.lane.b32.xlu2 %v439_v60, %s565_s15 }
  0x84   :  { %v44_v61 = vpop.permute.xlu0 %43   ;;  %v50_v62 = vpop.permute.xlu1 %49  }
  0x85   :  { %46 = vst.msk [vmem:[#allocation0] sm:$0x1] %vm45_vm7, %v44_v61   ;;  %v110_v1 = vpop.permute.xlu2 %109   ;;  %vm141_vm7 = vcmask 687760  }
  0x86   :  { %52 = vst.msk [vmem:[#allocation0] sm:$0x1] %vm51_vm8, %v50_v62   ;;  %vm147_vm8 = vcmask 671360  }
  0x87   :  { %58 = vst.msk [vmem:[#allocation0] sm:$0x1] %vm57_vm9, %v56_v47   ;;  %vm153_vm9 = vcmask 654960  }
  0x8a   :  { %313 = vrot.lane.b32.xlu0 %v440_v63, %s566_s20  ;;  %319 = vrot.lane.b32.xlu1 %v441_v0, %s567_s21 }
  0x8b   :  { %325 = vrot.lane.b32.xlu2 %v442_v2, %s568_s24 }
  0x8c   :  { %v62_v3 = vpop.permute.xlu0 %61   ;;  %v68_v4 = vpop.permute.xlu1 %67  }
  0x8d   :  { %64 = vst.msk [vmem:[#allocation0] sm:$0x1] %vm63_vm10, %v62_v3   ;;  %v128_v7 = vpop.permute.xlu2 %127   ;;  %vm159_vm10 = vcmask 638560  }
  0x8e   :  { %70 = vst.msk [vmem:[#allocation0] sm:$0x1] %vm69_vm11, %v68_v4   ;;  %vm165_vm11 = vcmask 622160  }
  0x8f   :  { %76 = vst.msk [vmem:[#allocation0] sm:$0x1] %vm75_vm12, %v74_v53   ;;  %vm171_vm12 = vcmask 605760  }
  0x92   :  { %331 = vrot.lane.b32.xlu0 %v443_v5, %s569_s29  ;;  %337 = vrot.lane.b32.xlu1 %v444_v6, %s570_s30 }
  0x93   :  { %343 = vrot.lane.b32.xlu2 %v445_v8, %s571_s4 }
  0x94   :  { %v80_v9 = vpop.permute.xlu0 %79   ;;  %v86_v10 = vpop.permute.xlu1 %85  }
  0x95   :  { %82 = vst.msk [vmem:[#allocation0] sm:$0x1] %vm81_vm13, %v80_v9   ;;  %v146_v13 = vpop.permute.xlu2 %145   ;;  %vm177_vm13 = vcmask 589360  }
  0x96   :  { %88 = vst.msk [vmem:[#allocation0] sm:$0x1] %vm87_vm14, %v86_v10   ;;  %vm183_vm14 = vcmask 572960  }
  0x97   :  { %94 = vst.msk [vmem:[#allocation0] sm:$0x1] %vm93_vm15, %v92_v59   ;;  %vm189_vm15 = vcmask 556560  }
  0x9a   :  { %349 = vrot.lane.b32.xlu0 %v446_v11, %s572_s9  ;;  %355 = vrot.lane.b32.xlu1 %v447_v12, %s573_s10 }
  0x9b   :  { %361 = vrot.lane.b32.xlu2 %v448_v14, %s574_s13 }
  0x9c   :  { %v98_v15 = vpop.permute.xlu0 %97   ;;  %v104_v16 = vpop.permute.xlu1 %103  }
  0x9d   :  { %100 = vst.msk [vmem:[#allocation0] sm:$0x1] %vm99_vm0, %v98_v15   ;;  %v164_v19 = vpop.permute.xlu2 %163   ;;  %vm195_vm0 = vcmask 540160  }
  0x9e   :  { %106 = vst.msk [vmem:[#allocation0] sm:$0x1] %vm105_vm1, %v104_v16   ;;  %vm201_vm1 = vcmask 523760  }
  0x9f   :  { %112 = vst.msk [vmem:[#allocation0] sm:$0x1] %vm111_vm2, %v110_v1   ;;  %vm207_vm2 = vcmask 507360  }
  0xa2   :  { %367 = vrot.lane.b32.xlu0 %v449_v17, %s575_s18  ;;  %373 = vrot.lane.b32.xlu1 %v450_v18, %s576_s19 }
  0xa3   :  { %379 = vrot.lane.b32.xlu2 %v451_v20, %s577_s0 }
  0xa4   :  { %v116_v21 = vpop.permute.xlu0 %115   ;;  %v122_v22 = vpop.permute.xlu1 %121  }
  0xa5   :  { %118 = vst.msk [vmem:[#allocation0] sm:$0x1] %vm117_vm3, %v116_v21   ;;  %v182_v23 = vpop.permute.xlu2 %181   ;;  %vm213_vm3 = vcmask 490960  }
  0xa6   :  { %124 = vst.msk [vmem:[#allocation0] sm:$0x1] %vm123_vm4, %v122_v22   ;;  %vm219_vm4 = vcmask 474560  }
  0xa7   :  { %130 = vst.msk [vmem:[#allocation0] sm:$0x1] %vm129_vm5, %v128_v7   ;;  %vm225_vm5 = vcmask 458160  }
  0xac   :  { %v134_v24 = vpop.permute.xlu0 %133   ;;  %v140_v25 = vpop.permute.xlu1 %139  }
  0xad   :  { %136 = vst.msk [vmem:[#allocation0] sm:$0x1] %vm135_vm6, %v134_v24   ;;  %v200_v26 = vpop.permute.xlu2 %199   ;;  %vm231_vm6 = vcmask 441760  }
  0xae   :  { %142 = vst.msk [vmem:[#allocation0] sm:$0x1] %vm141_vm7, %v140_v25   ;;  %vm237_vm7 = vcmask 425360  }
  0xaf   :  { %148 = vst.msk [vmem:[#allocation0] sm:$0x1] %vm147_vm8, %v146_v13   ;;  %vm243_vm8 = vcmask 408960  }
  0xb4   :  { %v152_v27 = vpop.permute.xlu0 %151   ;;  %v158_v28 = vpop.permute.xlu1 %157  }
  0xb5   :  { %154 = vst.msk [vmem:[#allocation0] sm:$0x1] %vm153_vm9, %v152_v27   ;;  %v218_v29 = vpop.permute.xlu2 %217   ;;  %vm249_vm9 = vcmask 392560  }
  0xb6   :  { %160 = vst.msk [vmem:[#allocation0] sm:$0x1] %vm159_vm10, %v158_v28   ;;  %vm255_vm10 = vcmask 376160  }
  0xb7   :  { %166 = vst.msk [vmem:[#allocation0] sm:$0x1] %vm165_vm11, %v164_v19   ;;  %vm261_vm11 = vcmask 359760  }
  0xbc   :  { %v170_v30 = vpop.permute.xlu0 %169   ;;  %v176_v31 = vpop.permute.xlu1 %175  }
  0xbd   :  { %172 = vst.msk [vmem:[#allocation0] sm:$0x1] %vm171_vm12, %v170_v30   ;;  %v236_v32 = vpop.permute.xlu2 %235   ;;  %vm267_vm12 = vcmask 343360  }
  0xbe   :  { %178 = vst.msk [vmem:[#allocation0] sm:$0x1] %vm177_vm13, %v176_v31   ;;  %vm273_vm13 = vcmask 326960  }
  0xbf   :  { %184 = vst.msk [vmem:[#allocation0] sm:$0x1] %vm183_vm14, %v182_v23   ;;  %vm279_vm14 = vcmask 310560  }
  0xc4   :  { %v188_v33 = vpop.permute.xlu0 %187   ;;  %v194_v34 = vpop.permute.xlu1 %193  }
  0xc5   :  { %190 = vst.msk [vmem:[#allocation0] sm:$0x1] %vm189_vm15, %v188_v33   ;;  %v254_v35 = vpop.permute.xlu2 %253   ;;  %vm285_vm15 = vcmask 294160  }
  0xc6   :  { %196 = vst.msk [vmem:[#allocation0] sm:$0x1] %vm195_vm0, %v194_v34   ;;  %vm291_vm0 = vcmask 277760  }
  0xc7   :  { %202 = vst.msk [vmem:[#allocation0] sm:$0x1] %vm201_vm1, %v200_v26   ;;  %vm297_vm1 = vcmask 261360  }
  0xcc   :  { %v206_v36 = vpop.permute.xlu0 %205   ;;  %v212_v37 = vpop.permute.xlu1 %211  }
  0xcd   :  { %208 = vst.msk [vmem:[#allocation0] sm:$0x1] %vm207_vm2, %v206_v36   ;;  %v272_v38 = vpop.permute.xlu2 %271   ;;  %vm303_vm2 = vcmask 244960  }
  0xce   :  { %214 = vst.msk [vmem:[#allocation0] sm:$0x1] %vm213_vm3, %v212_v37   ;;  %vm309_vm3 = vcmask 228560  }
  0xcf   :  { %220 = vst.msk [vmem:[#allocation0] sm:$0x1] %vm219_vm4, %v218_v29   ;;  %vm315_vm4 = vcmask 212160  }
  0xd4   :  { %v224_v39 = vpop.permute.xlu0 %223   ;;  %v230_v40 = vpop.permute.xlu1 %229  }
  0xd5   :  { %226 = vst.msk [vmem:[#allocation0] sm:$0x1] %vm225_vm5, %v224_v39   ;;  %v290_v41 = vpop.permute.xlu2 %289   ;;  %vm321_vm5 = vcmask 195760  }
  0xd6   :  { %232 = vst.msk [vmem:[#allocation0] sm:$0x1] %vm231_vm6, %v230_v40   ;;  %vm327_vm6 = vcmask 179360  }
  0xd7   :  { %238 = vst.msk [vmem:[#allocation0] sm:$0x1] %vm237_vm7, %v236_v32   ;;  %vm333_vm7 = vcmask 162960  }
  0xdc   :  { %v242_v42 = vpop.permute.xlu0 %241   ;;  %v248_v43 = vpop.permute.xlu1 %247  }
  0xdd   :  { %244 = vst.msk [vmem:[#allocation0] sm:$0x1] %vm243_vm8, %v242_v42   ;;  %v308_v44 = vpop.permute.xlu2 %307   ;;  %vm339_vm8 = vcmask 146560  }
  0xde   :  { %250 = vst.msk [vmem:[#allocation0] sm:$0x1] %vm249_vm9, %v248_v43   ;;  %vm345_vm9 = vcmask 130160  }
  0xdf   :  { %256 = vst.msk [vmem:[#allocation0] sm:$0x1] %vm255_vm10, %v254_v35   ;;  %vm351_vm10 = vcmask 113760  }
  0xe4   :  { %v260_v45 = vpop.permute.xlu0 %259   ;;  %v266_v46 = vpop.permute.xlu1 %265  }
  0xe5   :  { %262 = vst.msk [vmem:[#allocation0] sm:$0x1] %vm261_vm11, %v260_v45   ;;  %v326_v47 = vpop.permute.xlu2 %325   ;;  %vm357_vm11 = vcmask 97360  }
  0xe6   :  { %268 = vst.msk [vmem:[#allocation0] sm:$0x1] %vm267_vm12, %v266_v46   ;;  %vm363_vm12 = vcmask 80960  }
  0xe7   :  { %274 = vst.msk [vmem:[#allocation0] sm:$0x1] %vm273_vm13, %v272_v38   ;;  %vm369_vm13 = vcmask 64560  }
  0xec   :  { %v278_v48 = vpop.permute.xlu0 %277   ;;  %v284_v49 = vpop.permute.xlu1 %283  }
  0xed   :  { %280 = vst.msk [vmem:[#allocation0] sm:$0x1] %vm279_vm14, %v278_v48   ;;  %v344_v50 = vpop.permute.xlu2 %343   ;;  %vm375_vm14 = vcmask 48160  }
  0xee   :  { %286 = vst.msk [vmem:[#allocation0] sm:$0x1] %vm285_vm15, %v284_v49   ;;  %vm381_vm15 = vcmask 31760  }
  0xef   :  { %292 = vst.msk [vmem:[#allocation0] sm:$0x1] %vm291_vm0, %v290_v41  }
  0xf4   :  { %v296_v51 = vpop.permute.xlu0 %295   ;;  %v302_v52 = vpop.permute.xlu1 %301  }
  0xf5   :  { %298 = vst.msk [vmem:[#allocation0] sm:$0x1] %vm297_vm1, %v296_v51   ;;  %v362_v53 = vpop.permute.xlu2 %361  }
  0xf6   :  { %304 = vst.msk [vmem:[#allocation0] sm:$0x1] %vm303_vm2, %v302_v52  }
  0xf7   :  { %310 = vst.msk [vmem:[#allocation0] sm:$0x1] %vm309_vm3, %v308_v44  }
  0xfc   :  { %v314_v54 = vpop.permute.xlu0 %313   ;;  %v320_v55 = vpop.permute.xlu1 %319  }
  0xfd   :  { %316 = vst.msk [vmem:[#allocation0] sm:$0x1] %vm315_vm4, %v314_v54   ;;  %v380_v56 = vpop.permute.xlu2 %379  }
  0xfe   :  { %322 = vst.msk [vmem:[#allocation0] sm:$0x1] %vm321_vm5, %v320_v55  }
  0xff   :  { %328 = vst.msk [vmem:[#allocation0] sm:$0x1] %vm327_vm6, %v326_v47  }
 0x104   :  { %v332_v57 = vpop.permute.xlu0 %331   ;;  %v338_v58 = vpop.permute.xlu1 %337  }
 0x105   :  { %334 = vst.msk [vmem:[#allocation0] sm:$0x1] %vm333_vm7, %v332_v57  }
 0x106   :  { %340 = vst.msk [vmem:[#allocation0] sm:$0x1] %vm339_vm8, %v338_v58  }
 0x107   :  { %346 = vst.msk [vmem:[#allocation0] sm:$0x1] %vm345_vm9, %v344_v50  }
 0x10c   :  { %v350_v59 = vpop.permute.xlu0 %349   ;;  %v356_v60 = vpop.permute.xlu1 %355  }
 0x10d   :  { %352 = vst.msk [vmem:[#allocation0] sm:$0x1] %vm351_vm10, %v350_v59  }
 0x10e   :  { %358 = vst.msk [vmem:[#allocation0] sm:$0x1] %vm357_vm11, %v356_v60  }
 0x10f   :  { %364 = vst.msk [vmem:[#allocation0] sm:$0x1] %vm363_vm12, %v362_v53  }
 0x114   :  { %v368_v61 = vpop.permute.xlu0 %367   ;;  %v374_v62 = vpop.permute.xlu1 %373  }
 0x115   :  { %370 = vst.msk [vmem:[#allocation0] sm:$0x1] %vm369_vm13, %v368_v61  }
 0x116   :  { %376 = vst.msk [vmem:[#allocation0] sm:$0x1] %vm375_vm14, %v374_v62  }
 0x117   :  { %382 = vst.msk [vmem:[#allocation0] sm:$0x1] %vm381_vm15, %v380_v56  }
 0x11e   :  { %v385_v63 = vld [vmem:[#allocation0] sm:$0x1] }
 0x11f   :  { %388 = vst [vmem:[%s784_s1] sm:$0x1] %v385_v63 }

// kernel: lr_forward.1
= control target key start
LH: loop header
LB: loop body
LE: loop exit
PB: predicated region body
PF: predicated region fallthrough
CT: control target
= control target key end

     0   :  { %s8047_s1 = inlined_call_operand.vmem [shape: f32[1536,128], index: 1, kind: input, shape index: {}]   ;;  %s8048_s0 = inlined_call_operand.vmem [shape: f32[1,1536], index: 0, kind: input, shape index: {}]   ;;  %s8049_s2 = inlined_call_operand.vmem [shape: f32[1,128], index: 2, kind: input, shape index: {}]   ;;  %s8050_s3 = inlined_call_operand.vmem [shape: f32[1,128], index: 3, kind: output, shape index: {}]  }
   0x1   :  { %v31_v0 = vld [vmem:[%s8047_s1 + $0x78] sm:$0xff]  ;;  %v30_v1 = vld [vmem:[%s8047_s1 + $0x70] sm:$0xff]  ;;  %v29_v2 = vld [vmem:[%s8047_s1 + $0x68] sm:$0xff] }
   0x2   :  { %v4387_v3 = vand.u32 4294901760, %v31_v0  ;;  %v4389_v4 = vand.u32 4294901760, %v30_v1  ;;  %v4391_v5 = vand.u32 4294901760, %v29_v2  ;;  %v28_v6 = vld [vmem:[%s8047_s1 + $0x60] sm:$0xff]  ;;  %v27_v7 = vld [vmem:[%s8047_s1 + $0x58] sm:$0xff]  ;;  %v26_v8 = vld [vmem:[%s8047_s1 + $0x50] sm:$0xff] }
   0x3   :  { %v4402_v9 = vand.u32 4294901760, %v28_v6  ;;  %v4404_v10 = vand.u32 4294901760, %v27_v7  ;;  %v4406_v11 = vand.u32 4294901760, %v26_v8  ;;  %v25_v12 = vld [vmem:[%s8047_s1 + $0x48] sm:$0xff]  ;;  %v24_v13 = vld [vmem:[%s8047_s1 + $0x40] sm:$0xff]  ;;  %v23_v21 = vld [vmem:[%s8047_s1 + $0x38] sm:$0xff] }
   0x4   :  { %236 = vmatpush.msra.mxu0 %v4387_v3  ;;  %v4416_v14 = vsub.f32 %v31_v0, %v4387_v3  ;;  %v4419_v15 = vsub.f32 %v30_v1, %v4389_v4  ;;  %432 = vmatpush.msra.mxu3 %v4387_v3  ;;  %v4423_v16 = vsub.f32 %v29_v2, %v4391_v5  ;;  %v4425_v17 = vand.u32 4294901760, %v25_v12  ;;  %v22_v26 = vld [vmem:[%s8047_s1 + $0x30] sm:$0xff]  ;;  %v21_v36 = vld [vmem:[%s8047_s1 + $0x28] sm:$0xff]  ;;  %v20_v42 = vld [vmem:[%s8047_s1 + $0x20] sm:$0xff] }
   0x5   :  { %v4428_v18 = vsub.f32 %v28_v6, %v4402_v9  ;;  %v4431_v19 = vsub.f32 %v27_v7, %v4404_v10  ;;  %v4433_v20 = vand.u32 4294901760, %v24_v13  ;;  %v4444_v25 = vsub.f32 %v26_v8, %v4406_v11  ;;  %v19_v48 = vld [vmem:[%s8047_s1 + $0x18] sm:$0xff]  ;;  %v18_v54 = vld [vmem:[%s8047_s1 + $0x10] sm:$0xff]  ;;  %v17_v59 = vld [vmem:[%s8047_s1 + $0x8] sm:$0xff] }
   0x6   :  { %238 = vmatpush.msra.mxu0 %v4389_v4  ;;  %379 = vmatpush.msra.mxu2 %v4416_v14  ;;  %v278_v22 = vand.u32 4294901760, %v4416_v14  ;;  %v8066_v23 = vand.u32 4294901760, %v4419_v15  ;;  %v8064_v24 = vand.u32 4294901760, %v4423_v16  ;;  %v4453_v29 = vsub.f32 %v25_v12, %v4425_v17  ;;  %v47_v60 = vld [vmem:[%s8047_s1 + $0xf8] sm:$0xff]  ;;  %v46_v2 = vld [vmem:[%s8047_s1 + $0xf0] sm:$0xff]  ;;  %v16_v7 = vld [vmem:[%s8047_s1] sm:$0xff] }
   0x7   :  { %434 = vmatpush.msra.mxu3 %v4389_v4  ;;  %v8063_v27 = vand.u32 4294901760, %v4428_v18  ;;  %v8060_v28 = vand.u32 4294901760, %v4431_v19  ;;  %v4466_v33 = vand.u32 4294901760, %v23_v21  ;;  %v4469_v34 = vand.u32 4294901760, %v22_v26 }
   0x8   :  { %240 = vmatpush.msra.mxu0 %v4391_v5  ;;  %382 = vmatpush.msra.mxu2 %v4419_v15  ;;  %v279_v30 = vsub.f32 %v4416_v14, %v278_v22  ;;  %v285_v31 = vsub.f32 %v4419_v15, %v8066_v23  ;;  %v291_v32 = vsub.f32 %v4423_v16, %v8064_v24  ;;  %v8059_v40 = vand.u32 4294901760, %v4444_v25  ;;  %v38_v23 = vld [vmem:[%s8047_s1 + $0xb0] sm:$0xff] }
   0x9   :  { %436 = vmatpush.msra.mxu3 %v4391_v5  ;;  %v4472_v35 = vsub.f32 %v24_v13, %v4433_v20  ;;  %v297_v39 = vsub.f32 %v4428_v18, %v8063_v27  ;;  %v303_v41 = vsub.f32 %v4431_v19, %v8060_v28  ;;  %v4491_v44 = vand.u32 4294901760, %v21_v36 }
   0xa   :  { %242 = vmatpush.msra.mxu0 %v4402_v9  ;;  %v280_v37 = vand.u32 4294901760, %v279_v30  ;;  %385 = vmatpush.msra.mxu2 %v4423_v16  ;;  %v286_v38 = vand.u32 4294901760, %v285_v31  ;;  %v292_v43 = vand.u32 4294901760, %v291_v32  ;;  %v8058_v45 = vand.u32 4294901760, %v4453_v29  ;;  %v45_v32 = vld [vmem:[%s8047_s1 + $0xe8] sm:$0xff] }
   0xb   :  { %438 = vmatpush.msra.mxu3 %v4402_v9  ;;  %v4495_v46 = vsub.f32 %v23_v21, %v4466_v33  ;;  %v8056_v47 = vand.u32 4294901760, %v4472_v35  ;;  %v298_v49 = vand.u32 4294901760, %v297_v39  ;;  %v309_v50 = vsub.f32 %v4444_v25, %v8059_v40 }
   0xc   :  { %244 = vmatpush.msra.mxu0 %v4404_v10  ;;  %281 = vmatpush.msra.mxu1 %v280_v37  ;;  %v4507_v51 = vand.u32 4294901760, %v20_v42  ;;  %v4510_v52 = vsub.f32 %v22_v26, %v4469_v34  ;;  %v304_v53 = vand.u32 4294901760, %v303_v41  ;;  %v315_v55 = vsub.f32 %v4453_v29, %v8058_v45  ;;  %v44_v41 = vld [vmem:[%s8047_s1 + $0xe0] sm:$0xff] }
   0xd   :  { %388 = vmatpush.msra.mxu2 %v4428_v18  ;;  %440 = vmatpush.msra.mxu3 %v4404_v10  ;;  %v4521_v56 = vand.u32 4294901760, %v19_v48  ;;  %v8054_v57 = vand.u32 4294901760, %v4495_v46  ;;  %v4525_v58 = vsub.f32 %v21_v36, %v4491_v44  ;;  %v321_v61 = vsub.f32 %v4472_v35, %v8056_v47 }
   0xe   :  { %246 = vmatpush.msra.mxu0 %v4406_v11  ;;  %287 = vmatpush.msra.mxu1 %v286_v38  ;;  %v310_v62 = vand.u32 4294901760, %v309_v50  ;;  %v4539_v63 = vand.u32 4294901760, %v18_v54  ;;  %v8053_v0 = vand.u32 4294901760, %v4510_v52  ;;  %v4543_v1 = vsub.f32 %v20_v42, %v4507_v51 }
   0xf   :  { %391 = vmatpush.msra.mxu2 %v4431_v19  ;;  %442 = vmatpush.msra.mxu3 %v4406_v11  ;;  %v4550_v6 = vand.u32 4294901760, %v17_v59  ;;  %v4555_v8 = vand.u32 4294901760, %v47_v60  ;;  %v316_v12 = vand.u32 4294901760, %v315_v55  ;;  %v327_v13 = vsub.f32 %v4495_v46, %v8054_v57 }
  0x10   :  { %248 = vmatpush.msra.mxu0 %v4425_v17  ;;  %293 = vmatpush.msra.mxu1 %v292_v43  ;;  %v8052_v21 = vand.u32 4294901760, %v4525_v58  ;;  %v4563_v26 = vsub.f32 %v19_v48, %v4521_v56  ;;  %v322_v30 = vand.u32 4294901760, %v321_v61  ;;  %v4567_v31 = vand.u32 4294901760, %v46_v2 }
  0x11   :  { %394 = vmatpush.msra.mxu2 %v4444_v25  ;;  %444 = vmatpush.msra.mxu3 %v4425_v17  ;;  %8197 = vst [vmem:[#allocation2_spill] sm:$0xff] %v4555_v8  ;;  %v333_v36 = vsub.f32 %v4510_v52, %v8053_v0  ;;  %v4576_v37 = vand.u32 4294901760, %v16_v7  ;;  %v8051_v38 = vand.u32 4294901760, %v4543_v1  ;;  %v4580_v39 = vsub.f32 %v18_v54, %v4539_v63 }
  0x12   :  { %250 = vmatpush.msra.mxu0 %v4433_v20  ;;  %299 = vmatpush.msra.mxu1 %v298_v49  ;;  %v4588_v42 = vsub.f32 %v17_v59, %v4550_v6  ;;  %v4591_v43 = vsub.f32 %v47_v60, %v4555_v8  ;;  %v328_v48 = vand.u32 4294901760, %v327_v13  ;;  %v339_v49 = vsub.f32 %v4525_v58, %v8052_v21  ;;  %v43_v59 = vld [vmem:[%s8047_s1 + $0xd8] sm:$0xff] }
  0x13   :  { %397 = vmatpush.msra.mxu2 %v4453_v29  ;;  %446 = vmatpush.msra.mxu3 %v4433_v20  ;;  %8198 = vst [vmem:[#allocation3_spill] sm:$0xff] %v4576_v37  ;;  %v8055_v50 = vand.u32 4294901760, %v4563_v26  ;;  %v4603_v54 = vsub.f32 %v46_v2, %v4567_v31  ;;  %v4605_v55 = vand.u32 4294901760, %v44_v41  ;;  %v334_v60 = vand.u32 4294901760, %v333_v36 }
  0x14   :  { %252 = vmatpush.msra.mxu0 %v4466_v33  ;;  %305 = vmatpush.msra.mxu1 %v304_v53  ;;  %v4598_v53 = vand.u32 4294901760, %v45_v32  ;;  %v345_v61 = vsub.f32 %v4543_v1, %v8051_v38  ;;  %v8061_v2 = vand.u32 4294901760, %v4588_v42  ;;  %v8062_v13 = vand.u32 4294901760, %v4591_v43 }
  0x15   :  { %400 = vmatpush.msra.mxu2 %v4472_v35  ;;  %448 = vmatpush.msra.mxu3 %v4466_v33  ;;  %v340_v36 = vand.u32 4294901760, %v339_v49  ;;  %v4632_v21 = vand.u32 4294901760, %v43_v59  ;;  %v8065_v0 = vand.u32 4294901760, %v4603_v54  ;;  %v4638_v57 = vsub.f32 %v44_v41, %v4605_v55  ;;  %v40_v41 = vld [vmem:[%s8047_s1 + $0xc0] sm:$0xff] }
  0x16   :  { %254 = vmatpush.msra.mxu0 %v4469_v34  ;;  %311 = vmatpush.msra.mxu1 %v310_v62  ;;  %v8057_v62 = vand.u32 4294901760, %v4580_v39  ;;  %v4630_v38 = vsub.f32 %v45_v32, %v4598_v53  ;;  %v346_v32 = vand.u32 4294901760, %v345_v61  ;;  %v620_v61 = vsub.f32 %v4591_v43, %v8062_v13 }
  0x17   :  { %403 = vmatpush.msra.mxu2 %v4495_v46  ;;  %450 = vmatpush.msra.mxu3 %v4469_v34  ;;  %v4664_v40 = vsub.f32 %v43_v59, %v4632_v21  ;;  %v4674_v27 = vand.u32 4294901760, %v40_v41 }
  0x18   :  { %256 = vmatpush.msra.mxu0 %v4491_v44  ;;  %317 = vmatpush.msra.mxu1 %v316_v12  ;;  %v4616_v12 = vsub.f32 %v16_v7, %v4576_v37  ;;  %v351_v7 = vsub.f32 %v4563_v26, %v8055_v50  ;;  %v357_v49 = vsub.f32 %v4580_v39, %v8057_v62  ;;  %v8067_v45 = vand.u32 4294901760, %v4630_v38 }
  0x19   :  { %406 = vmatpush.msra.mxu2 %v4510_v52  ;;  %452 = vmatpush.msra.mxu3 %v4491_v44  ;;  %v621_v13 = vand.u32 4294901760, %v620_v61  ;;  %v8200_v61 = vand.u32 4294901760, %v4638_v57 }
  0x1a   :  { %258 = vmatpush.msra.mxu0 %v4507_v51  ;;  %323 = vmatpush.msra.mxu1 %v322_v30  ;;  %v42_v30 = vld [vmem:[%s8047_s1 + $0xd0] sm:$0xff]  ;;  %v8068_v50 = vand.u32 4294901760, %v4616_v12  ;;  %v352_v62 = vand.u32 4294901760, %v351_v7  ;;  %v358_v59 = vand.u32 4294901760, %v357_v49  ;;  %v37_v49 = vld [vmem:[%s8047_s1 + $0xa8] sm:$0xff] }
  0x1b   :  { %409 = vmatpush.msra.mxu2 %v4525_v58  ;;  %454 = vmatpush.msra.mxu3 %v4507_v51  ;;  %v4648_v47 = vand.u32 4294901760, %v42_v30 }
  0x1c   :  { %260 = vmatpush.msra.mxu0 %v4521_v56  ;;  %329 = vmatpush.msra.mxu1 %v328_v48  ;;  %v41_v48 = vld [vmem:[%s8047_s1 + $0xc8] sm:$0xff]  ;;  %v369_v7 = vsub.f32 %v4616_v12, %v8068_v50  ;;  %v4712_v50 = vsub.f32 %v40_v41, %v4674_v27  ;;  %v4728_v41 = vld [vmem:[%s8048_s0] sm:$0xff] }
  0x1d   :  { %412 = vmatpush.msra.mxu2 %v4543_v1  ;;  %456 = vmatpush.msra.mxu3 %v4521_v56  ;;  %v4666_v28 = vand.u32 4294901760, %v41_v48  ;;  %v4684_v24 = vsub.f32 %v42_v30, %v4648_v47 }
  0x1e   :  { %262 = vmatpush.msra.mxu0 %v4539_v63  ;;  %335 = vmatpush.msra.mxu1 %v334_v60  ;;  %v363_v60 = vsub.f32 %v4588_v42, %v8061_v2  ;;  %v626_v2 = vsub.f32 %v4603_v54, %v8065_v0 }
  0x1f   :  { %415 = vmatpush.msra.mxu2 %v4563_v26  ;;  %458 = vmatpush.msra.mxu3 %v4539_v63  ;;  %v4698_v14 = vsub.f32 %v41_v48, %v4666_v28  ;;  %v370_v48 = vand.u32 4294901760, %v369_v7  ;;  %v8202_v7 = vand.u32 4294901760, %v4664_v40 }
  0x20   :  { %264 = vmatpush.msra.mxu0 %v4550_v6  ;;  %341 = vmatpush.msra.mxu1 %v340_v36  ;;  %v39_v36 = vld [vmem:[%s8047_s1 + $0xb8] sm:$0xff]  ;;  %v364_v0 = vand.u32 4294901760, %v363_v60  ;;  %v8199_v60 = vand.u32 4294901760, %v4419_v15  ;;  %v8201_v15 = vand.u32 4294901760, %v4423_v16 }
  0x21   :  { %418 = vmatpush.msra.mxu2 %v4580_v39  ;;  %460 = vmatpush.msra.mxu3 %v4550_v6  ;;  %v644_v16 = vsub.f32 %v4664_v40, %v8202_v7 }
  0x22   :  { %266 = vmatpush.msra.mxu0 %v4576_v37  ;;  %347 = vmatpush.msra.mxu1 %v346_v32  ;;  %v632_v32 = vsub.f32 %v4630_v38, %v8067_v45  ;;  %v638_v45 = vsub.f32 %v4638_v57, %v8200_v61 }
  0x23   :  { %421 = vmatpush.msra.mxu2 %v4588_v42  ;;  %462 = vmatpush.msra.mxu3 %v4576_v37  ;;  %v4716_v37 = vand.u32 4294901760, %v38_v23 }
  0x24   :  { %473 = vmatpush.msrb.mxu0 %v278_v22  ;;  %353 = vmatpush.msra.mxu1 %v352_v62  ;;  %v4700_v22 = vand.u32 4294901760, %v39_v36  ;;  %v627_v62 = vand.u32 4294901760, %v626_v2  ;;  %v4720_v2 = vand.u32 4294901760, %v37_v49  ;;  %v639_v30 = vand.u32 4294901760, %v638_v45 }
  0x25   :  { %424 = vmatpush.msra.mxu2 %v4616_v12  ;;  %622 = vmatpush.msrb.mxu3 %v621_v13  ;;  %v8072_v13 = vand.u32 4294901760, %v4698_v14  ;;  %v211_v45 = vperm.slane %v4728_v41, 0 }
  0x26   :  { %477 = vmatpush.msrb.mxu0 %v8199_v60  ;;  %359 = vmatpush.msra.mxu1 %v358_v59  ;;  %v36_v60 = vld [vmem:[%s8047_s1 + $0xa0] sm:$0xff]  ;;  %v633_v59 = vand.u32 4294901760, %v632_v32  ;;  %v4736_v61 = vsub.f32 %v39_v36, %v4700_v22  ;;  %v8204_v32 = vand.u32 4294901760, %v4684_v24  ;;  %v4749_v36 = vsub.f32 %v38_v23, %v4716_v37 }
  0x27   :  { %577 = vmatpush.msrb.mxu2 %v4555_v8  ;;  %628 = vmatpush.msrb.mxu3 %v627_v62  ;;  %v8205_v62 = vand.u32 4294901760, %v4431_v19  ;;  %v656_v23 = vsub.f32 %v4698_v14, %v8072_v13  ;;  %v8206_v19 = vand.u32 4294901760, %v4444_v25  ;;  %v4781_v25 = vand.u32 4294901760, %v211_v45 }
  0x28   :  { %481 = vmatpush.msrb.mxu0 %v8201_v15  ;;  %365 = vmatpush.msra.mxu1 %v364_v0  ;;  %v8203_v15 = vand.u32 4294901760, %v4428_v18  ;;  %v35_v0 = vld [vmem:[%s8047_s1 + $0x98] sm:$0xff]  ;;  %v650_v7 = vsub.f32 %v4684_v24, %v8204_v32  ;;  %v4751_v18 = vand.u32 4294901760, %v36_v60  ;;  %v8073_v32 = vand.u32 4294901760, %v4736_v61 }
  0x29   :  { %579 = vmatpush.msrb.mxu2 %v4567_v31  ;;  %634 = vmatpush.msrb.mxu3 %v633_v59  ;;  %v4765_v8 = vand.u32 4294901760, %v35_v0  ;;  %v34_v59 = vld [vmem:[%s8047_s1 + $0x90] sm:$0xff] }
  0x2a   :  { %485 = vmatpush.msrb.mxu0 %v8203_v15  ;;  %371 = vmatpush.msra.mxu1 %v370_v48  ;;  %v4758_v48 = vsub.f32 %v37_v49, %v4720_v2  ;;  %v645_v15 = vand.u32 4294901760, %v644_v16  ;;  %v651_v16 = vand.u32 4294901760, %v650_v7  ;;  %v4779_v13 = vsub.f32 %v36_v60, %v4751_v18 }
  0x2b   :  { %581 = vmatpush.msrb.mxu2 %v4598_v53  ;;  %640 = vmatpush.msrb.mxu3 %v639_v30  ;;  %v657_v30 = vand.u32 4294901760, %v656_v23  ;;  %v668_v60 = vsub.f32 %v4736_v61, %v8073_v32  ;;  %v4794_v7 = vand.u32 4294901760, %v34_v59  ;;  %v4811_v32 = vsub.f32 %v211_v45, %v4781_v25 }
  0x2c   :  { %489 = vmatpush.msrb.mxu0 %v8205_v62  ;;  %540 = vmatpush.msrb.mxu1 %v4387_v3  ;;  %v8207_v3 = vand.u32 4294901760, %v4712_v50  ;;  %v8074_v62 = vand.u32 4294901760, %v4749_v36 }
  0x2d   :  { %583 = vmatpush.msrb.mxu2 %v4605_v55  ;;  %646 = vmatpush.msrb.mxu3 %v645_v15  ;;  %v32_v15 = vld [vmem:[%s8047_s1 + $0x80] sm:$0xff]  ;;  %v4824_v45 = vsub.f32 %v34_v59, %v4794_v7 }
  0x2e   :  { %493 = vmatpush.msrb.mxu0 %v8206_v19  ;;  %542 = vmatpush.msrb.mxu1 %v4389_v4  ;;  %v662_v49 = vsub.f32 %v4712_v50, %v8207_v3  ;;  %v8208_v4 = vand.u32 4294901760, %v4453_v29  ;;  %v679_v19 = vand.u32 4294901760, %v4758_v48  ;;  %v33_v3 = vld [vmem:[%s8047_s1 + $0x88] sm:$0xff]  ;;  %v4797_v29 = vsub.f32 %v35_v0, %v4765_v8 }
  0x2f   :  { %585 = vmatpush.msrb.mxu2 %v4632_v21  ;;  %652 = vmatpush.msrb.mxu3 %v651_v16  ;;  %v674_v23 = vsub.f32 %v4749_v36, %v8074_v62  ;;  %v685_v0 = vand.u32 4294901760, %v4779_v13  ;;  %v669_v16 = vand.u32 4294901760, %v668_v60  ;;  %v4826_v62 = vand.u32 4294901760, %v32_v15 }
  0x30   :  { %497 = vmatpush.msrb.mxu0 %v8208_v4  ;;  %544 = vmatpush.msrb.mxu1 %v4391_v5  ;;  %v8209_v5 = vand.u32 4294901760, %v4472_v35  ;;  %v663_v4 = vand.u32 4294901760, %v662_v49  ;;  %v4813_v35 = vand.u32 4294901760, %v33_v3  ;;  %v680_v49 = vsub.f32 %v4758_v48, %v679_v19 }
  0x31   :  { %587 = vmatpush.msrb.mxu2 %v4648_v47  ;;  %658 = vmatpush.msrb.mxu3 %v657_v30  ;;  %v686_v30 = vsub.f32 %v4779_v13, %v685_v0  ;;  %v269_v60 = vand.u32 4294901760, %v4811_v32 }
  0x32   :  { %501 = vmatpush.msrb.mxu0 %v8209_v5  ;;  %546 = vmatpush.msrb.mxu1 %v4402_v9  ;;  %v8210_v9 = vand.u32 4294901760, %v4495_v46  ;;  %v691_v5 = vand.u32 4294901760, %v4797_v29  ;;  %v8211_v46 = vand.u32 4294901760, %v4510_v52  ;;  %v4837_v59 = vsub.f32 %v33_v3, %v4813_v35 }
  0x33   :  { %589 = vmatpush.msrb.mxu2 %v4666_v28  ;;  %664 = vmatpush.msrb.mxu3 %v663_v4  ;;  %v681_v52 = vand.u32 4294901760, %v680_v49  ;;  %v697_v4 = vand.u32 4294901760, %v4824_v45  ;;  %v212_v3 = vperm.slane %v4728_v41, 1  ;;  %v270_v49 = vsub.f32 %v4811_v32, %v269_v60 }
  0x34   :  { %505 = vmatpush.msrb.mxu0 %v8210_v9  ;;  %548 = vmatpush.msrb.mxu1 %v4404_v10  ;;  %v675_v10 = vand.u32 4294901760, %v674_v23  ;;  %v8212_v9 = vand.u32 4294901760, %v4525_v58  ;;  %v4848_v23 = vsub.f32 %v32_v15, %v4826_v62  ;;  %v8213_v58 = vand.u32 4294901760, %v4543_v1 }
  0x35   :  { %591 = vmatpush.msrb.mxu2 %v4674_v27  ;;  %670 = vmatpush.msrb.mxu3 %v669_v16  ;;  %v703_v16 = vand.u32 4294901760, %v4837_v59 }
  0x36   :  { %509 = vmatpush.msrb.mxu0 %v8211_v46  ;;  %550 = vmatpush.msrb.mxu1 %v4406_v11  ;;  %v692_v11 = vsub.f32 %v4797_v29, %v691_v5  ;;  %v8214_v46 = vand.u32 4294901760, %v4563_v26  ;;  %v709_v15 = vand.u32 4294901760, %v4848_v23 }
  0x37   :  { %593 = vmatpush.msrb.mxu2 %v4700_v22  ;;  %676 = vmatpush.msrb.mxu3 %v675_v10  ;;  %v4865_v10 = vand.u32 4294901760, %v212_v3  ;;  %v704_v26 = vsub.f32 %v4837_v59, %v703_v16 }
  0x38   :  { %513 = vmatpush.msrb.mxu0 %v8212_v9  ;;  %552 = vmatpush.msrb.mxu1 %v4425_v17  ;;  %v687_v17 = vand.u32 4294901760, %v686_v30  ;;  %v693_v1 = vand.u32 4294901760, %v692_v11  ;;  %v8215_v30 = vand.u32 4294901760, %v4580_v39  ;;  %v8216_v9 = vand.u32 4294901760, %v4588_v42 }
  0x39   :  { %595 = vmatpush.msrb.mxu2 %v4716_v37  ;;  %682 = vmatpush.msrb.mxu3 %v681_v52  ;;  %v4882_v52 = vsub.f32 %v212_v3, %v4865_v10  ;;  %v8217_v11 = vand.u32 4294901760, %v4616_v12  ;;  %v8220_v12 = vld [vmem:[#allocation2_spill] sm:$0xff] }
  0x3a   :  { %517 = vmatpush.msrb.mxu0 %v8213_v58  ;;  %554 = vmatpush.msrb.mxu1 %v4433_v20  ;;  %v698_v20 = vsub.f32 %v4824_v45, %v697_v4 }
  0x3b   :  { %597 = vmatpush.msrb.mxu2 %v4720_v2  ;;  %688 = vmatpush.msrb.mxu3 %v687_v17  ;;  %v610_v3 = vand.u32 4294901760, %v4882_v52 }
  0x3c   :  { %521 = vmatpush.msrb.mxu0 %v8214_v46  ;;  %556 = vmatpush.msrb.mxu1 %v4466_v33  ;;  %v271_v33 = vand.u32 4294901760, %v270_v49  ;;  %v699_v39 = vand.u32 4294901760, %v698_v20 }
  0x3d   :  { %599 = vmatpush.msrb.mxu2 %v4751_v18  ;;  %694 = vmatpush.msrb.mxu3 %v693_v1 }
  0x3e   :  { %525 = vmatpush.msrb.mxu0 %v8215_v30  ;;  %558 = vmatpush.msrb.mxu1 %v4469_v34  ;;  %v710_v34 = vsub.f32 %v4848_v23, %v709_v15 }
  0x3f   :  { %601 = vmatpush.msrb.mxu2 %v4765_v8  ;;  %272 = vmatmul.f32.vlgmr.msra.gmra.mxu0 %v271_v33 }
  0x40   :  { %529 = vmatpush.msrb.mxu0 %v8216_v9  ;;  %560 = vmatpush.msrb.mxu1 %v4491_v44  ;;  %v705_v44 = vand.u32 4294901760, %v704_v26  ;;  %v711_v42 = vand.u32 4294901760, %v710_v34  ;;  %v213_v34 = vperm.slane %v4728_v41, 2 }
  0x41   :  { %603 = vmatpush.msrb.mxu2 %v4794_v7  ;;  %700 = vmatpush.msrb.mxu3 %v699_v39  ;;  %v52_v39 = vld [vmem:[%s8047_s1 + $0x120] sm:$0xff] }
  0x42   :  { %533 = vmatpush.msrb.mxu0 %v8217_v11  ;;  %562 = vmatpush.msrb.mxu1 %v4507_v51  ;;  %v8218_v51 = vand.u32 4294901760, %v4591_v43 }
  0x43   :  { %605 = vmatpush.msrb.mxu2 %v4813_v35  ;;  %706 = vmatpush.msrb.mxu3 %v705_v44 }
  0x44   :  { %720 = vmatpush.msra.mxu0 %v4591_v43  ;;  %564 = vmatpush.msrb.mxu1 %v4521_v56  ;;  %v611_v56 = vsub.f32 %v4882_v52, %v610_v3 }
  0x45   :  { %607 = vmatpush.msrb.mxu2 %v4826_v62  ;;  %712 = vmatpush.msrb.mxu3 %v711_v42 }
  0x46   :  { %723 = vmatpush.msra.mxu0 %v4603_v54  ;;  %566 = vmatpush.msrb.mxu1 %v4539_v63  ;;  %v8219_v63 = vand.u32 4294901760, %v4603_v54  ;;  %v612_v43 = vand.u32 4294901760, %v611_v56  ;;  %v8223_v54 = vand.u32 4294901760, %v4638_v57 }
  0x47   :  { %427 = vmatmul.f32.vlgmr.msra.gmra.mxu2 %v4811_v32  ;;  %466 = vmatmul.f32.vlgmr.msra.gmra.mxu3 %v269_v60  ;;  %v8221_v32 = vld [vmem:[#allocation3_spill] sm:$0xff] }
  0x48   :  { %726 = vmatpush.msra.mxu0 %v4630_v38  ;;  %814 = vmatpush.msra.mxu2 %v8218_v51  ;;  %v51_v51 = vld [vmem:[%s8047_s1 + $0x118] sm:$0xff] }
  0x49   :  { %568 = vmatpush.msrb.mxu1 %v4550_v6  ;;  %881 = vmatpush.msra.mxu3 %v8220_v12  ;;  %v8222_v6 = vand.u32 4294901760, %v4630_v38  ;;  %v8224_v38 = vand.u32 4294901760, %v4664_v40 }
  0x4a   :  { %729 = vmatpush.msra.mxu0 %v4638_v57  ;;  %818 = vmatpush.msra.mxu2 %v8219_v63  ;;  %v8225_v57 = vand.u32 4294901760, %v4684_v24  ;;  %v5114_v63 = vand.u32 4294901760, %v52_v39 }
  0x4b   :  { %570 = vmatpush.msrb.mxu1 %v8221_v32  ;;  %883 = vmatpush.msra.mxu3 %v4567_v31 }
  0x4c   :  { %732 = vmatpush.msra.mxu0 %v4664_v40  ;;  %373 = vmatmul.f32.vlgmr.msra.gmra.mxu1 %v4781_v25  ;;  %v8226_v40 = vand.u32 4294901760, %v4698_v14 }
  0x4d   :  { %822 = vmatpush.msra.mxu2 %v8222_v6  ;;  %773 = vmatpush.msra.mxu1 %v8220_v12 }
  0x4e   :  { %735 = vmatpush.msra.mxu0 %v4684_v24  ;;  %885 = vmatpush.msra.mxu3 %v4598_v53  ;;  %v8227_v24 = vand.u32 4294901760, %v4712_v50 }
  0x4f   :  { %826 = vmatpush.msra.mxu2 %v8223_v54  ;;  %775 = vmatpush.msra.mxu1 %v4567_v31  ;;  %v8228_v31 = vand.u32 4294901760, %v4736_v61  ;;  %v5125_v54 = vand.u32 4294901760, %v213_v34 }
  0x50   :  { %613 = vmatmul.f32.vlgmr.msrb.gmra.mxu2 %v612_v43  ;;  %738 = vmatpush.msra.mxu0 %v4698_v14  ;;  %v50_v43 = vld [vmem:[%s8047_s1 + $0x110] sm:$0xff] }
  0x51   :  { %777 = vmatpush.msra.mxu1 %v4598_v53  ;;  %830 = vmatpush.msra.mxu2 %v8224_v38  ;;  %v61_v53 = vld [vmem:[%s8047_s1 + $0x168] sm:$0xff] }
  0x52   :  { %887 = vmatpush.msra.mxu3 %v4605_v55  ;;  %535 = vmatmul.f32.vlgmr.msrb.gmra.mxu0 %v4781_v25  ;;  %v4977_v14 = vand.u32 4294901760, %v61_v53 }
  0x53   :  { %714 = vmatmul.f32.vlgmr.msrb.gmra.mxu3 %v4865_v10  ;;  %741 = vmatpush.msra.mxu0 %v4712_v50  ;;  %v8229_v50 = vand.u32 4294901760, %v4749_v36 }
  0x54   :  { %779 = vmatpush.msra.mxu1 %v4605_v55  ;;  %834 = vmatpush.msra.mxu2 %v8225_v57  ;;  %v60_v55 = vld [vmem:[%s8047_s1 + $0x160] sm:$0xff]  ;;  %v5131_v57 = vand.u32 4294901760, %v51_v51 }
  0x55   :  { %889 = vmatpush.msra.mxu3 %v4632_v21  ;;  %572 = vmatmul.f32.vlgmr.msrb.gmra.mxu1 %v4781_v25  ;;  %v5007_v25 = vsub.f32 %v61_v53, %v4977_v14  ;;  %v5147_v53 = vsub.f32 %v52_v39, %v5114_v63  ;;  %v78_v39 = vld [vmem:[%s8047_s1 + $0x1f0] sm:$0xff] }
  0x56   :  { %744 = vmatpush.msra.mxu0 %v4736_v61  ;;  %781 = vmatpush.msra.mxu1 %v4632_v21  ;;  %v63_v21 = vld [vmem:[%s8047_s1 + $0x178] sm:$0xff] }
  0x57   :  { %838 = vmatpush.msra.mxu2 %v8226_v40  ;;  %891 = vmatpush.msra.mxu3 %v4648_v47  ;;  %v59_v61 = vld [vmem:[%s8047_s1 + $0x158] sm:$0xff] }
  0x58   :  { %747 = vmatpush.msra.mxu0 %v4749_v36  ;;  %783 = vmatpush.msra.mxu1 %v4648_v47  ;;  %v62_v47 = vld [vmem:[%s8047_s1 + $0x170] sm:$0xff] }
  0x59   :  { %842 = vmatpush.msra.mxu2 %v8227_v24  ;;  %893 = vmatpush.msra.mxu3 %v4666_v28  ;;  %v58_v36 = vld [vmem:[%s8047_s1 + $0x150] sm:$0xff] }
  0x5a   :  { %750 = vmatpush.msra.mxu0 %v4758_v48  ;;  %785 = vmatpush.msra.mxu1 %v4666_v28  ;;  %v4957_v28 = vand.u32 4294901760, %v63_v21  ;;  %v5000_v48 = vand.u32 4294901760, %v59_v61 }
  0x5b   :  { %846 = vmatpush.msra.mxu2 %v8228_v31  ;;  %895 = vmatpush.msra.mxu3 %v4674_v27 }
  0x5c   :  { %753 = vmatpush.msra.mxu0 %v4779_v13  ;;  %787 = vmatpush.msra.mxu1 %v4674_v27  ;;  %v4967_v27 = vand.u32 4294901760, %v62_v47 }
  0x5d   :  { %850 = vmatpush.msra.mxu2 %v8229_v50  ;;  %897 = vmatpush.msra.mxu3 %v4700_v22 }
  0x5e   :  { %756 = vmatpush.msra.mxu0 %v4797_v29  ;;  %789 = vmatpush.msra.mxu1 %v4700_v22  ;;  %v4980_v22 = vsub.f32 %v63_v21, %v4957_v28  ;;  %v4993_v13 = vsub.f32 %v62_v47, %v4967_v27  ;;  %v5143_v47 = vand.u32 4294901760, %v50_v43 }
  0x5f   :  { %854 = vmatpush.msra.mxu2 %v679_v19  ;;  %899 = vmatpush.msra.mxu3 %v4716_v37  ;;  %v5011_v19 = vand.u32 4294901760, %v58_v36 }
  0x60   :  { %759 = vmatpush.msra.mxu0 %v4824_v45  ;;  %791 = vmatpush.msra.mxu1 %v4716_v37  ;;  %v4990_v37 = vand.u32 4294901760, %v60_v55  ;;  %v966_v29 = vand.u32 4294901760, %v4993_v13 }
  0x61   :  { %858 = vmatpush.msra.mxu2 %v685_v0  ;;  %901 = vmatpush.msra.mxu3 %v4720_v2 }
  0x62   :  { %762 = vmatpush.msra.mxu0 %v4837_v59  ;;  %793 = vmatpush.msra.mxu1 %v4720_v2  ;;  %v960_v2 = vand.u32 4294901760, %v4980_v22  ;;  %v5021_v0 = vsub.f32 %v60_v55, %v4990_v37  ;;  %v5043_v59 = vsub.f32 %v58_v36, %v5011_v19  ;;  %v49_v55 = vld [vmem:[%s8047_s1 + $0x108] sm:$0xff] }
  0x63   :  { %862 = vmatpush.msra.mxu2 %v691_v5  ;;  %903 = vmatpush.msra.mxu3 %v4751_v18  ;;  %v56_v5 = vld [vmem:[%s8047_s1 + $0x140] sm:$0xff] }
  0x64   :  { %765 = vmatpush.msra.mxu0 %v4848_v23  ;;  %795 = vmatpush.msra.mxu1 %v4751_v18  ;;  %v57_v18 = vld [vmem:[%s8047_s1 + $0x148] sm:$0xff]  ;;  %v961_v45 = vsub.f32 %v4980_v22, %v960_v2  ;;  %v967_v23 = vsub.f32 %v4993_v13, %v966_v29  ;;  %v5053_v58 = vand.u32 4294901760, %v56_v5  ;;  %v8086_v17 = vand.u32 4294901760, %v5021_v0 }
  0x65   :  { %866 = vmatpush.msra.mxu2 %v697_v4  ;;  %905 = vmatpush.msra.mxu3 %v4765_v8  ;;  %v5037_v60 = vand.u32 4294901760, %v57_v18  ;;  %v55_v4 = vld [vmem:[%s8047_s1 + $0x138] sm:$0xff] }
  0x66   :  { %768 = vmatmul.f32.vlgmr.msra.gmra.mxu0 %v4882_v52  ;;  %797 = vmatpush.msra.mxu1 %v4765_v8  ;;  %v5026_v8 = vsub.f32 %v59_v61, %v5000_v48  ;;  %v962_v46 = vand.u32 4294901760, %v961_v45  ;;  %v5067_v20 = vand.u32 4294901760, %v55_v4  ;;  %v968_v30 = vand.u32 4294901760, %v967_v23 }
  0x67   :  { %918 = vmatpush.msrb.mxu0 %v4957_v28  ;;  %870 = vmatpush.msra.mxu2 %v703_v16  ;;  %v54_v16 = vld [vmem:[%s8047_s1 + $0x130] sm:$0xff]  ;;  %v979_v33 = vsub.f32 %v5021_v0, %v8086_v17  ;;  %v5086_v9 = vsub.f32 %v56_v5, %v5053_v58  ;;  %v5155_v61 = vsub.f32 %v213_v34, %v5125_v54  ;;  %v5170_v23 = vand.u32 4294901760, %v49_v55 }
  0x68   :  { %907 = vmatpush.msra.mxu3 %v4794_v7  ;;  %799 = vmatpush.msra.mxu1 %v4794_v7  ;;  %v972_v7 = vand.u32 4294901760, %v5007_v25  ;;  %v8084_v49 = vand.u32 4294901760, %v5026_v8  ;;  %v5083_v26 = vand.u32 4294901760, %v54_v16  ;;  %v5103_v42 = vsub.f32 %v55_v4, %v5067_v20  ;;  %v79_v4 = vld [vmem:[%s8047_s1 + $0x1f8] sm:$0xff] }
  0x69   :  { %920 = vmatpush.msrb.mxu0 %v4967_v27  ;;  %874 = vmatpush.msra.mxu2 %v709_v15  ;;  %v8083_v15 = vand.u32 4294901760, %v5043_v59  ;;  %v980_v56 = vand.u32 4294901760, %v979_v33  ;;  %v8080_v12 = vand.u32 4294901760, %v5086_v9  ;;  %v5163_v45 = vsub.f32 %v51_v51, %v5131_v57 }
  0x6a   :  { %909 = vmatpush.msra.mxu3 %v4813_v35  ;;  %876 = vmatmul.f32.vlgmr.msra.gmra.mxu2 %v4865_v10  ;;  %v973_v1 = vsub.f32 %v5007_v25, %v972_v7  ;;  %v5118_v32 = vsub.f32 %v54_v16, %v5083_v26  ;;  %v8079_v40 = vand.u32 4294901760, %v5103_v42  ;;  %v48_v16 = vld [vmem:[%s8047_s1 + $0x100] sm:$0xff]  ;;  %v8089_v33 = vand.u32 4294901760, %v5155_v61 }
  0x6b   :  { %922 = vmatpush.msrb.mxu0 %v4977_v14  ;;  %1061 = vmatpush.msrb.mxu2 %v4980_v22  ;;  %v1003_v31 = vsub.f32 %v5086_v9, %v8080_v12  ;;  %v8078_v51 = vand.u32 4294901760, %v5163_v45  ;;  %v71_v22 = vld [vmem:[%s8047_s1 + $0x1b8] sm:$0xff] }
  0x6c   :  { %801 = vmatpush.msra.mxu1 %v4813_v35  ;;  %911 = vmatpush.msra.mxu3 %v4826_v62  ;;  %v5070_v35 = vsub.f32 %v57_v18, %v5037_v60  ;;  %v974_v11 = vand.u32 4294901760, %v973_v1  ;;  %v8077_v50 = vand.u32 4294901760, %v5118_v32  ;;  %v1009_v18 = vsub.f32 %v5103_v42, %v8079_v40 }
  0x6d   :  { %913 = vmatmul.f32.vlgmr.msra.gmra.mxu3 %v4865_v10  ;;  %924 = vmatpush.msrb.mxu0 %v4990_v37  ;;  %v53_v10 = vld [vmem:[%s8047_s1 + $0x128] sm:$0xff] }
  0x6e   :  { %1064 = vmatpush.msrb.mxu2 %v4993_v13  ;;  %1114 = vmatpush.msrb.mxu3 %v4957_v28  ;;  %v5099_v44 = vand.u32 4294901760, %v53_v10  ;;  %v8081_v52 = vand.u32 4294901760, %v5070_v35  ;;  %v1015_v1 = vsub.f32 %v5118_v32, %v8077_v50  ;;  %v1010_v34 = vand.u32 4294901760, %v1009_v18  ;;  %v75_v50 = vld [vmem:[%s8047_s1 + $0x1d8] sm:$0xff]  ;;  %v70_v13 = vld [vmem:[%s8047_s1 + $0x1b0] sm:$0xff] }
  0x6f   :  { %803 = vmatpush.msra.mxu1 %v4826_v62  ;;  %926 = vmatpush.msrb.mxu0 %v5000_v48  ;;  %v985_v62 = vsub.f32 %v5026_v8, %v8084_v49 }
  0x70   :  { %807 = vmatmul.f32.vlgmr.msra.gmra.mxu1 %v610_v3  ;;  %1067 = vmatpush.msrb.mxu2 %v5007_v25  ;;  %v991_v3 = vsub.f32 %v5043_v59, %v8083_v15  ;;  %v997_v38 = vsub.f32 %v5070_v35, %v8081_v52  ;;  %v5135_v24 = vsub.f32 %v53_v10, %v5099_v44  ;;  %v8075_v10 = vand.u32 4294901760, %v5147_v53 }
  0x71   :  { %963 = vmatpush.msrb.mxu1 %v962_v46  ;;  %1116 = vmatpush.msrb.mxu3 %v4967_v27  ;;  %v986_v6 = vand.u32 4294901760, %v985_v62  ;;  %v1004_v46 = vand.u32 4294901760, %v1003_v31  ;;  %v5186_v62 = vand.u32 4294901760, %v79_v4  ;;  %v5211_v31 = vand.u32 4294901760, %v78_v39 }
  0x72   :  { %928 = vmatpush.msrb.mxu0 %v5011_v19  ;;  %1070 = vmatpush.msrb.mxu2 %v5021_v0  ;;  %v992_v21 = vand.u32 4294901760, %v991_v3  ;;  %v998_v36 = vand.u32 4294901760, %v997_v38  ;;  %v8076_v5 = vand.u32 4294901760, %v5135_v24  ;;  %v5195_v3 = vand.u32 4294901760, %v48_v16 }
  0x73   :  { %969 = vmatpush.msrb.mxu1 %v968_v30  ;;  %1118 = vmatpush.msrb.mxu3 %v4977_v14  ;;  %v5181_v30 = vsub.f32 %v50_v43, %v5143_v47  ;;  %v1016_v43 = vand.u32 4294901760, %v1015_v1  ;;  %v1027_v38 = vsub.f32 %v5147_v53, %v8075_v10  ;;  %v5222_v18 = vsub.f32 %v79_v4, %v5186_v62 }
  0x74   :  { %930 = vmatpush.msrb.mxu0 %v5037_v60  ;;  %1073 = vmatpush.msrb.mxu2 %v5026_v8  ;;  %8230 = vst [vmem:[#allocation2_spill] sm:$0xff] %v5195_v3  ;;  %v1033_v1 = vsub.f32 %v5163_v45, %v8078_v51  ;;  %v5229_v10 = vsub.f32 %v48_v16, %v5195_v3  ;;  %v5251_v52 = vand.u32 4294901760, %v75_v50 }
  0x75   :  { %975 = vmatpush.msrb.mxu1 %v974_v11  ;;  %1120 = vmatpush.msrb.mxu3 %v4990_v37  ;;  %v1021_v11 = vsub.f32 %v5135_v24, %v8076_v5  ;;  %v5246_v51 = vsub.f32 %v78_v39, %v5211_v31  ;;  %v8087_v12 = vand.u32 4294901760, %v5222_v18 }
  0x76   :  { %932 = vmatpush.msrb.mxu0 %v5053_v58  ;;  %1076 = vmatpush.msrb.mxu2 %v5043_v59  ;;  %v8088_v39 = vand.u32 4294901760, %v5229_v10 }
  0x77   :  { %981 = vmatpush.msrb.mxu1 %v980_v56  ;;  %1122 = vmatpush.msrb.mxu3 %v5000_v48  ;;  %v5201_v56 = vsub.f32 %v49_v55, %v5170_v23  ;;  %v76_v55 = vld [vmem:[%s8047_s1 + $0x1e0] sm:$0xff] }
  0x78   :  { %934 = vmatpush.msrb.mxu0 %v5067_v20  ;;  %1079 = vmatpush.msrb.mxu2 %v5070_v35 }
  0x79   :  { %987 = vmatpush.msrb.mxu1 %v986_v6  ;;  %1124 = vmatpush.msrb.mxu3 %v5011_v19  ;;  %v77_v6 = vld [vmem:[%s8047_s1 + $0x1e8] sm:$0xff]  ;;  %v8085_v4 = vand.u32 4294901760, %v5201_v56 }
  0x7a   :  { %936 = vmatpush.msrb.mxu0 %v5083_v26  ;;  %1082 = vmatpush.msrb.mxu2 %v5086_v9  ;;  %v5231_v5 = vand.u32 4294901760, %v77_v6 }
  0x7b   :  { %993 = vmatpush.msrb.mxu1 %v992_v21  ;;  %1126 = vmatpush.msrb.mxu3 %v5037_v60  ;;  %v8082_v21 = vand.u32 4294901760, %v5181_v30 }
  0x7c   :  { %938 = vmatpush.msrb.mxu0 %v5099_v44  ;;  %1085 = vmatpush.msrb.mxu2 %v5103_v42 }
  0x7d   :  { %999 = vmatpush.msrb.mxu1 %v998_v36  ;;  %1128 = vmatpush.msrb.mxu3 %v5053_v58  ;;  %v952_v36 = vsub.f32 %v5155_v61, %v8089_v33  ;;  %v1039_v16 = vsub.f32 %v5181_v30, %v8082_v21  ;;  %v5259_v21 = vsub.f32 %v77_v6, %v5231_v5  ;;  %v5342_v33 = vand.u32 4294901760, %v70_v13 }
  0x7e   :  { %940 = vmatpush.msrb.mxu0 %v5114_v63  ;;  %1088 = vmatpush.msrb.mxu2 %v5118_v32 }
  0x7f   :  { %1005 = vmatpush.msrb.mxu1 %v1004_v46  ;;  %1130 = vmatpush.msrb.mxu3 %v5067_v20  ;;  %v1022_v46 = vand.u32 4294901760, %v1021_v11  ;;  %v1028_v11 = vand.u32 4294901760, %v1027_v38  ;;  %v953_v40 = vand.u32 4294901760, %v952_v36  ;;  %v1034_v38 = vand.u32 4294901760, %v1033_v1 }
  0x80   :  { %942 = vmatpush.msrb.mxu0 %v5131_v57  ;;  %1091 = vmatpush.msrb.mxu2 %v5135_v24  ;;  %v1045_v36 = vsub.f32 %v5201_v56, %v8085_v4  ;;  %v1040_v6 = vand.u32 4294901760, %v1039_v16  ;;  %v8091_v1 = vand.u32 4294901760, %v5246_v51  ;;  %v5281_v4 = vsub.f32 %v75_v50, %v5251_v52 }
  0x81   :  { %1011 = vmatpush.msrb.mxu1 %v1010_v34  ;;  %1132 = vmatpush.msrb.mxu3 %v5083_v26  ;;  %v5239_v34 = vand.u32 4294901760, %v76_v55  ;;  %v8090_v16 = vand.u32 4294901760, %v5259_v21 }
  0x82   :  { %944 = vmatpush.msrb.mxu0 %v5143_v47  ;;  %1094 = vmatpush.msrb.mxu2 %v5147_v53  ;;  %v1046_v50 = vand.u32 4294901760, %v1045_v36 }
  0x83   :  { %1017 = vmatpush.msrb.mxu1 %v1016_v43  ;;  %1134 = vmatpush.msrb.mxu3 %v5099_v44  ;;  %v74_v43 = vld [vmem:[%s8047_s1 + $0x1d0] sm:$0xff]  ;;  %v5267_v15 = vsub.f32 %v76_v55, %v5239_v34  ;;  %v1302_v55 = vsub.f32 %v5222_v18, %v8087_v12 }
  0x84   :  { %946 = vmatpush.msrb.mxu0 %v5170_v23  ;;  %1097 = vmatpush.msrb.mxu2 %v5163_v45  ;;  %v5274_v49 = vand.u32 4294901760, %v74_v43 }
  0x85   :  { %1023 = vmatpush.msrb.mxu1 %v1022_v46  ;;  %1136 = vmatpush.msrb.mxu3 %v5114_v63  ;;  %v73_v46 = vld [vmem:[%s8047_s1 + $0x1c8] sm:$0xff]  ;;  %v8092_v12 = vand.u32 4294901760, %v5267_v15  ;;  %v1303_v36 = vand.u32 4294901760, %v1302_v55  ;;  %v5325_v55 = vand.u32 4294901760, %v71_v22 }
  0x86   :  { %948 = vmatpush.msrb.mxu0 %v5195_v3  ;;  %1100 = vmatpush.msrb.mxu2 %v5181_v30  ;;  %v5292_v17 = vand.u32 4294901760, %v73_v46 }
  0x87   :  { %1029 = vmatpush.msrb.mxu1 %v1028_v11  ;;  %1138 = vmatpush.msrb.mxu3 %v5131_v57  ;;  %v72_v11 = vld [vmem:[%s8047_s1 + $0x1c0] sm:$0xff]  ;;  %v1320_v25 = vsub.f32 %v5267_v15, %v8092_v12  ;;  %v8233_v12 = vand.u32 4294901760, %v5281_v4 }
  0x88   :  { %954 = vmatmul.f32.vlgmr.msrb.gmra.mxu0 %v953_v40  ;;  %1103 = vmatpush.msrb.mxu2 %v5201_v56  ;;  %v1051_v40 = vsub.f32 %v5229_v10, %v8088_v39  ;;  %v5308_v39 = vand.u32 4294901760, %v72_v11 }
  0x89   :  { %1155 = vmatpush.msra.mxu0 %v960_v2  ;;  %1035 = vmatpush.msrb.mxu1 %v1034_v38  ;;  %v1308_v2 = vsub.f32 %v5246_v51, %v8091_v1  ;;  %v5306_v38 = vsub.f32 %v74_v43, %v5274_v49  ;;  %v1314_v43 = vsub.f32 %v5259_v21, %v8090_v16  ;;  %v8232_v16 = vand.u32 4294901760, %v5021_v0  ;;  %v68_v0 = vld [vmem:[%s8047_s1 + $0x1a0] sm:$0xff] }
  0x8a   :  { %1140 = vmatpush.msrb.mxu3 %v5143_v47  ;;  %1106 = vmatpush.msrb.mxu2 %v5229_v10 }
  0x8b   :  { %1159 = vmatpush.msra.mxu0 %v966_v29  ;;  %1041 = vmatpush.msrb.mxu1 %v1040_v6  ;;  %v1052_v29 = vand.u32 4294901760, %v1051_v40  ;;  %v5323_v6 = vsub.f32 %v73_v46, %v5292_v17  ;;  %v8231_v40 = vand.u32 4294901760, %v5155_v61  ;;  %v1309_v46 = vand.u32 4294901760, %v1308_v2 }
  0x8c   :  { %1142 = vmatpush.msrb.mxu3 %v5170_v23  ;;  %1109 = vmatmul.f32.vlgmr.msrb.gmra.mxu2 %v5155_v61  ;;  %v8094_v1 = vand.u32 4294901760, %v5306_v38  ;;  %v8234_v61 = vand.u32 4294901760, %v5026_v8  ;;  %v5355_v2 = vsub.f32 %v71_v22, %v5325_v55 }
  0x8d   :  { %1163 = vmatpush.msra.mxu0 %v972_v7  ;;  %1259 = vmatpush.msra.mxu2 %v5186_v62  ;;  %v69_v7 = vld [vmem:[%s8047_s1 + $0x1a8] sm:$0xff] }
  0x8e   :  { %1047 = vmatpush.msrb.mxu1 %v1046_v50  ;;  %1144 = vmatpush.msrb.mxu3 %v5195_v3  ;;  %v5340_v50 = vsub.f32 %v72_v11, %v5308_v39  ;;  %v1326_v3 = vsub.f32 %v5281_v4, %v8233_v12  ;;  %v8095_v11 = vand.u32 4294901760, %v5323_v6  ;;  %v1321_v12 = vand.u32 4294901760, %v1320_v25 }
  0x8f   :  { %1148 = vmatmul.f32.vlgmr.msrb.gmra.mxu3 %v8231_v40  ;;  %1167 = vmatpush.msra.mxu0 %v8232_v16  ;;  %v1315_v16 = vand.u32 4294901760, %v1314_v43  ;;  %v5357_v40 = vand.u32 4294901760, %v69_v7  ;;  %v1332_v8 = vsub.f32 %v5306_v38, %v8094_v1  ;;  %v5372_v43 = vand.u32 4294901760, %v68_v0 }
  0x90   :  { %1261 = vmatpush.msra.mxu2 %v5211_v31  ;;  %1304 = vmatpush.msra.mxu3 %v1303_v36  ;;  %v67_v36 = vld [vmem:[%s8047_s1 + $0x198] sm:$0xff]  ;;  %v8097_v22 = vand.u32 4294901760, %v5340_v50  ;;  %v8235_v25 = vand.u32 4294901760, %v5043_v59  ;;  %v66_v59 = vld [vmem:[%s8047_s1 + $0x190] sm:$0xff] }
  0x91   :  { %1053 = vmatpush.msrb.mxu1 %v1052_v29  ;;  %1171 = vmatpush.msra.mxu0 %v8234_v61  ;;  %v5370_v29 = vsub.f32 %v70_v13, %v5342_v33  ;;  %v1327_v61 = vand.u32 4294901760, %v1326_v3  ;;  %v5383_v13 = vsub.f32 %v69_v7, %v5357_v40  ;;  %v5385_v1 = vand.u32 4294901760, %v67_v36 }
  0x92   :  { %1055 = vmatmul.f32.vlgmr.msrb.gmra.mxu1 %v5125_v54  ;;  %1263 = vmatpush.msra.mxu2 %v5231_v5  ;;  %v8236_v3 = vand.u32 4294901760, %v5070_v35  ;;  %v1344_v7 = vsub.f32 %v5340_v50, %v8097_v22  ;;  %v65_v35 = vld [vmem:[%s8047_s1 + $0x188] sm:$0xff]  ;;  %v8239_v22 = vand.u32 4294901760, %v5118_v32  ;;  %v8240_v32 = vand.u32 4294901760, %v5135_v24 }
  0x93   :  { %1222 = vmatpush.msra.mxu1 %v4957_v28  ;;  %1310 = vmatpush.msra.mxu3 %v1309_v46  ;;  %v1338_v28 = vsub.f32 %v5323_v6, %v8095_v11  ;;  %v8096_v46 = vand.u32 4294901760, %v5355_v2  ;;  %v5400_v11 = vsub.f32 %v68_v0, %v5372_v43 }
  0x94   :  { %1175 = vmatpush.msra.mxu0 %v8235_v25  ;;  %1265 = vmatpush.msra.mxu2 %v5239_v34  ;;  %v1355_v25 = vand.u32 4294901760, %v5370_v29 }
  0x95   :  { %1224 = vmatpush.msra.mxu1 %v4967_v27  ;;  %1316 = vmatpush.msra.mxu3 %v1315_v16  ;;  %v214_v27 = vperm.slane %v4728_v41, 3  ;;  %v1333_v16 = vand.u32 4294901760, %v1332_v8  ;;  %v5408_v41 = vand.u32 4294901760, %v66_v59  ;;  %v1350_v0 = vsub.f32 %v5355_v2, %v8096_v46 }
  0x96   :  { %1179 = vmatpush.msra.mxu0 %v8236_v3  ;;  %1267 = vmatpush.msra.mxu2 %v5251_v52  ;;  %v8237_v3 = vand.u32 4294901760, %v5086_v9  ;;  %v5416_v8 = vsub.f32 %v67_v36, %v5385_v1  ;;  %v64_v9 = vld [vmem:[%s8047_s1 + $0x180] sm:$0xff]  ;;  %v1356_v36 = vsub.f32 %v5370_v29, %v1355_v25  ;;  %v1367_v46 = vand.u32 4294901760, %v5400_v11 }
  0x97   :  { %1226 = vmatpush.msra.mxu1 %v4977_v14  ;;  %1322 = vmatpush.msra.mxu3 %v1321_v12  ;;  %v1339_v14 = vand.u32 4294901760, %v1338_v28  ;;  %v1361_v12 = vand.u32 4294901760, %v5383_v13  ;;  %v1345_v28 = vand.u32 4294901760, %v1344_v7 }
  0x98   :  { %1183 = vmatpush.msra.mxu0 %v8237_v3  ;;  %1269 = vmatpush.msra.mxu2 %v5274_v49  ;;  %v8238_v3 = vand.u32 4294901760, %v5103_v42  ;;  %v5437_v42 = vsub.f32 %v66_v59, %v5408_v41  ;;  %v1373_v7 = vand.u32 4294901760, %v5416_v8 }
  0x99   :  { %1228 = vmatpush.msra.mxu1 %v4990_v37  ;;  %1328 = vmatpush.msra.mxu3 %v1327_v61  ;;  %v5424_v37 = vand.u32 4294901760, %v65_v35  ;;  %v5426_v61 = vand.u32 4294901760, %v214_v27 }
  0x9a   :  { %1187 = vmatpush.msra.mxu0 %v8238_v3  ;;  %1271 = vmatpush.msra.mxu2 %v5292_v17  ;;  %v5439_v3 = vand.u32 4294901760, %v64_v9  ;;  %v1379_v24 = vand.u32 4294901760, %v5437_v42 }
  0x9b   :  { %1230 = vmatpush.msra.mxu1 %v5000_v48  ;;  %1334 = vmatpush.msra.mxu3 %v1333_v16  ;;  %v1351_v48 = vand.u32 4294901760, %v1350_v0  ;;  %v1362_v16 = vsub.f32 %v5383_v13, %v1361_v12  ;;  %v5453_v59 = vsub.f32 %v214_v27, %v5426_v61  ;;  %v8241_v0 = vand.u32 4294901760, %v5147_v53 }
  0x9c   :  { %1191 = vmatpush.msra.mxu0 %v8239_v22  ;;  %1273 = vmatpush.msra.mxu2 %v5308_v39  ;;  %v5450_v22 = vsub.f32 %v65_v35, %v5424_v37  ;;  %v5464_v35 = vsub.f32 %v64_v9, %v5439_v3  ;;  %v1374_v27 = vsub.f32 %v5416_v8, %v1373_v7 }
  0x9d   :  { %1232 = vmatpush.msra.mxu1 %v5011_v19  ;;  %1340 = vmatpush.msra.mxu3 %v1339_v14  ;;  %v1357_v19 = vand.u32 4294901760, %v1356_v36  ;;  %v1368_v14 = vsub.f32 %v5400_v11, %v1367_v46  ;;  %v1292_v36 = vand.u32 4294901760, %v5453_v59 }
  0x9e   :  { %1195 = vmatpush.msra.mxu0 %v8240_v32  ;;  %1275 = vmatpush.msra.mxu2 %v5325_v55  ;;  %v1385_v53 = vand.u32 4294901760, %v5450_v22  ;;  %v8244_v32 = vand.u32 4294901760, %v5201_v56 }
  0x9f   :  { %1234 = vmatpush.msra.mxu1 %v5037_v60  ;;  %1346 = vmatpush.msra.mxu3 %v1345_v28  ;;  %v1363_v60 = vand.u32 4294901760, %v1362_v16  ;;  %v8242_v28 = vand.u32 4294901760, %v5163_v45  ;;  %v1369_v9 = vand.u32 4294901760, %v1368_v14  ;;  %v1380_v45 = vsub.f32 %v5437_v42, %v1379_v24 }
  0xa0   :  { %1199 = vmatpush.msra.mxu0 %v8241_v0  ;;  %1277 = vmatpush.msra.mxu2 %v5342_v33  ;;  %v1375_v16 = vand.u32 4294901760, %v1374_v27 }
  0xa1   :  { %1236 = vmatpush.msra.mxu1 %v5053_v58  ;;  %1352 = vmatpush.msra.mxu3 %v1351_v48  ;;  %v8243_v58 = vand.u32 4294901760, %v5181_v30  ;;  %v1391_v48 = vand.u32 4294901760, %v5464_v35  ;;  %v1293_v30 = vsub.f32 %v5453_v59, %v1292_v36  ;;  %v1381_v56 = vand.u32 4294901760, %v1380_v45 }
  0xa2   :  { %1203 = vmatpush.msra.mxu0 %v8242_v28  ;;  %1279 = vmatpush.msra.mxu2 %v5357_v40 }
  0xa3   :  { %1238 = vmatpush.msra.mxu1 %v5067_v20  ;;  %1358 = vmatpush.msra.mxu3 %v1357_v19  ;;  %v1386_v20 = vsub.f32 %v5450_v22, %v1385_v53  ;;  %v1392_v19 = vsub.f32 %v5464_v35, %v1391_v48 }
  0xa4   :  { %1207 = vmatpush.msra.mxu0 %v8243_v58  ;;  %1281 = vmatpush.msra.mxu2 %v5372_v43 }
  0xa5   :  { %1240 = vmatpush.msra.mxu1 %v5083_v26  ;;  %1364 = vmatpush.msra.mxu3 %v1363_v60  ;;  %v8245_v26 = vand.u32 4294901760, %v5229_v10  ;;  %v1387_v14 = vand.u32 4294901760, %v1386_v20  ;;  %v1393_v10 = vand.u32 4294901760, %v1392_v19  ;;  %v83_v19 = vld [vmem:[%s8047_s1 + $0x218] sm:$0xff] }
  0xa6   :  { %1211 = vmatpush.msra.mxu0 %v8244_v32  ;;  %1283 = vmatpush.msra.mxu2 %v5385_v1  ;;  %v5708_v32 = vld [vmem:[%s8048_s0] sm:$0xff] }
  0xa7   :  { %1242 = vmatpush.msra.mxu1 %v5099_v44  ;;  %1370 = vmatpush.msra.mxu3 %v1369_v9  ;;  %v1294_v44 = vand.u32 4294901760, %v1293_v30  ;;  %v215_v20 = vperm.slane %v5708_v32, 4 }
  0xa8   :  { %1215 = vmatpush.msra.mxu0 %v8245_v26  ;;  %1285 = vmatpush.msra.mxu2 %v5408_v41 }
  0xa9   :  { %1244 = vmatpush.msra.mxu1 %v5114_v63  ;;  %1376 = vmatpush.msra.mxu3 %v1375_v16  ;;  %v8246_v63 = vand.u32 4294901760, %v5222_v18  ;;  %v84_v16 = vld [vmem:[%s8047_s1 + $0x220] sm:$0xff] }
  0xaa   :  { %1217 = vmatmul.f32.vlgmr.msra.gmra.mxu0 %v5125_v54  ;;  %1287 = vmatpush.msra.mxu2 %v5424_v37 }
  0xab   :  { %1402 = vmatpush.msrb.mxu0 %v5222_v18  ;;  %1246 = vmatpush.msra.mxu1 %v5131_v57  ;;  %v8247_v57 = vand.u32 4294901760, %v5246_v51  ;;  %v8249_v18 = vand.u32 4294901760, %v5259_v21 }
  0xac   :  { %1382 = vmatpush.msra.mxu3 %v1381_v56  ;;  %1289 = vmatpush.msra.mxu2 %v5439_v3 }
  0xad   :  { %1405 = vmatpush.msrb.mxu0 %v5246_v51  ;;  %1248 = vmatpush.msra.mxu1 %v5143_v47  ;;  %v8248_v47 = vld [vmem:[#allocation2_spill] sm:$0xff]  ;;  %v8255_v51 = vand.u32 4294901760, %v5355_v2 }
  0xae   :  { %1388 = vmatpush.msra.mxu3 %v1387_v14  ;;  %1295 = vmatmul.f32.vlgmr.msra.gmra.mxu2 %v1294_v44  ;;  %v5727_v44 = vand.u32 4294901760, %v84_v16 }
  0xaf   :  { %1408 = vmatpush.msrb.mxu0 %v5259_v21  ;;  %1496 = vmatpush.msrb.mxu2 %v8246_v63 }
  0xb0   :  { %1250 = vmatpush.msra.mxu1 %v5170_v23  ;;  %1394 = vmatpush.msra.mxu3 %v1393_v10  ;;  %v8250_v23 = vand.u32 4294901760, %v5267_v15 }
  0xb1   :  { %1396 = vmatmul.f32.vlgmr.msra.gmra.mxu3 %v5426_v61  ;;  %1411 = vmatpush.msrb.mxu0 %v5267_v15  ;;  %v8253_v15 = vand.u32 4294901760, %v5323_v6 }
  0xb2   :  { %1500 = vmatpush.msrb.mxu2 %v8247_v57  ;;  %1563 = vmatpush.msrb.mxu3 %v5186_v62 }
  0xb3   :  { %1252 = vmatpush.msra.mxu1 %v8248_v47  ;;  %1414 = vmatpush.msrb.mxu0 %v5281_v4  ;;  %v82_v47 = vld [vmem:[%s8047_s1 + $0x210] sm:$0xff] }
  0xb4   :  { %1254 = vmatmul.f32.vlgmr.msra.gmra.mxu1 %v5125_v54  ;;  %1504 = vmatpush.msrb.mxu2 %v8249_v18  ;;  %v8251_v54 = vand.u32 4294901760, %v5281_v4  ;;  %v92_v4 = vld [vmem:[%s8047_s1 + $0x260] sm:$0xff]  ;;  %v5738_v18 = vand.u32 4294901760, %v215_v20 }
  0xb5   :  { %1455 = vmatpush.msrb.mxu1 %v5186_v62  ;;  %1565 = vmatpush.msrb.mxu3 %v5211_v31  ;;  %v8252_v62 = vand.u32 4294901760, %v5306_v38 }
  0xb6   :  { %1417 = vmatpush.msrb.mxu0 %v5306_v38  ;;  %1508 = vmatpush.msrb.mxu2 %v8250_v23  ;;  %v91_v38 = vld [vmem:[%s8047_s1 + $0x258] sm:$0xff] }
  0xb7   :  { %1457 = vmatpush.msrb.mxu1 %v5211_v31  ;;  %1567 = vmatpush.msrb.mxu3 %v5231_v5 }
  0xb8   :  { %1420 = vmatpush.msrb.mxu0 %v5323_v6  ;;  %1512 = vmatpush.msrb.mxu2 %v8251_v54  ;;  %v5744_v54 = vand.u32 4294901760, %v83_v19 }
  0xb9   :  { %1459 = vmatpush.msrb.mxu1 %v5231_v5  ;;  %1569 = vmatpush.msrb.mxu3 %v5239_v34  ;;  %v8254_v5 = vand.u32 4294901760, %v5340_v50 }
  0xba   :  { %1423 = vmatpush.msrb.mxu0 %v5340_v50  ;;  %1516 = vmatpush.msrb.mxu2 %v8252_v62  ;;  %v5609_v50 = vand.u32 4294901760, %v91_v38 }
  0xbb   :  { %1461 = vmatpush.msrb.mxu1 %v5239_v34  ;;  %1571 = vmatpush.msrb.mxu3 %v5251_v52 }
  0xbc   :  { %1426 = vmatpush.msrb.mxu0 %v5355_v2  ;;  %1520 = vmatpush.msrb.mxu2 %v8253_v15 }
  0xbd   :  { %1463 = vmatpush.msrb.mxu1 %v5251_v52  ;;  %1573 = vmatpush.msrb.mxu3 %v5274_v49  ;;  %v95_v52 = vld [vmem:[%s8047_s1 + $0x278] sm:$0xff] }
  0xbe   :  { %1429 = vmatpush.msrb.mxu0 %v5370_v29  ;;  %1524 = vmatpush.msrb.mxu2 %v8254_v5  ;;  %v5565_v21 = vand.u32 4294901760, %v95_v52  ;;  %v89_v29 = vld [vmem:[%s8047_s1 + $0x248] sm:$0xff] }
  0xbf   :  { %1465 = vmatpush.msrb.mxu1 %v5274_v49  ;;  %1575 = vmatpush.msrb.mxu3 %v5292_v17  ;;  %v94_v49 = vld [vmem:[%s8047_s1 + $0x270] sm:$0xff] }
  0xc0   :  { %1432 = vmatpush.msrb.mxu0 %v5383_v13  ;;  %1528 = vmatpush.msrb.mxu2 %v8255_v51  ;;  %v5575_v31 = vand.u32 4294901760, %v94_v49  ;;  %v5635_v13 = vsub.f32 %v91_v38, %v5609_v50  ;;  %v5768_v38 = vsub.f32 %v215_v20, %v5738_v18 }
  0xc1   :  { %1467 = vmatpush.msrb.mxu1 %v5292_v17  ;;  %1577 = vmatpush.msrb.mxu3 %v5308_v39  ;;  %v93_v17 = vld [vmem:[%s8047_s1 + $0x268] sm:$0xff] }
  0xc2   :  { %1435 = vmatpush.msrb.mxu0 %v5400_v11  ;;  %1532 = vmatpush.msrb.mxu2 %v1355_v25  ;;  %v5585_v34 = vand.u32 4294901760, %v93_v17  ;;  %v5601_v6 = vsub.f32 %v94_v49, %v5575_v31  ;;  %v88_v25 = vld [vmem:[%s8047_s1 + $0x240] sm:$0xff] }
  0xc3   :  { %1469 = vmatpush.msrb.mxu1 %v5308_v39  ;;  %1579 = vmatpush.msrb.mxu3 %v5325_v55  ;;  %v5588_v39 = vsub.f32 %v95_v52, %v5565_v21  ;;  %v5756_v52 = vand.u32 4294901760, %v82_v47 }
  0xc4   :  { %1438 = vmatpush.msrb.mxu0 %v5416_v8  ;;  %1536 = vmatpush.msrb.mxu2 %v1361_v12  ;;  %v5615_v2 = vsub.f32 %v93_v17, %v5585_v34  ;;  %v5645_v12 = vand.u32 4294901760, %v89_v29  ;;  %v5760_v17 = vsub.f32 %v84_v16, %v5727_v44  ;;  %v110_v16 = vld [vmem:[%s8047_s1 + $0x2f0] sm:$0xff] }
  0xc5   :  { %1471 = vmatpush.msrb.mxu1 %v5325_v55  ;;  %1581 = vmatpush.msrb.mxu3 %v5342_v33  ;;  %v90_v55 = vld [vmem:[%s8047_s1 + $0x250] sm:$0xff]  ;;  %v1642_v11 = vand.u32 4294901760, %v5588_v39 }
  0xc6   :  { %1441 = vmatpush.msrb.mxu0 %v5437_v42  ;;  %1540 = vmatpush.msrb.mxu2 %v1367_v46  ;;  %v1654_v8 = vand.u32 4294901760, %v5615_v2 }
  0xc7   :  { %1473 = vmatpush.msrb.mxu1 %v5342_v33  ;;  %1583 = vmatpush.msrb.mxu3 %v5357_v40  ;;  %v5598_v33 = vand.u32 4294901760, %v92_v4 }
  0xc8   :  { %1444 = vmatpush.msrb.mxu0 %v5450_v22  ;;  %1544 = vmatpush.msrb.mxu2 %v1373_v7  ;;  %v87_v7 = vld [vmem:[%s8047_s1 + $0x238] sm:$0xff]  ;;  %v5661_v22 = vand.u32 4294901760, %v88_v25  ;;  %v1655_v27 = vsub.f32 %v5615_v2, %v1654_v8 }
  0xc9   :  { %1475 = vmatpush.msrb.mxu1 %v5357_v40  ;;  %1585 = vmatpush.msrb.mxu3 %v5372_v43  ;;  %v5620_v40 = vand.u32 4294901760, %v90_v55  ;;  %v5629_v46 = vsub.f32 %v92_v4, %v5598_v33  ;;  %v5675_v28 = vand.u32 4294901760, %v87_v7  ;;  %v81_v4 = vld [vmem:[%s8047_s1 + $0x208] sm:$0xff] }
  0xca   :  { %1447 = vmatpush.msrb.mxu0 %v5464_v35  ;;  %1548 = vmatpush.msrb.mxu2 %v1379_v24  ;;  %v8107_v24 = vand.u32 4294901760, %v5635_v13  ;;  %v86_v35 = vld [vmem:[%s8047_s1 + $0x230] sm:$0xff] }
  0xcb   :  { %1477 = vmatpush.msrb.mxu1 %v5372_v43  ;;  %1587 = vmatpush.msrb.mxu3 %v5385_v1  ;;  %v1648_v43 = vand.u32 4294901760, %v5601_v6  ;;  %v5651_v42 = vsub.f32 %v90_v55, %v5620_v40  ;;  %v8109_v0 = vand.u32 4294901760, %v5629_v46  ;;  %v5691_v45 = vand.u32 4294901760, %v86_v35 }
  0xcc   :  { %1450 = vmatmul.f32.vlgmr.msrb.gmra.mxu0 %v5453_v59  ;;  %1552 = vmatpush.msrb.mxu2 %v1385_v53  ;;  %v1656_v59 = vand.u32 4294901760, %v1655_v27  ;;  %v5716_v26 = vsub.f32 %v87_v7, %v5675_v28  ;;  %v111_v7 = vld [vmem:[%s8047_s1 + $0x2f8] sm:$0xff] }
  0xcd   :  { %1600 = vmatpush.msra.mxu0 %v5565_v21  ;;  %1479 = vmatpush.msrb.mxu1 %v5385_v1  ;;  %v1643_v1 = vsub.f32 %v5588_v39, %v1642_v11  ;;  %v8106_v53 = vand.u32 4294901760, %v5651_v42  ;;  %v1661_v58 = vsub.f32 %v5629_v46, %v8109_v0  ;;  %v5731_v63 = vsub.f32 %v86_v35, %v5691_v45  ;;  %v80_v35 = vld [vmem:[%s8047_s1 + $0x200] sm:$0xff] }
  0xce   :  { %1589 = vmatpush.msrb.mxu3 %v5408_v41  ;;  %1556 = vmatpush.msrb.mxu2 %v1391_v48  ;;  %v5694_v48 = vsub.f32 %v88_v25, %v5661_v22  ;;  %v8102_v62 = vand.u32 4294901760, %v5716_v26 }
  0xcf   :  { %1602 = vmatpush.msra.mxu0 %v5575_v31  ;;  %1481 = vmatpush.msrb.mxu1 %v5408_v41  ;;  %v1649_v41 = vsub.f32 %v5601_v6, %v1648_v43  ;;  %v1644_v60 = vand.u32 4294901760, %v1643_v1  ;;  %v1673_v56 = vsub.f32 %v5651_v42, %v8106_v53  ;;  %v1662_v14 = vand.u32 4294901760, %v1661_v58 }
  0xd0   :  { %1591 = vmatpush.msrb.mxu3 %v5424_v37  ;;  %1558 = vmatmul.f32.vlgmr.msrb.gmra.mxu2 %v5426_v61  ;;  %v8103_v10 = vand.u32 4294901760, %v5694_v48  ;;  %v8100_v49 = vand.u32 4294901760, %v5731_v63  ;;  %v5776_v1 = vsub.f32 %v83_v19, %v5744_v54  ;;  %v8112_v58 = vand.u32 4294901760, %v5768_v38 }
  0xd1   :  { %1604 = vmatpush.msra.mxu0 %v5585_v34  ;;  %1743 = vmatpush.msra.mxu2 %v5588_v39  ;;  %v1650_v9 = vand.u32 4294901760, %v1649_v41  ;;  %v1674_v5 = vand.u32 4294901760, %v1673_v56  ;;  %v5783_v41 = vand.u32 4294901760, %v81_v4  ;;  %v5808_v56 = vand.u32 4294901760, %v80_v35  ;;  %v103_v39 = vld [vmem:[%s8047_s1 + $0x2b8] sm:$0xff] }
  0xd2   :  { %1483 = vmatpush.msrb.mxu1 %v5424_v37  ;;  %1593 = vmatpush.msrb.mxu3 %v5439_v3  ;;  %v5678_v37 = vsub.f32 %v89_v29, %v5645_v12  ;;  %v1685_v51 = vsub.f32 %v5694_v48, %v8103_v10  ;;  %v1691_v29 = vsub.f32 %v5716_v26, %v8102_v62  ;;  %v8101_v19 = vand.u32 4294901760, %v5776_v1 }
  0xd3   :  { %1595 = vmatmul.f32.vlgmr.msrb.gmra.mxu3 %v5426_v61  ;;  %1606 = vmatpush.msra.mxu0 %v5598_v33  ;;  %v85_v61 = vld [vmem:[%s8047_s1 + $0x228] sm:$0xff]  ;;  %v1697_v27 = vsub.f32 %v5731_v63, %v8100_v49  ;;  %8256 = vst [vmem:[#allocation3_spill] sm:$0xff] %v5808_v56  ;;  %v107_v49 = vld [vmem:[%s8047_s1 + $0x2d8] sm:$0xff] }
  0xd4   :  { %1746 = vmatpush.msra.mxu2 %v5601_v6  ;;  %1796 = vmatpush.msra.mxu3 %v5565_v21  ;;  %v8104_v30 = vand.u32 4294901760, %v5678_v37  ;;  %v1692_v20 = vand.u32 4294901760, %v1691_v29  ;;  %v102_v6 = vld [vmem:[%s8047_s1 + $0x2b0] sm:$0xff] }
  0xd5   :  { %1485 = vmatpush.msrb.mxu1 %v5439_v3  ;;  %1608 = vmatpush.msra.mxu0 %v5609_v50  ;;  %v1667_v3 = vsub.f32 %v5635_v13, %v8107_v24 }
  0xd6   :  { %1489 = vmatmul.f32.vlgmr.msrb.gmra.mxu1 %v1292_v36  ;;  %1749 = vmatpush.msra.mxu2 %v5615_v2  ;;  %v5712_v36 = vand.u32 4294901760, %v85_v61  ;;  %v1679_v23 = vsub.f32 %v5678_v37, %v8104_v30  ;;  %v5864_v30 = vand.u32 4294901760, %v107_v49 }
  0xd7   :  { %1645 = vmatpush.msra.mxu1 %v1644_v60  ;;  %1798 = vmatpush.msra.mxu3 %v5575_v31  ;;  %v1668_v57 = vand.u32 4294901760, %v1667_v3  ;;  %v1686_v60 = vand.u32 4294901760, %v1685_v51  ;;  %v5799_v3 = vand.u32 4294901760, %v111_v7  ;;  %v5824_v51 = vand.u32 4294901760, %v110_v16 }
  0xd8   :  { %1610 = vmatpush.msra.mxu0 %v5620_v40  ;;  %1752 = vmatpush.msra.mxu2 %v5629_v46  ;;  %v5748_v15 = vsub.f32 %v85_v61, %v5712_v36  ;;  %v1680_v55 = vand.u32 4294901760, %v1679_v23  ;;  %v8098_v61 = vand.u32 4294901760, %v5760_v17 }
  0xd9   :  { %1651 = vmatpush.msra.mxu1 %v1650_v9  ;;  %1800 = vmatpush.msra.mxu3 %v5585_v34  ;;  %v5794_v9 = vsub.f32 %v82_v47, %v5756_v52  ;;  %v1698_v47 = vand.u32 4294901760, %v1697_v27  ;;  %v5835_v29 = vsub.f32 %v111_v7, %v5799_v3  ;;  %v1715_v27 = vsub.f32 %v5776_v1, %v8101_v19 }
  0xda   :  { %1612 = vmatpush.msra.mxu0 %v5645_v12  ;;  %1755 = vmatpush.msra.mxu2 %v5635_v13  ;;  %v8099_v25 = vand.u32 4294901760, %v5748_v15  ;;  %v1709_v23 = vsub.f32 %v5760_v17, %v8098_v61  ;;  %v5842_v61 = vsub.f32 %v80_v35, %v5808_v56  ;;  %v5859_v19 = vsub.f32 %v110_v16, %v5824_v51 }
  0xdb   :  { %1657 = vmatpush.msra.mxu1 %v1656_v59  ;;  %1802 = vmatpush.msra.mxu3 %v5598_v33  ;;  %v8110_v10 = vand.u32 4294901760, %v5835_v29 }
  0xdc   :  { %1614 = vmatpush.msra.mxu0 %v5661_v22  ;;  %1758 = vmatpush.msra.mxu2 %v5651_v42  ;;  %v1703_v59 = vsub.f32 %v5748_v15, %v8099_v25  ;;  %v8111_v16 = vand.u32 4294901760, %v5842_v61 }
  0xdd   :  { %1663 = vmatpush.msra.mxu1 %v1662_v14  ;;  %1804 = vmatpush.msra.mxu3 %v5609_v50  ;;  %v5814_v14 = vsub.f32 %v81_v4, %v5783_v41  ;;  %v108_v4 = vld [vmem:[%s8047_s1 + $0x2e0] sm:$0xff] }
  0xde   :  { %1616 = vmatpush.msra.mxu0 %v5675_v28  ;;  %1761 = vmatpush.msra.mxu2 %v5678_v37 }
  0xdf   :  { %1669 = vmatpush.msra.mxu1 %v1668_v57  ;;  %1806 = vmatpush.msra.mxu3 %v5620_v40  ;;  %v109_v57 = vld [vmem:[%s8047_s1 + $0x2e8] sm:$0xff]  ;;  %v8108_v7 = vand.u32 4294901760, %v5814_v14 }
  0xe0   :  { %1618 = vmatpush.msra.mxu0 %v5691_v45  ;;  %1764 = vmatpush.msra.mxu2 %v5694_v48  ;;  %v5844_v25 = vand.u32 4294901760, %v109_v57 }
  0xe1   :  { %1675 = vmatpush.msra.mxu1 %v1674_v5  ;;  %1808 = vmatpush.msra.mxu3 %v5645_v12  ;;  %v8105_v5 = vand.u32 4294901760, %v5794_v9 }
  0xe2   :  { %1620 = vmatpush.msra.mxu0 %v5712_v36  ;;  %1767 = vmatpush.msra.mxu2 %v5716_v26 }
  0xe3   :  { %1681 = vmatpush.msra.mxu1 %v1680_v55  ;;  %1810 = vmatpush.msra.mxu3 %v5661_v22  ;;  %v1634_v55 = vsub.f32 %v5768_v38, %v8112_v58  ;;  %v1721_v35 = vsub.f32 %v5794_v9, %v8105_v5  ;;  %v5872_v5 = vsub.f32 %v109_v57, %v5844_v25  ;;  %v5955_v58 = vand.u32 4294901760, %v102_v6 }
  0xe4   :  { %1622 = vmatpush.msra.mxu0 %v5727_v44  ;;  %1770 = vmatpush.msra.mxu2 %v5731_v63 }
  0xe5   :  { %1687 = vmatpush.msra.mxu1 %v1686_v60  ;;  %1812 = vmatpush.msra.mxu3 %v5675_v28  ;;  %v1704_v60 = vand.u32 4294901760, %v1703_v59  ;;  %v1710_v59 = vand.u32 4294901760, %v1709_v23  ;;  %v1635_v62 = vand.u32 4294901760, %v1634_v55  ;;  %v1716_v23 = vand.u32 4294901760, %v1715_v27 }
  0xe6   :  { %1624 = vmatpush.msra.mxu0 %v5744_v54  ;;  %1773 = vmatpush.msra.mxu2 %v5748_v15  ;;  %v1727_v55 = vsub.f32 %v5814_v14, %v8108_v7  ;;  %v1722_v57 = vand.u32 4294901760, %v1721_v35  ;;  %v8114_v27 = vand.u32 4294901760, %v5859_v19  ;;  %v5894_v7 = vsub.f32 %v107_v49, %v5864_v30 }
  0xe7   :  { %1693 = vmatpush.msra.mxu1 %v1692_v20  ;;  %1814 = vmatpush.msra.mxu3 %v5691_v45  ;;  %v5852_v20 = vand.u32 4294901760, %v108_v4  ;;  %v8113_v35 = vand.u32 4294901760, %v5872_v5 }
  0xe8   :  { %1626 = vmatpush.msra.mxu0 %v5756_v52  ;;  %1776 = vmatpush.msra.mxu2 %v5760_v17  ;;  %v1728_v49 = vand.u32 4294901760, %v1727_v55 }
  0xe9   :  { %1699 = vmatpush.msra.mxu1 %v1698_v47  ;;  %1816 = vmatpush.msra.mxu3 %v5712_v36  ;;  %v106_v47 = vld [vmem:[%s8047_s1 + $0x2d0] sm:$0xff]  ;;  %v5880_v53 = vsub.f32 %v108_v4, %v5852_v20  ;;  %v1984_v4 = vsub.f32 %v5835_v29, %v8110_v10 }
  0xea   :  { %1628 = vmatpush.msra.mxu0 %v5783_v41  ;;  %1779 = vmatpush.msra.mxu2 %v5776_v1  ;;  %v5887_v24 = vand.u32 4294901760, %v106_v47 }
  0xeb   :  { %1705 = vmatpush.msra.mxu1 %v1704_v60  ;;  %1818 = vmatpush.msra.mxu3 %v5727_v44  ;;  %v105_v60 = vld [vmem:[%s8047_s1 + $0x2c8] sm:$0xff]  ;;  %v8115_v10 = vand.u32 4294901760, %v5880_v53  ;;  %v1985_v55 = vand.u32 4294901760, %v1984_v4  ;;  %v5938_v4 = vand.u32 4294901760, %v103_v39 }
  0xec   :  { %1630 = vmatpush.msra.mxu0 %v5808_v56  ;;  %1782 = vmatpush.msra.mxu2 %v5794_v9  ;;  %v5905_v0 = vand.u32 4294901760, %v105_v60 }
  0xed   :  { %1711 = vmatpush.msra.mxu1 %v1710_v59  ;;  %1820 = vmatpush.msra.mxu3 %v5744_v54  ;;  %v104_v59 = vld [vmem:[%s8047_s1 + $0x2c0] sm:$0xff]  ;;  %v2002_v2 = vsub.f32 %v5880_v53, %v8115_v10  ;;  %v8259_v10 = vand.u32 4294901760, %v5894_v7 }
  0xee   :  { %1636 = vmatmul.f32.vlgmr.msra.gmra.mxu0 %v1635_v62  ;;  %1785 = vmatpush.msra.mxu2 %v5814_v14  ;;  %v1733_v62 = vsub.f32 %v5842_v61, %v8111_v16  ;;  %v5921_v16 = vand.u32 4294901760, %v104_v59 }
  0xef   :  { %1837 = vmatpush.msrb.mxu0 %v1642_v11  ;;  %1717 = vmatpush.msra.mxu1 %v1716_v23  ;;  %v1990_v11 = vsub.f32 %v5859_v19, %v8114_v27  ;;  %v5919_v23 = vsub.f32 %v106_v47, %v5887_v24  ;;  %v1996_v47 = vsub.f32 %v5872_v5, %v8113_v35  ;;  %v8258_v35 = vand.u32 4294901760, %v5629_v46  ;;  %v100_v46 = vld [vmem:[%s8047_s1 + $0x2a0] sm:$0xff] }
  0xf0   :  { %1822 = vmatpush.msra.mxu3 %v5756_v52  ;;  %1788 = vmatpush.msra.mxu2 %v5842_v61 }
  0xf1   :  { %1841 = vmatpush.msrb.mxu0 %v1648_v43  ;;  %1723 = vmatpush.msra.mxu1 %v1722_v57  ;;  %v1734_v43 = vand.u32 4294901760, %v1733_v62  ;;  %v5936_v57 = vsub.f32 %v105_v60, %v5905_v0  ;;  %v8257_v62 = vand.u32 4294901760, %v5768_v38  ;;  %v1991_v60 = vand.u32 4294901760, %v1990_v11 }
  0xf2   :  { %1824 = vmatpush.msra.mxu3 %v5783_v41  ;;  %1791 = vmatmul.f32.vlgmr.msra.gmra.mxu2 %v5768_v38  ;;  %v8117_v27 = vand.u32 4294901760, %v5919_v23  ;;  %v8260_v38 = vand.u32 4294901760, %v5635_v13  ;;  %v5968_v11 = vsub.f32 %v103_v39, %v5938_v4 }
  0xf3   :  { %1845 = vmatpush.msrb.mxu0 %v1654_v8  ;;  %1941 = vmatpush.msrb.mxu2 %v5799_v3  ;;  %v101_v8 = vld [vmem:[%s8047_s1 + $0x2a8] sm:$0xff] }
  0xf4   :  { %1729 = vmatpush.msra.mxu1 %v1728_v49  ;;  %1826 = vmatpush.msra.mxu3 %v5808_v56  ;;  %v5953_v49 = vsub.f32 %v104_v59, %v5921_v16  ;;  %v2008_v56 = vsub.f32 %v5894_v7, %v8259_v10  ;;  %v8118_v59 = vand.u32 4294901760, %v5936_v57  ;;  %v2003_v10 = vand.u32 4294901760, %v2002_v2 }
  0xf5   :  { %1830 = vmatmul.f32.vlgmr.msra.gmra.mxu3 %v8257_v62  ;;  %1849 = vmatpush.msrb.mxu0 %v8258_v35  ;;  %v1997_v35 = vand.u32 4294901760, %v1996_v47  ;;  %v5970_v62 = vand.u32 4294901760, %v101_v8  ;;  %v2014_v13 = vsub.f32 %v5919_v23, %v8117_v27  ;;  %v5985_v47 = vand.u32 4294901760, %v100_v46 }
  0xf6   :  { %1943 = vmatpush.msrb.mxu2 %v5824_v51  ;;  %1986 = vmatpush.msrb.mxu3 %v1985_v55  ;;  %v99_v55 = vld [vmem:[%s8047_s1 + $0x298] sm:$0xff]  ;;  %v8119_v39 = vand.u32 4294901760, %v5953_v49  ;;  %v8261_v2 = vand.u32 4294901760, %v5651_v42  ;;  %v98_v42 = vld [vmem:[%s8047_s1 + $0x290] sm:$0xff] }
  0xf7   :  { %1735 = vmatpush.msra.mxu1 %v1734_v43  ;;  %1853 = vmatpush.msrb.mxu0 %v8260_v38  ;;  %v5983_v43 = vsub.f32 %v102_v6, %v5955_v58  ;;  %v2009_v38 = vand.u32 4294901760, %v2008_v56  ;;  %v5996_v6 = vsub.f32 %v101_v8, %v5970_v62  ;;  %v5998_v27 = vand.u32 4294901760, %v99_v55 }
  0xf8   :  { %1737 = vmatmul.f32.vlgmr.msra.gmra.mxu1 %v5738_v18  ;;  %1945 = vmatpush.msrb.mxu2 %v5844_v25  ;;  %v8262_v56 = vand.u32 4294901760, %v5678_v37  ;;  %v2026_v8 = vsub.f32 %v5953_v49, %v8119_v39  ;;  %v97_v37 = vld [vmem:[%s8047_s1 + $0x288] sm:$0xff] }
  0xf9   :  { %1904 = vmatpush.msrb.mxu1 %v5565_v21  ;;  %1992 = vmatpush.msrb.mxu3 %v1991_v60  ;;  %v2020_v21 = vsub.f32 %v5936_v57, %v8118_v59  ;;  %v8120_v60 = vand.u32 4294901760, %v5968_v11  ;;  %v6013_v59 = vsub.f32 %v100_v46, %v5985_v47  ;;  %v6029_v39 = vsub.f32 %v99_v55, %v5998_v27 }
  0xfa   :  { %1857 = vmatpush.msrb.mxu0 %v8261_v2  ;;  %1947 = vmatpush.msrb.mxu2 %v5852_v20  ;;  %v8121_v2 = vand.u32 4294901760, %v5983_v43 }
  0xfb   :  { %1906 = vmatpush.msrb.mxu1 %v5575_v31  ;;  %1998 = vmatpush.msrb.mxu3 %v1997_v35  ;;  %v216_v31 = vperm.slane %v5708_v32, 5  ;;  %v2015_v35 = vand.u32 4294901760, %v2014_v13  ;;  %v2032_v46 = vsub.f32 %v5968_v11, %v8120_v60  ;;  %v2049_v60 = vand.u32 4294901760, %v6013_v59 }
  0xfc   :  { %1861 = vmatpush.msrb.mxu0 %v8262_v56  ;;  %1949 = vmatpush.msrb.mxu2 %v5864_v30  ;;  %v8263_v56 = vand.u32 4294901760, %v5694_v48  ;;  %v96_v48 = vld [vmem:[%s8047_s1 + $0x280] sm:$0xff]  ;;  %v2038_v55 = vsub.f32 %v5983_v43, %v8121_v2  ;;  %v8265_v13 = vand.u32 4294901760, %v5731_v63  ;;  %v2055_v2 = vand.u32 4294901760, %v6029_v39 }
  0xfd   :  { %1908 = vmatpush.msrb.mxu1 %v5585_v34  ;;  %2004 = vmatpush.msrb.mxu3 %v2003_v10  ;;  %v6021_v34 = vand.u32 4294901760, %v98_v42  ;;  %v2021_v10 = vand.u32 4294901760, %v2020_v21  ;;  %v2027_v21 = vand.u32 4294901760, %v2026_v8  ;;  %v8267_v63 = vand.u32 4294901760, %v5748_v15 }
  0xfe   :  { %1865 = vmatpush.msrb.mxu0 %v8263_v56  ;;  %1951 = vmatpush.msrb.mxu2 %v5887_v24  ;;  %v8264_v56 = vand.u32 4294901760, %v5716_v26 }
  0xff   :  { %1910 = vmatpush.msrb.mxu1 %v5598_v33  ;;  %2010 = vmatpush.msrb.mxu3 %v2009_v38  ;;  %v6037_v33 = vand.u32 4294901760, %v97_v37  ;;  %v6039_v38 = vand.u32 4294901760, %v216_v31  ;;  %v6050_v26 = vsub.f32 %v98_v42, %v6021_v34 }
 0x100   :  { %1869 = vmatpush.msrb.mxu0 %v8264_v56  ;;  %1953 = vmatpush.msrb.mxu2 %v5905_v0  ;;  %v6052_v56 = vand.u32 4294901760, %v96_v48 }
 0x101   :  { %1912 = vmatpush.msrb.mxu1 %v5609_v50  ;;  %2016 = vmatpush.msrb.mxu3 %v2015_v35  ;;  %v2033_v50 = vand.u32 4294901760, %v2032_v46  ;;  %v8266_v35 = vand.u32 4294901760, %v5996_v6  ;;  %v6063_v42 = vsub.f32 %v97_v37, %v6037_v33  ;;  %v8268_v46 = vand.u32 4294901760, %v5760_v17 }
 0x102   :  { %1873 = vmatpush.msrb.mxu0 %v8265_v13  ;;  %1955 = vmatpush.msrb.mxu2 %v5921_v16  ;;  %v6066_v13 = vsub.f32 %v216_v31, %v6039_v38  ;;  %v2061_v15 = vand.u32 4294901760, %v6050_v26  ;;  %v6077_v37 = vsub.f32 %v96_v48, %v6052_v56  ;;  %v2056_v31 = vsub.f32 %v6029_v39, %v2055_v2 }
 0x103   :  { %1914 = vmatpush.msrb.mxu1 %v5620_v40  ;;  %2022 = vmatpush.msrb.mxu3 %v2021_v10  ;;  %v2044_v8 = vsub.f32 %v5996_v6, %v8266_v35  ;;  %v2039_v40 = vand.u32 4294901760, %v2038_v55  ;;  %v2050_v10 = vsub.f32 %v6013_v59, %v2049_v60  ;;  %v2067_v17 = vand.u32 4294901760, %v6063_v42 }
 0x104   :  { %1877 = vmatpush.msrb.mxu0 %v8267_v63  ;;  %1957 = vmatpush.msrb.mxu2 %v5938_v4  ;;  %v1974_v55 = vand.u32 4294901760, %v6066_v13  ;;  %v2057_v35 = vand.u32 4294901760, %v2056_v31 }
 0x105   :  { %1916 = vmatpush.msrb.mxu1 %v5645_v12  ;;  %2028 = vmatpush.msrb.mxu3 %v2027_v21  ;;  %v2045_v12 = vand.u32 4294901760, %v2044_v8  ;;  %v8269_v21 = vand.u32 4294901760, %v5776_v1  ;;  %v2051_v48 = vand.u32 4294901760, %v2050_v10  ;;  %v2062_v1 = vsub.f32 %v6050_v26, %v2061_v15 }
 0x106   :  { %1881 = vmatpush.msrb.mxu0 %v8268_v46  ;;  %1959 = vmatpush.msrb.mxu2 %v5955_v58  ;;  %v8271_v8 = vand.u32 4294901760, %v5814_v14 }
 0x107   :  { %1918 = vmatpush.msrb.mxu1 %v5661_v22  ;;  %2034 = vmatpush.msrb.mxu3 %v2033_v50  ;;  %v8270_v22 = vand.u32 4294901760, %v5794_v9  ;;  %v2073_v50 = vand.u32 4294901760, %v6077_v37  ;;  %v1975_v9 = vsub.f32 %v6066_v13, %v1974_v55  ;;  %v2063_v14 = vand.u32 4294901760, %v2062_v1 }
 0x108   :  { %1885 = vmatpush.msrb.mxu0 %v8269_v21  ;;  %1961 = vmatpush.msrb.mxu2 %v5970_v62  ;;  %v118_v21 = vld [vmem:[%s8047_s1 + $0x330] sm:$0xff] }
 0x109   :  { %1920 = vmatpush.msrb.mxu1 %v5675_v28  ;;  %2040 = vmatpush.msrb.mxu3 %v2039_v40  ;;  %v2068_v28 = vsub.f32 %v6063_v42, %v2067_v17  ;;  %v2074_v63 = vsub.f32 %v6077_v37, %v2073_v50 }
 0x10a   :  { %1889 = vmatpush.msrb.mxu0 %v8270_v22  ;;  %1963 = vmatpush.msrb.mxu2 %v5985_v47 }
 0x10b   :  { %1922 = vmatpush.msrb.mxu1 %v5691_v45  ;;  %2046 = vmatpush.msrb.mxu3 %v2045_v12  ;;  %v8272_v45 = vand.u32 4294901760, %v5842_v61  ;;  %v2069_v40 = vand.u32 4294901760, %v2068_v28  ;;  %v2075_v61 = vand.u32 4294901760, %v2074_v63 }
 0x10c   :  { %1893 = vmatpush.msrb.mxu0 %v8271_v8  ;;  %1965 = vmatpush.msrb.mxu2 %v5998_v27  ;;  %v6304_v8 = vand.u32 4294901760, %v118_v21 }
 0x10d   :  { %1924 = vmatpush.msrb.mxu1 %v5712_v36  ;;  %2052 = vmatpush.msrb.mxu3 %v2051_v48  ;;  %v1976_v36 = vand.u32 4294901760, %v1975_v9  ;;  %v116_v9 = vld [vmem:[%s8047_s1 + $0x320] sm:$0xff] }
 0x10e   :  { %1897 = vmatpush.msrb.mxu0 %v8272_v45  ;;  %1967 = vmatpush.msrb.mxu2 %v6021_v34  ;;  %v217_v45 = vperm.slane %v5708_v32, 6  ;;  %v115_v32 = vld [vmem:[%s8047_s1 + $0x318] sm:$0xff] }
 0x10f   :  { %1926 = vmatpush.msrb.mxu1 %v5727_v44  ;;  %2058 = vmatpush.msrb.mxu3 %v2057_v35  ;;  %v8273_v44 = vand.u32 4294901760, %v5835_v29 }
 0x110   :  { %1899 = vmatmul.f32.vlgmr.msrb.gmra.mxu0 %v5738_v18  ;;  %1969 = vmatpush.msrb.mxu2 %v6037_v33 }
 0x111   :  { %2084 = vmatpush.msra.mxu0 %v5835_v29  ;;  %1928 = vmatpush.msrb.mxu1 %v5744_v54  ;;  %v8274_v54 = vand.u32 4294901760, %v5859_v19  ;;  %v8276_v29 = vand.u32 4294901760, %v5872_v5 }
 0x112   :  { %2064 = vmatpush.msrb.mxu3 %v2063_v14  ;;  %1971 = vmatpush.msrb.mxu2 %v6052_v56 }
 0x113   :  { %2087 = vmatpush.msra.mxu0 %v5859_v19  ;;  %1930 = vmatpush.msrb.mxu1 %v5756_v52  ;;  %v8275_v52 = vld [vmem:[#allocation3_spill] sm:$0xff]  ;;  %v8282_v19 = vand.u32 4294901760, %v5968_v11 }
 0x114   :  { %2070 = vmatpush.msrb.mxu3 %v2069_v40  ;;  %1977 = vmatmul.f32.vlgmr.msrb.gmra.mxu2 %v1976_v36 }
 0x115   :  { %2090 = vmatpush.msra.mxu0 %v5872_v5  ;;  %2178 = vmatpush.msra.mxu2 %v8273_v44  ;;  %v8283_v5 = vand.u32 4294901760, %v5983_v43 }
 0x116   :  { %1932 = vmatpush.msrb.mxu1 %v5783_v41  ;;  %2076 = vmatpush.msrb.mxu3 %v2075_v61  ;;  %v8277_v41 = vand.u32 4294901760, %v5880_v53  ;;  %v6335_v61 = vand.u32 4294901760, %v116_v9 }
 0x117   :  { %2078 = vmatmul.f32.vlgmr.msrb.gmra.mxu3 %v6039_v38  ;;  %2093 = vmatpush.msra.mxu0 %v5880_v53  ;;  %v8280_v53 = vand.u32 4294901760, %v5936_v57 }
 0x118   :  { %2182 = vmatpush.msra.mxu2 %v8274_v54  ;;  %2245 = vmatpush.msra.mxu3 %v5799_v3  ;;  %v6339_v54 = vsub.f32 %v118_v21, %v6304_v8 }
 0x119   :  { %1934 = vmatpush.msrb.mxu1 %v8275_v52  ;;  %2096 = vmatpush.msra.mxu0 %v5894_v7 }
 0x11a   :  { %1936 = vmatmul.f32.vlgmr.msrb.gmra.mxu1 %v5738_v18  ;;  %2186 = vmatpush.msra.mxu2 %v8276_v29  ;;  %v8278_v18 = vand.u32 4294901760, %v5894_v7  ;;  %v125_v7 = vld [vmem:[%s8047_s1 + $0x368] sm:$0xff]  ;;  %v114_v29 = vld [vmem:[%s8047_s1 + $0x310] sm:$0xff] }
 0x11b   :  { %2137 = vmatpush.msra.mxu1 %v5799_v3  ;;  %2247 = vmatpush.msra.mxu3 %v5824_v51  ;;  %v8279_v3 = vand.u32 4294901760, %v5919_v23 }
 0x11c   :  { %2099 = vmatpush.msra.mxu0 %v5919_v23  ;;  %2190 = vmatpush.msra.mxu2 %v8277_v41  ;;  %v6198_v23 = vand.u32 4294901760, %v125_v7  ;;  %v6346_v41 = vand.u32 4294901760, %v217_v45 }
 0x11d   :  { %2139 = vmatpush.msra.mxu1 %v5824_v51  ;;  %2249 = vmatpush.msra.mxu3 %v5844_v25 }
 0x11e   :  { %2102 = vmatpush.msra.mxu0 %v5936_v57  ;;  %2194 = vmatpush.msra.mxu2 %v8278_v18 }
 0x11f   :  { %2141 = vmatpush.msra.mxu1 %v5844_v25  ;;  %2251 = vmatpush.msra.mxu3 %v5852_v20  ;;  %v8281_v25 = vand.u32 4294901760, %v5953_v49 }
 0x120   :  { %2105 = vmatpush.msra.mxu0 %v5953_v49  ;;  %2198 = vmatpush.msra.mxu2 %v8279_v3  ;;  %v6352_v3 = vand.u32 4294901760, %v115_v32 }
 0x121   :  { %2143 = vmatpush.msra.mxu1 %v5852_v20  ;;  %2253 = vmatpush.msra.mxu3 %v5864_v30 }
 0x122   :  { %2108 = vmatpush.msra.mxu0 %v5968_v11  ;;  %2202 = vmatpush.msra.mxu2 %v8280_v53 }
 0x123   :  { %2145 = vmatpush.msra.mxu1 %v5864_v30  ;;  %2255 = vmatpush.msra.mxu3 %v5887_v24  ;;  %v127_v30 = vld [vmem:[%s8047_s1 + $0x378] sm:$0xff] }
 0x124   :  { %2111 = vmatpush.msra.mxu0 %v5983_v43  ;;  %2206 = vmatpush.msra.mxu2 %v8281_v25  ;;  %v6178_v51 = vand.u32 4294901760, %v127_v30 }
 0x125   :  { %2147 = vmatpush.msra.mxu1 %v5887_v24  ;;  %2257 = vmatpush.msra.mxu3 %v5905_v0  ;;  %v126_v24 = vld [vmem:[%s8047_s1 + $0x370] sm:$0xff] }
 0x126   :  { %2114 = vmatpush.msra.mxu0 %v5996_v6  ;;  %2210 = vmatpush.msra.mxu2 %v8282_v19  ;;  %v6188_v20 = vand.u32 4294901760, %v126_v24  ;;  %v6201_v57 = vsub.f32 %v127_v30, %v6178_v51 }
 0x127   :  { %2149 = vmatpush.msra.mxu1 %v5905_v0  ;;  %2259 = vmatpush.msra.mxu3 %v5921_v16  ;;  %v8284_v0 = vand.u32 4294901760, %v5996_v6 }
 0x128   :  { %2117 = vmatpush.msra.mxu0 %v6013_v59  ;;  %2214 = vmatpush.msra.mxu2 %v8283_v5  ;;  %v6214_v49 = vsub.f32 %v126_v24, %v6188_v20  ;;  %v122_v59 = vld [vmem:[%s8047_s1 + $0x350] sm:$0xff]  ;;  %v6364_v5 = vand.u32 4294901760, %v114_v29  ;;  %v8125_v24 = vand.u32 4294901760, %v6339_v54 }
 0x129   :  { %2151 = vmatpush.msra.mxu1 %v5921_v16  ;;  %2261 = vmatpush.msra.mxu3 %v5938_v4  ;;  %v124_v16 = vld [vmem:[%s8047_s1 + $0x360] sm:$0xff]  ;;  %v6233_v43 = vand.u32 4294901760, %v122_v59 }
 0x12a   :  { %2120 = vmatpush.msra.mxu0 %v6029_v39  ;;  %2218 = vmatpush.msra.mxu2 %v8284_v0  ;;  %v6228_v39 = vsub.f32 %v125_v7, %v6198_v23  ;;  %v6368_v0 = vsub.f32 %v116_v9, %v6335_v61  ;;  %v113_v7 = vld [vmem:[%s8047_s1 + $0x308] sm:$0xff] }
 0x12b   :  { %2153 = vmatpush.msra.mxu1 %v5938_v4  ;;  %2263 = vmatpush.msra.mxu3 %v5955_v58  ;;  %v123_v4 = vld [vmem:[%s8047_s1 + $0x358] sm:$0xff]  ;;  %v6264_v46 = vsub.f32 %v122_v59, %v6233_v43 }
 0x12c   :  { %2123 = vmatpush.msra.mxu0 %v6050_v26  ;;  %2222 = vmatpush.msra.mxu2 %v2049_v60  ;;  %v6222_v11 = vand.u32 4294901760, %v123_v4  ;;  %v121_v60 = vld [vmem:[%s8047_s1 + $0x348] sm:$0xff]  ;;  %v120_v26 = vld [vmem:[%s8047_s1 + $0x340] sm:$0xff]  ;;  %v2336_v10 = vand.u32 4294901760, %v6228_v39 }
 0x12d   :  { %2155 = vmatpush.msra.mxu1 %v5955_v58  ;;  %2265 = vmatpush.msra.mxu3 %v5970_v62  ;;  %v6211_v58 = vand.u32 4294901760, %v124_v16  ;;  %v8130_v1 = vand.u32 4294901760, %v6264_v46 }
 0x12e   :  { %2126 = vmatpush.msra.mxu0 %v6063_v42  ;;  %2226 = vmatpush.msra.mxu2 %v2055_v2  ;;  %v6248_v2 = vsub.f32 %v123_v4, %v6222_v11  ;;  %v6258_v42 = vand.u32 4294901760, %v121_v60  ;;  %v2337_v48 = vsub.f32 %v6228_v39, %v2336_v10 }
 0x12f   :  { %2157 = vmatpush.msra.mxu1 %v5970_v62  ;;  %2267 = vmatpush.msra.mxu3 %v5985_v47  ;;  %v2324_v62 = vand.u32 4294901760, %v6201_v57  ;;  %v6242_v6 = vsub.f32 %v124_v16, %v6211_v58  ;;  %v2355_v40 = vsub.f32 %v6264_v46, %v8130_v1  ;;  %v6376_v16 = vsub.f32 %v217_v45, %v6346_v41 }
 0x130   :  { %2129 = vmatpush.msra.mxu0 %v6077_v37  ;;  %2230 = vmatpush.msra.mxu2 %v2061_v15  ;;  %v119_v15 = vld [vmem:[%s8047_s1 + $0x338] sm:$0xff]  ;;  %v6274_v37 = vand.u32 4294901760, %v120_v26  ;;  %v8132_v31 = vand.u32 4294901760, %v6248_v2  ;;  %v2338_v14 = vand.u32 4294901760, %v2337_v48  ;;  %v8122_v48 = vand.u32 4294901760, %v6368_v0 }
 0x131   :  { %2159 = vmatpush.msra.mxu1 %v5985_v47  ;;  %2269 = vmatpush.msra.mxu3 %v5998_v27  ;;  %v2330_v47 = vand.u32 4294901760, %v6214_v49  ;;  %v8135_v12 = vand.u32 4294901760, %v6242_v6  ;;  %v6288_v22 = vand.u32 4294901760, %v119_v15  ;;  %v2356_v19 = vand.u32 4294901760, %v2355_v40 }
 0x132   :  { %2132 = vmatmul.f32.vlgmr.msra.gmra.mxu0 %v6066_v13  ;;  %2234 = vmatpush.msra.mxu2 %v2067_v17  ;;  %v6307_v28 = vsub.f32 %v120_v26, %v6274_v37  ;;  %v6384_v26 = vsub.f32 %v115_v32, %v6352_v3 }
 0x133   :  { %2282 = vmatpush.msrb.mxu0 %v6178_v51  ;;  %2161 = vmatpush.msra.mxu1 %v5998_v27  ;;  %v2325_v27 = vsub.f32 %v6201_v57, %v2324_v62  ;;  %v2343_v35 = vsub.f32 %v6242_v6, %v8135_v12 }
 0x134   :  { %2271 = vmatpush.msra.mxu3 %v6021_v34  ;;  %2238 = vmatpush.msra.mxu2 %v2073_v50  ;;  %v8127_v44 = vand.u32 4294901760, %v6307_v28  ;;  %v8124_v40 = vand.u32 4294901760, %v6384_v26 }
 0x135   :  { %2284 = vmatpush.msrb.mxu0 %v6188_v20  ;;  %2163 = vmatpush.msra.mxu1 %v6021_v34  ;;  %v2331_v34 = vsub.f32 %v6214_v49, %v2330_v47  ;;  %v2326_v17 = vand.u32 4294901760, %v2325_v27  ;;  %v2344_v36 = vand.u32 4294901760, %v2343_v35  ;;  %v143_v27 = vld [vmem:[%s8047_s1 + $0x3f8] sm:$0xff] }
 0x136   :  { %2273 = vmatpush.msra.mxu3 %v6037_v33  ;;  %2240 = vmatmul.f32.vlgmr.msra.gmra.mxu2 %v6039_v38  ;;  %v2367_v30 = vsub.f32 %v6307_v28, %v8127_v44  ;;  %v6407_v35 = vand.u32 4294901760, %v143_v27 }
 0x137   :  { %2286 = vmatpush.msrb.mxu0 %v6198_v23  ;;  %2425 = vmatpush.msrb.mxu2 %v6201_v57  ;;  %v2332_v50 = vand.u32 4294901760, %v2331_v34  ;;  %v112_v34 = vld [vmem:[%s8047_s1 + $0x300] sm:$0xff]  ;;  %v135_v57 = vld [vmem:[%s8047_s1 + $0x3b8] sm:$0xff] }
 0x138   :  { %2165 = vmatpush.msra.mxu1 %v6037_v33  ;;  %2275 = vmatpush.msra.mxu3 %v6052_v56  ;;  %v6291_v33 = vsub.f32 %v121_v60, %v6258_v42  ;;  %v2368_v21 = vand.u32 4294901760, %v2367_v30  ;;  %v140_v30 = vld [vmem:[%s8047_s1 + $0x3e0] sm:$0xff] }
 0x139   :  { %2277 = vmatmul.f32.vlgmr.msra.gmra.mxu3 %v6039_v38  ;;  %2288 = vmatpush.msrb.mxu0 %v6211_v58  ;;  %v117_v38 = vld [vmem:[%s8047_s1 + $0x328] sm:$0xff] }
 0x13a   :  { %2428 = vmatpush.msrb.mxu2 %v6214_v49  ;;  %2478 = vmatpush.msrb.mxu3 %v6178_v51  ;;  %v6320_v63 = vand.u32 4294901760, %v117_v38  ;;  %v8129_v13 = vand.u32 4294901760, %v6291_v33  ;;  %v134_v49 = vld [vmem:[%s8047_s1 + $0x3b0] sm:$0xff] }
 0x13b   :  { %2167 = vmatpush.msra.mxu1 %v6052_v56  ;;  %2290 = vmatpush.msrb.mxu0 %v6222_v11  ;;  %v2349_v56 = vsub.f32 %v6248_v2, %v8132_v31 }
 0x13c   :  { %2171 = vmatmul.f32.vlgmr.msra.gmra.mxu1 %v1974_v55  ;;  %2431 = vmatpush.msrb.mxu2 %v6228_v39  ;;  %v6324_v55 = vsub.f32 %v119_v15, %v6288_v22  ;;  %v2361_v18 = vsub.f32 %v6291_v33, %v8129_v13  ;;  %v6356_v25 = vsub.f32 %v117_v38, %v6320_v63  ;;  %v6391_v15 = vand.u32 4294901760, %v113_v7 }
 0x13d   :  { %2327 = vmatpush.msrb.mxu1 %v2326_v17  ;;  %2480 = vmatpush.msrb.mxu3 %v6188_v20  ;;  %v2350_v52 = vand.u32 4294901760, %v2349_v56  ;;  %v2379_v17 = vsub.f32 %v6339_v54, %v8125_v24  ;;  %v6402_v38 = vsub.f32 %v114_v29, %v6364_v5  ;;  %v142_v56 = vld [vmem:[%s8047_s1 + $0x3f0] sm:$0xff]  ;;  %v2391_v29 = vsub.f32 %v6368_v0, %v8122_v48 }
 0x13e   :  { %2292 = vmatpush.msrb.mxu0 %v6233_v43  ;;  %2434 = vmatpush.msrb.mxu2 %v6242_v6  ;;  %v8126_v53 = vand.u32 4294901760, %v6324_v55  ;;  %v2362_v4 = vand.u32 4294901760, %v2361_v18  ;;  %v8123_v60 = vand.u32 4294901760, %v6356_v25  ;;  %v6422_v32 = vsub.f32 %v113_v7, %v6391_v15 }
 0x13f   :  { %2333 = vmatpush.msrb.mxu1 %v2332_v50  ;;  %2482 = vmatpush.msrb.mxu3 %v6198_v23  ;;  %v2315_v50 = vand.u32 4294901760, %v6376_v16  ;;  %v8128_v18 = vand.u32 4294901760, %v6402_v38 }
 0x140   :  { %2294 = vmatpush.msrb.mxu0 %v6258_v42  ;;  %2437 = vmatpush.msrb.mxu2 %v6248_v2  ;;  %v2373_v59 = vsub.f32 %v6324_v55, %v8126_v53  ;;  %v2385_v45 = vsub.f32 %v6356_v25, %v8123_v60  ;;  %v139_v60 = vld [vmem:[%s8047_s1 + $0x3d8] sm:$0xff] }
 0x141   :  { %2339 = vmatpush.msrb.mxu1 %v2338_v14  ;;  %2484 = vmatpush.msrb.mxu3 %v6211_v58  ;;  %v6416_v14 = vand.u32 4294901760, %v112_v34  ;;  %v2316_v7 = vsub.f32 %v6376_v16, %v2315_v50  ;;  %v6472_v44 = vand.u32 4294901760, %v139_v60 }
 0x142   :  { %2296 = vmatpush.msrb.mxu0 %v6274_v37  ;;  %2440 = vmatpush.msrb.mxu2 %v6264_v46  ;;  %v2374_v9 = vand.u32 4294901760, %v2373_v59  ;;  %v2386_v59 = vand.u32 4294901760, %v2385_v45  ;;  %v2392_v45 = vand.u32 4294901760, %v2391_v29 }
 0x143   :  { %2345 = vmatpush.msrb.mxu1 %v2344_v36  ;;  %2486 = vmatpush.msrb.mxu3 %v6222_v11  ;;  %v141_v36 = vld [vmem:[%s8047_s1 + $0x3e8] sm:$0xff]  ;;  %v2317_v24 = vand.u32 4294901760, %v2316_v7 }
 0x144   :  { %2298 = vmatpush.msrb.mxu0 %v6288_v22  ;;  %2443 = vmatpush.msrb.mxu2 %v6291_v33  ;;  %v6452_v48 = vand.u32 4294901760, %v141_v36 }
 0x145   :  { %2351 = vmatpush.msrb.mxu1 %v2350_v52  ;;  %2488 = vmatpush.msrb.mxu3 %v6233_v43  ;;  %v2380_v52 = vand.u32 4294901760, %v2379_v17  ;;  %v6450_v17 = vsub.f32 %v112_v34, %v6416_v14  ;;  %v2403_v34 = vsub.f32 %v6402_v38, %v8128_v18 }
 0x146   :  { %2300 = vmatpush.msrb.mxu0 %v6304_v8  ;;  %2446 = vmatpush.msrb.mxu2 %v6307_v28  ;;  %v6480_v18 = vsub.f32 %v141_v36, %v6452_v48 }
 0x147   :  { %2357 = vmatpush.msrb.mxu1 %v2356_v19  ;;  %2490 = vmatpush.msrb.mxu3 %v6258_v42  ;;  %v6432_v19 = vand.u32 4294901760, %v142_v56  ;;  %v2404_v36 = vand.u32 4294901760, %v2403_v34 }
 0x148   :  { %2302 = vmatpush.msrb.mxu0 %v6320_v63  ;;  %2449 = vmatpush.msrb.mxu2 %v6324_v55  ;;  %v8136_v34 = vand.u32 4294901760, %v6480_v18 }
 0x149   :  { %2363 = vmatpush.msrb.mxu1 %v2362_v4  ;;  %2492 = vmatpush.msrb.mxu3 %v6274_v37  ;;  %v6443_v4 = vsub.f32 %v143_v27, %v6407_v35  ;;  %v8131_v27 = vand.u32 4294901760, %v6422_v32 }
 0x14a   :  { %2304 = vmatpush.msrb.mxu0 %v6335_v61  ;;  %2452 = vmatpush.msrb.mxu2 %v6339_v54 }
 0x14b   :  { %2369 = vmatpush.msrb.mxu1 %v2368_v21  ;;  %2494 = vmatpush.msrb.mxu3 %v6288_v22  ;;  %v2397_v21 = vsub.f32 %v6384_v26, %v8124_v40  ;;  %v6467_v40 = vsub.f32 %v142_v56, %v6432_v19  ;;  %v8133_v53 = vand.u32 4294901760, %v6443_v4  ;;  %v8134_v56 = vand.u32 4294901760, %v6450_v17 }
 0x14c   :  { %2306 = vmatpush.msrb.mxu0 %v6352_v3  ;;  %2455 = vmatpush.msrb.mxu2 %v6356_v25  ;;  %v2409_v7 = vsub.f32 %v6422_v32, %v8131_v27  ;;  %v6502_v27 = vsub.f32 %v139_v60, %v6472_v44 }
 0x14d   :  { %2375 = vmatpush.msrb.mxu1 %v2374_v9  ;;  %2496 = vmatpush.msrb.mxu3 %v6304_v8  ;;  %v6460_v9 = vand.u32 4294901760, %v140_v30  ;;  %v2398_v29 = vand.u32 4294901760, %v2397_v21  ;;  %v8137_v21 = vand.u32 4294901760, %v6467_v40 }
 0x14e   :  { %2308 = vmatpush.msrb.mxu0 %v6364_v5  ;;  %2458 = vmatpush.msrb.mxu2 %v6368_v0  ;;  %v2410_v60 = vand.u32 4294901760, %v2409_v7  ;;  %v8139_v12 = vand.u32 4294901760, %v6502_v27 }
 0x14f   :  { %2381 = vmatpush.msrb.mxu1 %v2380_v52  ;;  %2498 = vmatpush.msrb.mxu3 %v6320_v63  ;;  %v138_v52 = vld [vmem:[%s8047_s1 + $0x3d0] sm:$0xff]  ;;  %v6488_v13 = vsub.f32 %v140_v30, %v6460_v9  ;;  %v2666_v30 = vsub.f32 %v6443_v4, %v8133_v53 }
 0x150   :  { %2310 = vmatpush.msrb.mxu0 %v6391_v15  ;;  %2461 = vmatpush.msrb.mxu2 %v6384_v26  ;;  %v6495_v1 = vand.u32 4294901760, %v138_v52 }
 0x151   :  { %2387 = vmatpush.msrb.mxu1 %v2386_v59  ;;  %2500 = vmatpush.msrb.mxu3 %v6335_v61  ;;  %v137_v59 = vld [vmem:[%s8047_s1 + $0x3c8] sm:$0xff]  ;;  %v8138_v53 = vand.u32 4294901760, %v6488_v13  ;;  %v2667_v7 = vand.u32 4294901760, %v2666_v30  ;;  %v6546_v30 = vand.u32 4294901760, %v135_v57 }
 0x152   :  { %2312 = vmatpush.msrb.mxu0 %v6416_v14  ;;  %2464 = vmatpush.msrb.mxu2 %v6402_v38  ;;  %v6513_v31 = vand.u32 4294901760, %v137_v59 }
 0x153   :  { %2393 = vmatpush.msrb.mxu1 %v2392_v45  ;;  %2502 = vmatpush.msrb.mxu3 %v6352_v3  ;;  %v136_v45 = vld [vmem:[%s8047_s1 + $0x3c0] sm:$0xff]  ;;  %v2684_v39 = vsub.f32 %v6488_v13, %v8138_v53  ;;  %v2690_v53 = vsub.f32 %v6502_v27, %v8139_v12 }
 0x154   :  { %2318 = vmatmul.f32.vlgmr.msrb.gmra.mxu0 %v2317_v24  ;;  %2467 = vmatpush.msrb.mxu2 %v6422_v32  ;;  %v2415_v24 = vsub.f32 %v6450_v17, %v8134_v56  ;;  %v6529_v56 = vand.u32 4294901760, %v136_v45 }
 0x155   :  { %2519 = vmatpush.msra.mxu0 %v2324_v62  ;;  %2399 = vmatpush.msrb.mxu1 %v2398_v29  ;;  %v2672_v62 = vsub.f32 %v6467_v40, %v8137_v21  ;;  %v6527_v29 = vsub.f32 %v138_v52, %v6495_v1  ;;  %v2678_v52 = vsub.f32 %v6480_v18, %v8136_v34  ;;  %v6563_v21 = vand.u32 4294901760, %v134_v49 }
 0x156   :  { %2504 = vmatpush.msrb.mxu3 %v6364_v5  ;;  %2470 = vmatpush.msrb.mxu2 %v6450_v17  ;;  %v2691_v12 = vand.u32 4294901760, %v2690_v53  ;;  %v8288_v53 = vand.u32 4294901760, %v6291_v33 }
 0x157   :  { %2523 = vmatpush.msra.mxu0 %v2330_v47  ;;  %2405 = vmatpush.msrb.mxu1 %v2404_v36  ;;  %v2416_v47 = vand.u32 4294901760, %v2415_v24  ;;  %v6544_v36 = vsub.f32 %v137_v59, %v6513_v31  ;;  %v8285_v24 = vand.u32 4294901760, %v6242_v6  ;;  %v2673_v59 = vand.u32 4294901760, %v2672_v62  ;;  %v132_v6 = vld [vmem:[%s8047_s1 + $0x3a0] sm:$0xff] }
 0x158   :  { %2506 = vmatpush.msrb.mxu3 %v6391_v15  ;;  %2473 = vmatmul.f32.vlgmr.msrb.gmra.mxu2 %v6376_v16  ;;  %v8140_v34 = vand.u32 4294901760, %v6527_v29  ;;  %v8286_v16 = vand.u32 4294901760, %v6248_v2  ;;  %v6576_v62 = vsub.f32 %v135_v57, %v6546_v30 }
 0x159   :  { %2527 = vmatpush.msra.mxu0 %v2336_v10  ;;  %2623 = vmatpush.msra.mxu2 %v6407_v35  ;;  %v133_v10 = vld [vmem:[%s8047_s1 + $0x3a8] sm:$0xff] }
 0x15a   :  { %2411 = vmatpush.msrb.mxu1 %v2410_v60  ;;  %2508 = vmatpush.msrb.mxu3 %v6416_v14  ;;  %v6561_v60 = vsub.f32 %v136_v45, %v6529_v56  ;;  %v8141_v45 = vand.u32 4294901760, %v6544_v36  ;;  %v2696_v2 = vsub.f32 %v6527_v29, %v8140_v34 }
 0x15b   :  { %2512 = vmatmul.f32.vlgmr.msrb.gmra.mxu3 %v2315_v50  ;;  %2531 = vmatpush.msra.mxu0 %v8285_v24  ;;  %v2679_v50 = vand.u32 4294901760, %v2678_v52  ;;  %v6578_v24 = vand.u32 4294901760, %v133_v10  ;;  %v6591_v52 = vsub.f32 %v134_v49, %v6563_v21 }
 0x15c   :  { %2625 = vmatpush.msra.mxu2 %v6432_v19  ;;  %2668 = vmatpush.msra.mxu3 %v2667_v7  ;;  %v2685_v7 = vand.u32 4294901760, %v2684_v39  ;;  %v8142_v57 = vand.u32 4294901760, %v6561_v60  ;;  %v8287_v39 = vand.u32 4294901760, %v6264_v46  ;;  %v130_v46 = vld [vmem:[%s8047_s1 + $0x390] sm:$0xff] }
 0x15d   :  { %2417 = vmatpush.msrb.mxu1 %v2416_v47  ;;  %2535 = vmatpush.msra.mxu0 %v8286_v16  ;;  %v131_v47 = vld [vmem:[%s8047_s1 + $0x398] sm:$0xff]  ;;  %v6593_v16 = vand.u32 4294901760, %v132_v6  ;;  %v6604_v49 = vsub.f32 %v133_v10, %v6578_v24  ;;  %v2697_v10 = vand.u32 4294901760, %v2696_v2  ;;  %v8290_v2 = vand.u32 4294901760, %v6576_v62 }
 0x15e   :  { %2419 = vmatmul.f32.vlgmr.msrb.gmra.mxu1 %v6346_v41  ;;  %2627 = vmatpush.msra.mxu2 %v6452_v48  ;;  %v6606_v34 = vand.u32 4294901760, %v131_v47 }
 0x15f   :  { %2586 = vmatpush.msra.mxu1 %v6178_v51  ;;  %2674 = vmatpush.msra.mxu3 %v2673_v59  ;;  %v2702_v51 = vsub.f32 %v6544_v36, %v8141_v45  ;;  %v8143_v45 = vand.u32 4294901760, %v6591_v52  ;;  %v6623_v33 = vsub.f32 %v132_v6, %v6593_v16  ;;  %v8289_v59 = vand.u32 4294901760, %v6307_v28  ;;  %v128_v28 = vld [vmem:[%s8047_s1 + $0x380] sm:$0xff] }
 0x160   :  { %2539 = vmatpush.msra.mxu0 %v8287_v39  ;;  %2629 = vmatpush.msra.mxu2 %v6460_v9  ;;  %v2708_v39 = vsub.f32 %v6561_v60, %v8142_v57  ;;  %v2714_v6 = vsub.f32 %v6576_v62, %v8290_v2  ;;  %v6639_v57 = vsub.f32 %v131_v47, %v6606_v34 }
 0x161   :  { %2588 = vmatpush.msra.mxu1 %v6188_v20  ;;  %2680 = vmatpush.msra.mxu3 %v2679_v50  ;;  %v4356_v20 = vld [vmem:[%s8048_s0] sm:$0xff]  ;;  %v2720_v47 = vsub.f32 %v6591_v52, %v8143_v45  ;;  %v2731_v2 = vand.u32 4294901760, %v6623_v33 }
 0x162   :  { %2543 = vmatpush.msra.mxu0 %v8288_v53  ;;  %2631 = vmatpush.msra.mxu2 %v6472_v44  ;;  %v218_v50 = vperm.slane %v4356_v20, 7  ;;  %v129_v53 = vld [vmem:[%s8047_s1 + $0x388] sm:$0xff]  ;;  %v8292_v20 = vand.u32 4294901760, %v6339_v54  ;;  %v2737_v45 = vand.u32 4294901760, %v6639_v57  ;;  %v8294_v54 = vand.u32 4294901760, %v6356_v25 }
 0x163   :  { %2590 = vmatpush.msra.mxu1 %v6198_v23  ;;  %2686 = vmatpush.msra.mxu3 %v2685_v7  ;;  %v6631_v23 = vand.u32 4294901760, %v130_v46  ;;  %v2703_v7 = vand.u32 4294901760, %v2702_v51  ;;  %v2709_v51 = vand.u32 4294901760, %v2708_v39 }
 0x164   :  { %2547 = vmatpush.msra.mxu0 %v8289_v59  ;;  %2633 = vmatpush.msra.mxu2 %v6495_v1  ;;  %v8291_v59 = vand.u32 4294901760, %v6324_v55 }
 0x165   :  { %2592 = vmatpush.msra.mxu1 %v6211_v58  ;;  %2692 = vmatpush.msra.mxu3 %v2691_v12  ;;  %v6647_v58 = vand.u32 4294901760, %v129_v53  ;;  %v6649_v12 = vand.u32 4294901760, %v218_v50  ;;  %v6660_v55 = vsub.f32 %v130_v46, %v6631_v23 }
 0x166   :  { %2551 = vmatpush.msra.mxu0 %v8291_v59  ;;  %2635 = vmatpush.msra.mxu2 %v6513_v31  ;;  %v6662_v59 = vand.u32 4294901760, %v128_v28 }
 0x167   :  { %2594 = vmatpush.msra.mxu1 %v6222_v11  ;;  %2698 = vmatpush.msra.mxu3 %v2697_v10  ;;  %v2715_v11 = vand.u32 4294901760, %v2714_v6  ;;  %v8293_v10 = vand.u32 4294901760, %v6604_v49  ;;  %v6673_v46 = vsub.f32 %v129_v53, %v6647_v58  ;;  %v8295_v6 = vand.u32 4294901760, %v6368_v0 }
 0x168   :  { %2555 = vmatpush.msra.mxu0 %v8292_v20  ;;  %2637 = vmatpush.msra.mxu2 %v6529_v56  ;;  %v6676_v20 = vsub.f32 %v218_v50, %v6649_v12  ;;  %v2743_v25 = vand.u32 4294901760, %v6660_v55  ;;  %v6687_v53 = vsub.f32 %v128_v28, %v6662_v59  ;;  %v2738_v50 = vsub.f32 %v6639_v57, %v2737_v45 }
 0x169   :  { %2596 = vmatpush.msra.mxu1 %v6233_v43  ;;  %2704 = vmatpush.msra.mxu3 %v2703_v7  ;;  %v2726_v39 = vsub.f32 %v6604_v49, %v8293_v10  ;;  %v2721_v43 = vand.u32 4294901760, %v2720_v47  ;;  %v2732_v7 = vsub.f32 %v6623_v33, %v2731_v2  ;;  %v2749_v0 = vand.u32 4294901760, %v6673_v46 }
 0x16a   :  { %2559 = vmatpush.msra.mxu0 %v8294_v54  ;;  %2639 = vmatpush.msra.mxu2 %v6546_v30  ;;  %v2656_v47 = vand.u32 4294901760, %v6676_v20  ;;  %v2739_v10 = vand.u32 4294901760, %v2738_v50 }
 0x16b   :  { %2598 = vmatpush.msra.mxu1 %v6258_v42  ;;  %2710 = vmatpush.msra.mxu3 %v2709_v51  ;;  %v2727_v42 = vand.u32 4294901760, %v2726_v39  ;;  %v8296_v51 = vand.u32 4294901760, %v6384_v26  ;;  %v2733_v28 = vand.u32 4294901760, %v2732_v7  ;;  %v2744_v26 = vsub.f32 %v6660_v55, %v2743_v25  ;;  %v151_v7 = vld [vmem:[%s8047_s1 + $0x438] sm:$0xff] }
 0x16c   :  { %2563 = vmatpush.msra.mxu0 %v8295_v6  ;;  %2641 = vmatpush.msra.mxu2 %v6563_v21  ;;  %v8298_v39 = vand.u32 4294901760, %v6422_v32 }
 0x16d   :  { %2600 = vmatpush.msra.mxu1 %v6274_v37  ;;  %2716 = vmatpush.msra.mxu3 %v2715_v11  ;;  %v8297_v37 = vand.u32 4294901760, %v6402_v38  ;;  %v2755_v11 = vand.u32 4294901760, %v6687_v53  ;;  %v2657_v38 = vsub.f32 %v6676_v20, %v2656_v47  ;;  %v2745_v32 = vand.u32 4294901760, %v2744_v26 }
 0x16e   :  { %2567 = vmatpush.msra.mxu0 %v8296_v51  ;;  %2643 = vmatpush.msra.mxu2 %v6578_v24 }
 0x16f   :  { %2602 = vmatpush.msra.mxu1 %v6288_v22  ;;  %2722 = vmatpush.msra.mxu3 %v2721_v43  ;;  %v2750_v22 = vsub.f32 %v6673_v46, %v2749_v0  ;;  %v2756_v54 = vsub.f32 %v6687_v53, %v2755_v11 }
 0x170   :  { %2571 = vmatpush.msra.mxu0 %v8297_v37  ;;  %2645 = vmatpush.msra.mxu2 %v6593_v16  ;;  %v149_v37 = vld [vmem:[%s8047_s1 + $0x428] sm:$0xff] }
 0x171   :  { %2604 = vmatpush.msra.mxu1 %v6304_v8  ;;  %2728 = vmatpush.msra.mxu3 %v2727_v42  ;;  %v8299_v8 = vand.u32 4294901760, %v6450_v17  ;;  %v2751_v43 = vand.u32 4294901760, %v2750_v22  ;;  %v2757_v17 = vand.u32 4294901760, %v2756_v54  ;;  %v150_v42 = vld [vmem:[%s8047_s1 + $0x430] sm:$0xff]  ;;  %v148_v22 = vld [vmem:[%s8047_s1 + $0x420] sm:$0xff] }
 0x172   :  { %2575 = vmatpush.msra.mxu0 %v8298_v39  ;;  %2647 = vmatpush.msra.mxu2 %v6606_v34 }
 0x173   :  { %2606 = vmatpush.msra.mxu1 %v6320_v63  ;;  %2734 = vmatpush.msra.mxu3 %v2733_v28  ;;  %v2658_v63 = vand.u32 4294901760, %v2657_v38  ;;  %v6906_v28 = vld [vmem:[%s8048_s0 + $0x8] sm:$0xf] }
 0x174   :  { %2579 = vmatpush.msra.mxu0 %v8299_v8  ;;  %2649 = vmatpush.msra.mxu2 %v6631_v23  ;;  %v219_v38 = vperm.slane %v6906_v28, 0 }
 0x175   :  { %2608 = vmatpush.msra.mxu1 %v6335_v61  ;;  %2740 = vmatpush.msra.mxu3 %v2739_v10  ;;  %v8300_v61 = vand.u32 4294901760, %v6443_v4  ;;  %v6919_v10 = vand.u32 4294901760, %v150_v42 }
 0x176   :  { %2581 = vmatmul.f32.vlgmr.msra.gmra.mxu0 %v6346_v41  ;;  %2651 = vmatpush.msra.mxu2 %v6647_v58 }
 0x177   :  { %2766 = vmatpush.msrb.mxu0 %v6443_v4  ;;  %2610 = vmatpush.msra.mxu1 %v6352_v3  ;;  %v8301_v3 = vand.u32 4294901760, %v6467_v40 }
 0x178   :  { %2746 = vmatpush.msra.mxu3 %v2745_v32  ;;  %2653 = vmatpush.msra.mxu2 %v6662_v59  ;;  %v6935_v32 = vand.u32 4294901760, %v149_v37 }
 0x179   :  { %2769 = vmatpush.msrb.mxu0 %v6467_v40  ;;  %2612 = vmatpush.msra.mxu1 %v6364_v5  ;;  %v8302_v5 = vand.u32 4294901760, %v6480_v18  ;;  %v8309_v40 = vand.u32 4294901760, %v6591_v52 }
 0x17a   :  { %2752 = vmatpush.msra.mxu3 %v2751_v43  ;;  %2659 = vmatmul.f32.vlgmr.msra.gmra.mxu2 %v2658_v63  ;;  %v147_v43 = vld [vmem:[%s8047_s1 + $0x418] sm:$0xff] }
 0x17b   :  { %2772 = vmatpush.msrb.mxu0 %v6480_v18  ;;  %2860 = vmatpush.msrb.mxu2 %v8300_v61 }
 0x17c   :  { %2614 = vmatpush.msra.mxu1 %v6391_v15  ;;  %2758 = vmatpush.msra.mxu3 %v2757_v17  ;;  %v8303_v15 = vand.u32 4294901760, %v6488_v13  ;;  %v6950_v17 = vand.u32 4294901760, %v148_v22 }
 0x17d   :  { %2760 = vmatmul.f32.vlgmr.msra.gmra.mxu3 %v6649_v12  ;;  %2775 = vmatpush.msrb.mxu0 %v6488_v13  ;;  %v8306_v13 = vand.u32 4294901760, %v6544_v36 }
 0x17e   :  { %2864 = vmatpush.msrb.mxu2 %v8301_v3  ;;  %2927 = vmatpush.msrb.mxu3 %v6407_v35  ;;  %v6954_v3 = vsub.f32 %v150_v42, %v6919_v10  ;;  %v144_v42 = vld [vmem:[%s8047_s1 + $0x400] sm:$0xff] }
 0x17f   :  { %2616 = vmatpush.msra.mxu1 %v6416_v14  ;;  %2778 = vmatpush.msrb.mxu0 %v6502_v27  ;;  %v8308_v14 = vand.u32 4294901760, %v6576_v62 }
 0x180   :  { %2618 = vmatmul.f32.vlgmr.msra.gmra.mxu1 %v6346_v41  ;;  %2868 = vmatpush.msrb.mxu2 %v8302_v5  ;;  %v8304_v41 = vand.u32 4294901760, %v6502_v27  ;;  %v156_v27 = vld [vmem:[%s8047_s1 + $0x460] sm:$0xff] }
 0x181   :  { %2819 = vmatpush.msrb.mxu1 %v6407_v35  ;;  %2929 = vmatpush.msrb.mxu3 %v6432_v19  ;;  %v8305_v35 = vand.u32 4294901760, %v6527_v29 }
 0x182   :  { %2781 = vmatpush.msrb.mxu0 %v6527_v29  ;;  %2872 = vmatpush.msrb.mxu2 %v8303_v15  ;;  %v155_v29 = vld [vmem:[%s8047_s1 + $0x458] sm:$0xff]  ;;  %v146_v15 = vld [vmem:[%s8047_s1 + $0x410] sm:$0xff] }
 0x183   :  { %2821 = vmatpush.msrb.mxu1 %v6432_v19  ;;  %2931 = vmatpush.msrb.mxu3 %v6452_v48  ;;  %v157_v19 = vld [vmem:[%s8047_s1 + $0x468] sm:$0xff] }
 0x184   :  { %2784 = vmatpush.msrb.mxu0 %v6544_v36  ;;  %2876 = vmatpush.msrb.mxu2 %v8304_v41  ;;  %v6961_v41 = vand.u32 4294901760, %v219_v38 }
 0x185   :  { %2823 = vmatpush.msrb.mxu1 %v6452_v48  ;;  %2933 = vmatpush.msrb.mxu3 %v6460_v9  ;;  %v8307_v48 = vand.u32 4294901760, %v6561_v60 }
 0x186   :  { %2787 = vmatpush.msrb.mxu0 %v6561_v60  ;;  %2880 = vmatpush.msrb.mxu2 %v8305_v35  ;;  %v6832_v60 = vand.u32 4294901760, %v155_v29 }
 0x187   :  { %2825 = vmatpush.msrb.mxu1 %v6460_v9  ;;  %2935 = vmatpush.msrb.mxu3 %v6472_v44  ;;  %v6808_v9 = vand.u32 4294901760, %v157_v19 }
 0x188   :  { %2790 = vmatpush.msrb.mxu0 %v6576_v62  ;;  %2884 = vmatpush.msrb.mxu2 %v8306_v13  ;;  %v6967_v13 = vand.u32 4294901760, %v147_v43 }
 0x189   :  { %2827 = vmatpush.msrb.mxu1 %v6472_v44  ;;  %2937 = vmatpush.msrb.mxu3 %v6495_v1  ;;  %v159_v44 = vld [vmem:[%s8047_s1 + $0x478] sm:$0xff]  ;;  %v6838_v62 = vsub.f32 %v157_v19, %v6808_v9  ;;  %v6983_v19 = vsub.f32 %v148_v22, %v6950_v17  ;;  %v174_v22 = vld [vmem:[%s8047_s1 + $0x4f0] sm:$0xff] }
 0x18a   :  { %2793 = vmatpush.msrb.mxu0 %v6591_v52  ;;  %2888 = vmatpush.msrb.mxu2 %v8307_v48  ;;  %v6788_v18 = vand.u32 4294901760, %v159_v44 }
 0x18b   :  { %2829 = vmatpush.msrb.mxu1 %v6495_v1  ;;  %2939 = vmatpush.msrb.mxu3 %v6513_v31  ;;  %v158_v1 = vld [vmem:[%s8047_s1 + $0x470] sm:$0xff] }
 0x18c   :  { %2796 = vmatpush.msrb.mxu0 %v6604_v49  ;;  %2892 = vmatpush.msrb.mxu2 %v8308_v14  ;;  %v6798_v4 = vand.u32 4294901760, %v158_v1  ;;  %v6971_v14 = vsub.f32 %v149_v37, %v6935_v32  ;;  %v8144_v37 = vand.u32 4294901760, %v6983_v19 }
 0x18d   :  { %2831 = vmatpush.msrb.mxu1 %v6513_v31  ;;  %2941 = vmatpush.msrb.mxu3 %v6529_v56  ;;  %v8310_v31 = vand.u32 4294901760, %v6604_v49  ;;  %v6858_v49 = vsub.f32 %v155_v29, %v6832_v60  ;;  %v6991_v29 = vsub.f32 %v219_v38, %v6961_v41 }
 0x18e   :  { %2799 = vmatpush.msrb.mxu0 %v6623_v33  ;;  %2896 = vmatpush.msrb.mxu2 %v8309_v40  ;;  %v6824_v36 = vsub.f32 %v158_v1, %v6798_v4  ;;  %v152_v33 = vld [vmem:[%s8047_s1 + $0x440] sm:$0xff]  ;;  %v6979_v1 = vand.u32 4294901760, %v146_v15 }
 0x18f   :  { %2833 = vmatpush.msrb.mxu1 %v6529_v56  ;;  %2943 = vmatpush.msrb.mxu3 %v6546_v30  ;;  %v6811_v56 = vsub.f32 %v159_v44, %v6788_v18  ;;  %v6884_v6 = vand.u32 4294901760, %v152_v33 }
 0x190   :  { %2802 = vmatpush.msrb.mxu0 %v6639_v57  ;;  %2900 = vmatpush.msrb.mxu2 %v8310_v31  ;;  %v153_v57 = vld [vmem:[%s8047_s1 + $0x448] sm:$0xff]  ;;  %v3012_v52 = vand.u32 4294901760, %v6824_v36  ;;  %v8146_v31 = vand.u32 4294901760, %v6954_v3 }
 0x191   :  { %2835 = vmatpush.msrb.mxu1 %v6546_v30  ;;  %2945 = vmatpush.msrb.mxu3 %v6563_v21  ;;  %v154_v30 = vld [vmem:[%s8047_s1 + $0x450] sm:$0xff]  ;;  %v6922_v39 = vsub.f32 %v152_v33, %v6884_v6  ;;  %v8145_v33 = vand.u32 4294901760, %v6971_v14 }
 0x192   :  { %2805 = vmatpush.msrb.mxu0 %v6660_v55  ;;  %2904 = vmatpush.msrb.mxu2 %v2731_v2  ;;  %v6868_v2 = vand.u32 4294901760, %v153_v57  ;;  %v3018_v55 = vand.u32 4294901760, %v6838_v62 }
 0x193   :  { %2837 = vmatpush.msrb.mxu1 %v6563_v21  ;;  %2947 = vmatpush.msrb.mxu3 %v6578_v24  ;;  %v6821_v21 = vand.u32 4294901760, %v156_v27  ;;  %v8149_v61 = vand.u32 4294901760, %v6922_v39 }
 0x194   :  { %2808 = vmatpush.msrb.mxu0 %v6673_v46  ;;  %2908 = vmatpush.msrb.mxu2 %v2737_v45  ;;  %v3006_v45 = vand.u32 4294901760, %v6811_v56  ;;  %v3019_v51 = vsub.f32 %v6838_v62, %v3018_v55 }
 0x195   :  { %2839 = vmatpush.msrb.mxu1 %v6578_v24  ;;  %2949 = vmatpush.msrb.mxu3 %v6593_v16  ;;  %v6843_v24 = vand.u32 4294901760, %v154_v30  ;;  %v3049_v40 = vsub.f32 %v6922_v39, %v8149_v61 }
 0x196   :  { %2811 = vmatpush.msrb.mxu0 %v6687_v53  ;;  %2912 = vmatpush.msrb.mxu2 %v2743_v25  ;;  %v8153_v53 = vand.u32 4294901760, %v6858_v49  ;;  %v3020_v8 = vand.u32 4294901760, %v3019_v51  ;;  %v3061_v51 = vsub.f32 %v6954_v3, %v8146_v31  ;;  %v171_v31 = vld [vmem:[%s8047_s1 + $0x4d8] sm:$0xff] }
 0x197   :  { %2841 = vmatpush.msrb.mxu1 %v6593_v16  ;;  %2951 = vmatpush.msrb.mxu3 %v6606_v34  ;;  %v6852_v16 = vsub.f32 %v156_v27, %v6821_v21  ;;  %v6874_v46 = vsub.f32 %v154_v30, %v6843_v24  ;;  %v145_v27 = vld [vmem:[%s8047_s1 + $0x408] sm:$0xff] }
 0x198   :  { %2814 = vmatmul.f32.vlgmr.msrb.gmra.mxu0 %v6676_v20  ;;  %2916 = vmatpush.msrb.mxu2 %v2749_v0  ;;  %v6898_v0 = vand.u32 4294901760, %v151_v7 }
 0x199   :  { %2964 = vmatpush.msra.mxu0 %v6788_v18  ;;  %2843 = vmatpush.msrb.mxu1 %v6606_v34  ;;  %v3007_v34 = vsub.f32 %v6811_v56, %v3006_v45  ;;  %v8155_v25 = vand.u32 4294901760, %v6852_v16 }
 0x19a   :  { %2953 = vmatpush.msrb.mxu3 %v6631_v23  ;;  %2920 = vmatpush.msrb.mxu2 %v2755_v11 }
 0x19b   :  { %2966 = vmatpush.msra.mxu0 %v6798_v4  ;;  %2845 = vmatpush.msrb.mxu1 %v6631_v23  ;;  %v3013_v23 = vsub.f32 %v6824_v36, %v3012_v52  ;;  %v3008_v50 = vand.u32 4294901760, %v3007_v34  ;;  %v3025_v11 = vsub.f32 %v6852_v16, %v8155_v25  ;;  %v6999_v34 = vsub.f32 %v147_v43, %v6967_v13 }
 0x19c   :  { %2955 = vmatpush.msrb.mxu3 %v6647_v58  ;;  %2922 = vmatmul.f32.vlgmr.msrb.gmra.mxu2 %v6649_v12 }
 0x19d   :  { %2968 = vmatpush.msra.mxu0 %v6808_v9  ;;  %3107 = vmatpush.msra.mxu2 %v6811_v56  ;;  %v3014_v26 = vand.u32 4294901760, %v3013_v23  ;;  %v3026_v63 = vand.u32 4294901760, %v3025_v11  ;;  %v7006_v23 = vand.u32 4294901760, %v145_v27  ;;  %v8158_v11 = vand.u32 4294901760, %v6991_v29  ;;  %v167_v56 = vld [vmem:[%s8047_s1 + $0x4b8] sm:$0xff] }
 0x19e   :  { %2847 = vmatpush.msrb.mxu1 %v6647_v58  ;;  %2957 = vmatpush.msrb.mxu3 %v6662_v59  ;;  %v6901_v58 = vsub.f32 %v153_v57, %v6868_v2  ;;  %v8147_v43 = vand.u32 4294901760, %v6999_v34 }
 0x19f   :  { %2959 = vmatmul.f32.vlgmr.msrb.gmra.mxu3 %v6649_v12  ;;  %2970 = vmatpush.msra.mxu0 %v6821_v21  ;;  %v8152_v12 = vand.u32 4294901760, %v6874_v46 }
 0x1a0   :  { %3110 = vmatpush.msra.mxu2 %v6824_v36  ;;  %3160 = vmatpush.msra.mxu3 %v6788_v18  ;;  %v8150_v20 = vand.u32 4294901760, %v6901_v58  ;;  %v166_v36 = vld [vmem:[%s8047_s1 + $0x4b0] sm:$0xff] }
 0x1a1   :  { %2849 = vmatpush.msrb.mxu1 %v6662_v59  ;;  %2972 = vmatpush.msra.mxu0 %v6832_v60  ;;  %v3031_v59 = vsub.f32 %v6858_v49, %v8153_v53  ;;  %v3037_v54 = vsub.f32 %v6874_v46, %v8152_v12 }
 0x1a2   :  { %2853 = vmatmul.f32.vlgmr.msrb.gmra.mxu1 %v2656_v47  ;;  %3113 = vmatpush.msra.mxu2 %v6838_v62  ;;  %v6939_v47 = vsub.f32 %v151_v7, %v6898_v0  ;;  %v3043_v35 = vsub.f32 %v6901_v58, %v8150_v20  ;;  %v175_v7 = vld [vmem:[%s8047_s1 + $0x4f8] sm:$0xff]  ;;  %v7087_v20 = vand.u32 4294901760, %v171_v31 }
 0x1a3   :  { %3009 = vmatpush.msra.mxu1 %v3008_v50  ;;  %3162 = vmatpush.msra.mxu3 %v6798_v4  ;;  %v3032_v5 = vand.u32 4294901760, %v3031_v59  ;;  %v3038_v44 = vand.u32 4294901760, %v3037_v54  ;;  %v3050_v50 = vand.u32 4294901760, %v3049_v40  ;;  %v7022_v59 = vand.u32 4294901760, %v175_v7 }
 0x1a4   :  { %2974 = vmatpush.msra.mxu0 %v6843_v24  ;;  %3116 = vmatpush.msra.mxu2 %v6852_v16  ;;  %v8148_v48 = vand.u32 4294901760, %v6939_v47  ;;  %v3044_v30 = vand.u32 4294901760, %v3043_v35  ;;  %v7031_v54 = vand.u32 4294901760, %v144_v42  ;;  %v3073_v35 = vsub.f32 %v6983_v19, %v8144_v37 }
 0x1a5   :  { %3015 = vmatpush.msra.mxu1 %v3014_v26  ;;  %3164 = vmatpush.msra.mxu3 %v6808_v9  ;;  %v7017_v26 = vsub.f32 %v146_v15, %v6979_v1  ;;  %v3062_v15 = vand.u32 4294901760, %v3061_v51  ;;  %v7047_v40 = vand.u32 4294901760, %v174_v22  ;;  %v3079_v51 = vsub.f32 %v6999_v34, %v8147_v43 }
 0x1a6   :  { %2976 = vmatpush.msra.mxu0 %v6868_v2  ;;  %3119 = vmatpush.msra.mxu2 %v6858_v49  ;;  %v3055_v57 = vsub.f32 %v6939_v47, %v8148_v48  ;;  %8311 = vst [vmem:[#allocation2_spill] sm:$0xff] %v7031_v54  ;;  %v7065_v37 = vsub.f32 %v144_v42, %v7031_v54 }
 0x1a7   :  { %3021 = vmatpush.msra.mxu1 %v3020_v8  ;;  %3166 = vmatpush.msra.mxu3 %v6821_v21  ;;  %v3067_v8 = vsub.f32 %v6971_v14, %v8145_v33  ;;  %v7082_v43 = vsub.f32 %v174_v22, %v7047_v40 }
 0x1a8   :  { %2978 = vmatpush.msra.mxu0 %v6884_v6  ;;  %3122 = vmatpush.msra.mxu2 %v6874_v46  ;;  %v3056_v38 = vand.u32 4294901760, %v3055_v57  ;;  %v7058_v57 = vsub.f32 %v175_v7, %v7022_v59  ;;  %v8157_v22 = vand.u32 4294901760, %v7065_v37 }
 0x1a9   :  { %3027 = vmatpush.msra.mxu1 %v3026_v63  ;;  %3168 = vmatpush.msra.mxu3 %v6832_v60  ;;  %v7037_v63 = vsub.f32 %v145_v27, %v7006_v23  ;;  %v172_v27 = vld [vmem:[%s8047_s1 + $0x4e0] sm:$0xff] }
 0x1aa   :  { %2980 = vmatpush.msra.mxu0 %v6898_v0  ;;  %3125 = vmatpush.msra.mxu2 %v6901_v58  ;;  %v8156_v61 = vand.u32 4294901760, %v7058_v57 }
 0x1ab   :  { %3033 = vmatpush.msra.mxu1 %v3032_v5  ;;  %3170 = vmatpush.msra.mxu3 %v6843_v24  ;;  %v173_v5 = vld [vmem:[%s8047_s1 + $0x4e8] sm:$0xff]  ;;  %v8154_v7 = vand.u32 4294901760, %v7037_v63 }
 0x1ac   :  { %2982 = vmatpush.msra.mxu0 %v6919_v10  ;;  %3128 = vmatpush.msra.mxu2 %v6922_v39  ;;  %v7067_v33 = vand.u32 4294901760, %v173_v5 }
 0x1ad   :  { %3039 = vmatpush.msra.mxu1 %v3038_v44  ;;  %3172 = vmatpush.msra.mxu3 %v6868_v2  ;;  %v8151_v44 = vand.u32 4294901760, %v7017_v26 }
 0x1ae   :  { %2984 = vmatpush.msra.mxu0 %v6935_v32  ;;  %3131 = vmatpush.msra.mxu2 %v6939_v47 }
 0x1af   :  { %3045 = vmatpush.msra.mxu1 %v3044_v30  ;;  %3174 = vmatpush.msra.mxu3 %v6884_v6  ;;  %v2998_v30 = vsub.f32 %v6991_v29, %v8158_v11  ;;  %v3085_v42 = vsub.f32 %v7017_v26, %v8151_v44  ;;  %v7095_v44 = vsub.f32 %v173_v5, %v7067_v33  ;;  %v7178_v11 = vand.u32 4294901760, %v166_v36 }
 0x1b0   :  { %2986 = vmatpush.msra.mxu0 %v6950_v17  ;;  %3134 = vmatpush.msra.mxu2 %v6954_v3 }
 0x1b1   :  { %3051 = vmatpush.msra.mxu1 %v3050_v50  ;;  %3176 = vmatpush.msra.mxu3 %v6898_v0  ;;  %v3068_v50 = vand.u32 4294901760, %v3067_v8  ;;  %v3074_v8 = vand.u32 4294901760, %v3073_v35  ;;  %v2999_v48 = vand.u32 4294901760, %v2998_v30  ;;  %v3080_v35 = vand.u32 4294901760, %v3079_v51 }
 0x1b2   :  { %2988 = vmatpush.msra.mxu0 %v6967_v13  ;;  %3137 = vmatpush.msra.mxu2 %v6971_v14  ;;  %v3091_v30 = vsub.f32 %v7037_v63, %v8154_v7  ;;  %v3086_v5 = vand.u32 4294901760, %v3085_v42  ;;  %v8160_v51 = vand.u32 4294901760, %v7082_v43  ;;  %v7117_v7 = vsub.f32 %v171_v31, %v7087_v20 }
 0x1b3   :  { %3057 = vmatpush.msra.mxu1 %v3056_v38  ;;  %3178 = vmatpush.msra.mxu3 %v6919_v10  ;;  %v7075_v38 = vand.u32 4294901760, %v172_v27  ;;  %v8159_v42 = vand.u32 4294901760, %v7095_v44 }
 0x1b4   :  { %2990 = vmatpush.msra.mxu0 %v6979_v1  ;;  %3140 = vmatpush.msra.mxu2 %v6983_v19  ;;  %v3092_v31 = vand.u32 4294901760, %v3091_v30 }
 0x1b5   :  { %3063 = vmatpush.msra.mxu1 %v3062_v15  ;;  %3180 = vmatpush.msra.mxu3 %v6935_v32  ;;  %v170_v15 = vld [vmem:[%s8047_s1 + $0x4d0] sm:$0xff]  ;;  %v7103_v12 = vsub.f32 %v172_v27, %v7075_v38  ;;  %v3348_v27 = vsub.f32 %v7058_v57, %v8156_v61 }
 0x1b6   :  { %2992 = vmatpush.msra.mxu0 %v7006_v23  ;;  %3143 = vmatpush.msra.mxu2 %v6999_v34  ;;  %v7110_v53 = vand.u32 4294901760, %v170_v15 }
 0x1b7   :  { %3069 = vmatpush.msra.mxu1 %v3068_v50  ;;  %3182 = vmatpush.msra.mxu3 %v6950_v17  ;;  %v169_v50 = vld [vmem:[%s8047_s1 + $0x4c8] sm:$0xff]  ;;  %v8161_v61 = vand.u32 4294901760, %v7103_v12  ;;  %v3349_v30 = vand.u32 4294901760, %v3348_v27  ;;  %v7161_v27 = vand.u32 4294901760, %v167_v56 }
 0x1b8   :  { %2994 = vmatpush.msra.mxu0 %v7031_v54  ;;  %3146 = vmatpush.msra.mxu2 %v7017_v26  ;;  %v7128_v25 = vand.u32 4294901760, %v169_v50 }
 0x1b9   :  { %3075 = vmatpush.msra.mxu1 %v3074_v8  ;;  %3184 = vmatpush.msra.mxu3 %v6967_v13  ;;  %v168_v8 = vld [vmem:[%s8047_s1 + $0x4c0] sm:$0xff]  ;;  %v3366_v62 = vsub.f32 %v7103_v12, %v8161_v61  ;;  %v8314_v61 = vand.u32 4294901760, %v7117_v7 }
 0x1ba   :  { %3000 = vmatmul.f32.vlgmr.msra.gmra.mxu0 %v2999_v48  ;;  %3149 = vmatpush.msra.mxu2 %v7037_v63  ;;  %v3097_v48 = vsub.f32 %v7065_v37, %v8157_v22  ;;  %v7144_v22 = vand.u32 4294901760, %v168_v8 }
 0x1bb   :  { %3201 = vmatpush.msrb.mxu0 %v3006_v45  ;;  %3081 = vmatpush.msra.mxu1 %v3080_v35  ;;  %v3354_v45 = vsub.f32 %v7082_v43, %v8160_v51  ;;  %v7142_v35 = vsub.f32 %v170_v15, %v7110_v53  ;;  %v3360_v15 = vsub.f32 %v7095_v44, %v8159_v42  ;;  %v8313_v42 = vand.u32 4294901760, %v6852_v16  ;;  %v164_v16 = vld [vmem:[%s8047_s1 + $0x4a0] sm:$0xff] }
 0x1bc   :  { %3186 = vmatpush.msra.mxu3 %v6979_v1  ;;  %3152 = vmatpush.msra.mxu2 %v7065_v37 }
 0x1bd   :  { %3205 = vmatpush.msrb.mxu0 %v3012_v52  ;;  %3087 = vmatpush.msra.mxu1 %v3086_v5  ;;  %v3098_v52 = vand.u32 4294901760, %v3097_v48  ;;  %v7159_v5 = vsub.f32 %v169_v50, %v7128_v25  ;;  %v8312_v48 = vand.u32 4294901760, %v6991_v29  ;;  %v3355_v50 = vand.u32 4294901760, %v3354_v45 }
 0x1be   :  { %3188 = vmatpush.msra.mxu3 %v7006_v23  ;;  %3155 = vmatmul.f32.vlgmr.msra.gmra.mxu2 %v6991_v29  ;;  %v8163_v51 = vand.u32 4294901760, %v7142_v35  ;;  %v8315_v29 = vand.u32 4294901760, %v6858_v49  ;;  %v7191_v45 = vsub.f32 %v167_v56, %v7161_v27 }
 0x1bf   :  { %3209 = vmatpush.msrb.mxu0 %v3018_v55  ;;  %3305 = vmatpush.msrb.mxu2 %v7022_v59  ;;  %v165_v55 = vld [vmem:[%s8047_s1 + $0x4a8] sm:$0xff] }
 0x1c0   :  { %3093 = vmatpush.msra.mxu1 %v3092_v31  ;;  %3190 = vmatpush.msra.mxu3 %v7031_v54  ;;  %v7176_v31 = vsub.f32 %v168_v8, %v7144_v22  ;;  %v3372_v54 = vsub.f32 %v7117_v7, %v8314_v61  ;;  %v8164_v8 = vand.u32 4294901760, %v7159_v5  ;;  %v3367_v61 = vand.u32 4294901760, %v3366_v62 }
 0x1c1   :  { %3194 = vmatmul.f32.vlgmr.msra.gmra.mxu3 %v8312_v48  ;;  %3213 = vmatpush.msrb.mxu0 %v8313_v42  ;;  %v3361_v42 = vand.u32 4294901760, %v3360_v15  ;;  %v7193_v48 = vand.u32 4294901760, %v165_v55  ;;  %v3378_v49 = vsub.f32 %v7142_v35, %v8163_v51  ;;  %v7208_v15 = vand.u32 4294901760, %v164_v16 }
 0x1c2   :  { %3307 = vmatpush.msrb.mxu2 %v7047_v40  ;;  %3350 = vmatpush.msrb.mxu3 %v3349_v30  ;;  %v163_v30 = vld [vmem:[%s8047_s1 + $0x498] sm:$0xff]  ;;  %v8165_v56 = vand.u32 4294901760, %v7176_v31  ;;  %v8316_v62 = vand.u32 4294901760, %v6874_v46  ;;  %v162_v46 = vld [vmem:[%s8047_s1 + $0x490] sm:$0xff] }
 0x1c3   :  { %3099 = vmatpush.msra.mxu1 %v3098_v52  ;;  %3217 = vmatpush.msrb.mxu0 %v8315_v29  ;;  %v7206_v52 = vsub.f32 %v166_v36, %v7178_v11  ;;  %v3373_v29 = vand.u32 4294901760, %v3372_v54  ;;  %v7219_v36 = vsub.f32 %v165_v55, %v7193_v48  ;;  %v7221_v51 = vand.u32 4294901760, %v163_v30 }
 0x1c4   :  { %3101 = vmatmul.f32.vlgmr.msra.gmra.mxu1 %v6961_v41  ;;  %3309 = vmatpush.msrb.mxu2 %v7067_v33  ;;  %v8317_v54 = vand.u32 4294901760, %v6901_v58  ;;  %v3390_v55 = vsub.f32 %v7176_v31, %v8165_v56  ;;  %v161_v58 = vld [vmem:[%s8047_s1 + $0x488] sm:$0xff] }
 0x1c5   :  { %3268 = vmatpush.msrb.mxu1 %v6788_v18  ;;  %3356 = vmatpush.msrb.mxu3 %v3355_v50  ;;  %v3384_v18 = vsub.f32 %v7159_v5, %v8164_v8  ;;  %v8166_v50 = vand.u32 4294901760, %v7191_v45  ;;  %v7236_v8 = vsub.f32 %v164_v16, %v7208_v15  ;;  %v7252_v56 = vsub.f32 %v163_v30, %v7221_v51 }
 0x1c6   :  { %3221 = vmatpush.msrb.mxu0 %v8316_v62  ;;  %3311 = vmatpush.msrb.mxu2 %v7075_v38  ;;  %v8167_v62 = vand.u32 4294901760, %v7206_v52 }
 0x1c7   :  { %3270 = vmatpush.msrb.mxu1 %v6798_v4  ;;  %3362 = vmatpush.msrb.mxu3 %v3361_v42  ;;  %v220_v4 = vperm.slane %v6906_v28, 1  ;;  %v3379_v42 = vand.u32 4294901760, %v3378_v49  ;;  %v3396_v16 = vsub.f32 %v7191_v45, %v8166_v50  ;;  %v3413_v50 = vand.u32 4294901760, %v7236_v8 }
 0x1c8   :  { %3225 = vmatpush.msrb.mxu0 %v8317_v54  ;;  %3313 = vmatpush.msrb.mxu2 %v7087_v20  ;;  %v8318_v54 = vand.u32 4294901760, %v6922_v39  ;;  %v160_v39 = vld [vmem:[%s8047_s1 + $0x480] sm:$0xff]  ;;  %v3402_v30 = vsub.f32 %v7206_v52, %v8167_v62  ;;  %v8320_v49 = vand.u32 4294901760, %v6954_v3  ;;  %v3419_v62 = vand.u32 4294901760, %v7252_v56 }
 0x1c9   :  { %3272 = vmatpush.msrb.mxu1 %v6808_v9  ;;  %3368 = vmatpush.msrb.mxu3 %v3367_v61  ;;  %v7244_v9 = vand.u32 4294901760, %v162_v46  ;;  %v3385_v61 = vand.u32 4294901760, %v3384_v18  ;;  %v3391_v18 = vand.u32 4294901760, %v3390_v55  ;;  %v8322_v3 = vand.u32 4294901760, %v6971_v14 }
 0x1ca   :  { %3229 = vmatpush.msrb.mxu0 %v8318_v54  ;;  %3315 = vmatpush.msrb.mxu2 %v7110_v53  ;;  %v8319_v54 = vand.u32 4294901760, %v6939_v47 }
 0x1cb   :  { %3274 = vmatpush.msrb.mxu1 %v6821_v21  ;;  %3374 = vmatpush.msrb.mxu3 %v3373_v29  ;;  %v7260_v21 = vand.u32 4294901760, %v161_v58  ;;  %v7262_v29 = vand.u32 4294901760, %v220_v4  ;;  %v7273_v47 = vsub.f32 %v162_v46, %v7244_v9 }
 0x1cc   :  { %3233 = vmatpush.msrb.mxu0 %v8319_v54  ;;  %3317 = vmatpush.msrb.mxu2 %v7128_v25  ;;  %v7275_v54 = vand.u32 4294901760, %v160_v39 }
 0x1cd   :  { %3276 = vmatpush.msrb.mxu1 %v6832_v60  ;;  %3380 = vmatpush.msrb.mxu3 %v3379_v42  ;;  %v3397_v60 = vand.u32 4294901760, %v3396_v16  ;;  %v8321_v42 = vand.u32 4294901760, %v7219_v36  ;;  %v7286_v46 = vsub.f32 %v161_v58, %v7260_v21  ;;  %v8323_v16 = vand.u32 4294901760, %v6983_v19 }
 0x1ce   :  { %3237 = vmatpush.msrb.mxu0 %v8320_v49  ;;  %3319 = vmatpush.msrb.mxu2 %v7144_v22  ;;  %v7289_v49 = vsub.f32 %v220_v4, %v7262_v29  ;;  %v3425_v14 = vand.u32 4294901760, %v7273_v47  ;;  %v7300_v58 = vsub.f32 %v160_v39, %v7275_v54  ;;  %v3420_v4 = vsub.f32 %v7252_v56, %v3419_v62 }
 0x1cf   :  { %3278 = vmatpush.msrb.mxu1 %v6843_v24  ;;  %3386 = vmatpush.msrb.mxu3 %v3385_v61  ;;  %v3408_v55 = vsub.f32 %v7219_v36, %v8321_v42  ;;  %v3403_v24 = vand.u32 4294901760, %v3402_v30  ;;  %v3414_v61 = vsub.f32 %v7236_v8, %v3413_v50  ;;  %v3431_v19 = vand.u32 4294901760, %v7286_v46 }
 0x1d0   :  { %3241 = vmatpush.msrb.mxu0 %v8322_v3  ;;  %3321 = vmatpush.msrb.mxu2 %v7161_v27  ;;  %v3338_v30 = vand.u32 4294901760, %v7289_v49  ;;  %v3421_v42 = vand.u32 4294901760, %v3420_v4 }
 0x1d1   :  { %3280 = vmatpush.msrb.mxu1 %v6868_v2  ;;  %3392 = vmatpush.msrb.mxu3 %v3391_v18  ;;  %v3409_v2 = vand.u32 4294901760, %v3408_v55  ;;  %v8324_v18 = vand.u32 4294901760, %v6999_v34  ;;  %v3415_v39 = vand.u32 4294901760, %v3414_v61  ;;  %v3426_v34 = vsub.f32 %v7273_v47, %v3425_v14 }
 0x1d2   :  { %3245 = vmatpush.msrb.mxu0 %v8323_v16  ;;  %3323 = vmatpush.msrb.mxu2 %v7178_v11  ;;  %v8326_v55 = vand.u32 4294901760, %v7037_v63 }
 0x1d3   :  { %3282 = vmatpush.msrb.mxu1 %v6884_v6  ;;  %3398 = vmatpush.msrb.mxu3 %v3397_v60  ;;  %v8325_v6 = vand.u32 4294901760, %v7017_v26  ;;  %v3437_v60 = vand.u32 4294901760, %v7300_v58  ;;  %v3339_v26 = vsub.f32 %v7289_v49, %v3338_v30  ;;  %v3427_v63 = vand.u32 4294901760, %v3426_v34 }
 0x1d4   :  { %3249 = vmatpush.msrb.mxu0 %v8324_v18  ;;  %3325 = vmatpush.msrb.mxu2 %v7193_v48  ;;  %v182_v18 = vld [vmem:[%s8047_s1 + $0x530] sm:$0xff] }
 0x1d5   :  { %3284 = vmatpush.msrb.mxu1 %v6898_v0  ;;  %3404 = vmatpush.msrb.mxu3 %v3403_v24  ;;  %v3432_v0 = vsub.f32 %v7286_v46, %v3431_v19  ;;  %v3438_v3 = vsub.f32 %v7300_v58, %v3437_v60 }
 0x1d6   :  { %3253 = vmatpush.msrb.mxu0 %v8325_v6  ;;  %3327 = vmatpush.msrb.mxu2 %v7208_v15 }
 0x1d7   :  { %3286 = vmatpush.msrb.mxu1 %v6919_v10  ;;  %3410 = vmatpush.msrb.mxu3 %v3409_v2  ;;  %v8327_v10 = vand.u32 4294901760, %v7065_v37  ;;  %v3433_v24 = vand.u32 4294901760, %v3432_v0  ;;  %v3439_v37 = vand.u32 4294901760, %v3438_v3 }
 0x1d8   :  { %3257 = vmatpush.msrb.mxu0 %v8326_v55  ;;  %3329 = vmatpush.msrb.mxu2 %v7221_v51  ;;  %v7527_v55 = vand.u32 4294901760, %v182_v18 }
 0x1d9   :  { %3288 = vmatpush.msrb.mxu1 %v6935_v32  ;;  %3416 = vmatpush.msrb.mxu3 %v3415_v39  ;;  %v3340_v32 = vand.u32 4294901760, %v3339_v26  ;;  %v180_v26 = vld [vmem:[%s8047_s1 + $0x520] sm:$0xff] }
 0x1da   :  { %3261 = vmatpush.msrb.mxu0 %v8327_v10  ;;  %3331 = vmatpush.msrb.mxu2 %v7244_v9  ;;  %v221_v10 = vperm.slane %v6906_v28, 2  ;;  %v179_v28 = vld [vmem:[%s8047_s1 + $0x518] sm:$0xff] }
 0x1db   :  { %3290 = vmatpush.msrb.mxu1 %v6950_v17  ;;  %3422 = vmatpush.msrb.mxu3 %v3421_v42  ;;  %v8328_v17 = vand.u32 4294901760, %v7058_v57 }
 0x1dc   :  { %3263 = vmatmul.f32.vlgmr.msrb.gmra.mxu0 %v6961_v41  ;;  %3333 = vmatpush.msrb.mxu2 %v7260_v21 }
 0x1dd   :  { %3448 = vmatpush.msra.mxu0 %v7058_v57  ;;  %3292 = vmatpush.msrb.mxu1 %v6967_v13  ;;  %v8329_v13 = vand.u32 4294901760, %v7082_v43  ;;  %v8331_v57 = vand.u32 4294901760, %v7095_v44 }
 0x1de   :  { %3428 = vmatpush.msrb.mxu3 %v3427_v63  ;;  %3335 = vmatpush.msrb.mxu2 %v7275_v54 }
 0x1df   :  { %3451 = vmatpush.msra.mxu0 %v7082_v43  ;;  %3294 = vmatpush.msrb.mxu1 %v6979_v1  ;;  %v8330_v1 = vld [vmem:[#allocation2_spill] sm:$0xff]  ;;  %v8337_v43 = vand.u32 4294901760, %v7191_v45 }
 0x1e0   :  { %3434 = vmatpush.msrb.mxu3 %v3433_v24  ;;  %3341 = vmatmul.f32.vlgmr.msrb.gmra.mxu2 %v3340_v32 }
 0x1e1   :  { %3454 = vmatpush.msra.mxu0 %v7095_v44  ;;  %3542 = vmatpush.msra.mxu2 %v8328_v17  ;;  %v8338_v44 = vand.u32 4294901760, %v7206_v52 }
 0x1e2   :  { %3296 = vmatpush.msrb.mxu1 %v7006_v23  ;;  %3440 = vmatpush.msrb.mxu3 %v3439_v37  ;;  %v8332_v23 = vand.u32 4294901760, %v7103_v12  ;;  %v7558_v37 = vand.u32 4294901760, %v180_v26 }
 0x1e3   :  { %3442 = vmatmul.f32.vlgmr.msrb.gmra.mxu3 %v7262_v29  ;;  %3457 = vmatpush.msra.mxu0 %v7103_v12  ;;  %v8335_v12 = vand.u32 4294901760, %v7159_v5 }
 0x1e4   :  { %3546 = vmatpush.msra.mxu2 %v8329_v13  ;;  %3609 = vmatpush.msra.mxu3 %v7022_v59  ;;  %v7562_v13 = vsub.f32 %v182_v18, %v7527_v55  ;;  %v208_v18 = vld [vmem:[%s8049_s2] sm:$0x1] }
 0x1e5   :  { %3298 = vmatpush.msrb.mxu1 %v8330_v1  ;;  %3460 = vmatpush.msra.mxu0 %v7117_v7 }
 0x1e6   :  { %3300 = vmatmul.f32.vlgmr.msrb.gmra.mxu1 %v6961_v41  ;;  %3550 = vmatpush.msra.mxu2 %v8331_v57  ;;  %v8333_v41 = vand.u32 4294901760, %v7117_v7  ;;  %v189_v7 = vld [vmem:[%s8047_s1 + $0x568] sm:$0xff]  ;;  %v178_v57 = vld [vmem:[%s8047_s1 + $0x510] sm:$0xff] }
 0x1e7   :  { %3501 = vmatpush.msra.mxu1 %v7022_v59  ;;  %3611 = vmatpush.msra.mxu3 %v7047_v40  ;;  %v8334_v59 = vand.u32 4294901760, %v7142_v35 }
 0x1e8   :  { %3463 = vmatpush.msra.mxu0 %v7142_v35  ;;  %3554 = vmatpush.msra.mxu2 %v8332_v23  ;;  %v7421_v35 = vand.u32 4294901760, %v189_v7  ;;  %v7569_v23 = vand.u32 4294901760, %v221_v10 }
 0x1e9   :  { %3503 = vmatpush.msra.mxu1 %v7047_v40  ;;  %3613 = vmatpush.msra.mxu3 %v7067_v33 }
 0x1ea   :  { %3466 = vmatpush.msra.mxu0 %v7159_v5  ;;  %3558 = vmatpush.msra.mxu2 %v8333_v41 }
 0x1eb   :  { %3505 = vmatpush.msra.mxu1 %v7067_v33  ;;  %3615 = vmatpush.msra.mxu3 %v7075_v38  ;;  %v8336_v33 = vand.u32 4294901760, %v7176_v31 }
 0x1ec   :  { %3469 = vmatpush.msra.mxu0 %v7176_v31  ;;  %3562 = vmatpush.msra.mxu2 %v8334_v59  ;;  %v7575_v59 = vand.u32 4294901760, %v179_v28 }
 0x1ed   :  { %3507 = vmatpush.msra.mxu1 %v7075_v38  ;;  %3617 = vmatpush.msra.mxu3 %v7087_v20 }
 0x1ee   :  { %3472 = vmatpush.msra.mxu0 %v7191_v45  ;;  %3566 = vmatpush.msra.mxu2 %v8335_v12 }
 0x1ef   :  { %3509 = vmatpush.msra.mxu1 %v7087_v20  ;;  %3619 = vmatpush.msra.mxu3 %v7110_v53  ;;  %v191_v20 = vld [vmem:[%s8047_s1 + $0x578] sm:$0xff] }
 0x1f0   :  { %3475 = vmatpush.msra.mxu0 %v7206_v52  ;;  %3570 = vmatpush.msra.mxu2 %v8336_v33  ;;  %v7401_v40 = vand.u32 4294901760, %v191_v20 }
 0x1f1   :  { %3511 = vmatpush.msra.mxu1 %v7110_v53  ;;  %3621 = vmatpush.msra.mxu3 %v7128_v25  ;;  %v190_v53 = vld [vmem:[%s8047_s1 + $0x570] sm:$0xff] }
 0x1f2   :  { %3478 = vmatpush.msra.mxu0 %v7219_v36  ;;  %3574 = vmatpush.msra.mxu2 %v8337_v43  ;;  %v7411_v38 = vand.u32 4294901760, %v190_v53  ;;  %v7424_v5 = vsub.f32 %v191_v20, %v7401_v40 }
 0x1f3   :  { %3513 = vmatpush.msra.mxu1 %v7128_v25  ;;  %3623 = vmatpush.msra.mxu3 %v7144_v22  ;;  %v8339_v25 = vand.u32 4294901760, %v7219_v36 }
 0x1f4   :  { %3481 = vmatpush.msra.mxu0 %v7236_v8  ;;  %3578 = vmatpush.msra.mxu2 %v8338_v44  ;;  %v7437_v31 = vsub.f32 %v190_v53, %v7411_v38  ;;  %v186_v8 = vld [vmem:[%s8047_s1 + $0x550] sm:$0xff]  ;;  %v7587_v44 = vand.u32 4294901760, %v178_v57  ;;  %v8170_v53 = vand.u32 4294901760, %v7562_v13 }
 0x1f5   :  { %3515 = vmatpush.msra.mxu1 %v7144_v22  ;;  %3625 = vmatpush.msra.mxu3 %v7161_v27  ;;  %v188_v22 = vld [vmem:[%s8047_s1 + $0x560] sm:$0xff]  ;;  %v7456_v52 = vand.u32 4294901760, %v186_v8 }
 0x1f6   :  { %3484 = vmatpush.msra.mxu0 %v7252_v56  ;;  %3582 = vmatpush.msra.mxu2 %v8339_v25  ;;  %v7451_v56 = vsub.f32 %v189_v7, %v7421_v35  ;;  %v7591_v25 = vsub.f32 %v180_v26, %v7558_v37  ;;  %v177_v7 = vld [vmem:[%s8047_s1 + $0x508] sm:$0xff] }
 0x1f7   :  { %3517 = vmatpush.msra.mxu1 %v7161_v27  ;;  %3627 = vmatpush.msra.mxu3 %v7178_v11  ;;  %v187_v27 = vld [vmem:[%s8047_s1 + $0x558] sm:$0xff]  ;;  %v7487_v16 = vsub.f32 %v186_v8, %v7456_v52 }
 0x1f8   :  { %3487 = vmatpush.msra.mxu0 %v7273_v47  ;;  %3586 = vmatpush.msra.mxu2 %v3413_v50  ;;  %v7445_v45 = vand.u32 4294901760, %v187_v27  ;;  %v185_v50 = vld [vmem:[%s8047_s1 + $0x548] sm:$0xff]  ;;  %v184_v47 = vld [vmem:[%s8047_s1 + $0x540] sm:$0xff]  ;;  %v8182_v61 = vand.u32 4294901760, %v7451_v56 }
 0x1f9   :  { %3519 = vmatpush.msra.mxu1 %v7178_v11  ;;  %3629 = vmatpush.msra.mxu3 %v7193_v48  ;;  %v7434_v11 = vand.u32 4294901760, %v188_v22  ;;  %v8175_v34 = vand.u32 4294901760, %v7487_v16 }
 0x1fa   :  { %3490 = vmatpush.msra.mxu0 %v7286_v46  ;;  %3590 = vmatpush.msra.mxu2 %v3419_v62  ;;  %v7471_v62 = vsub.f32 %v187_v27, %v7445_v45  ;;  %v7481_v46 = vand.u32 4294901760, %v185_v50  ;;  %v3701_v39 = vsub.f32 %v7451_v56, %v8182_v61 }
 0x1fb   :  { %3521 = vmatpush.msra.mxu1 %v7193_v48  ;;  %3631 = vmatpush.msra.mxu3 %v7208_v15  ;;  %v3688_v48 = vand.u32 4294901760, %v7424_v5  ;;  %v7465_v36 = vsub.f32 %v188_v22, %v7434_v11  ;;  %v3719_v24 = vsub.f32 %v7487_v16, %v8175_v34  ;;  %v7599_v22 = vsub.f32 %v221_v10, %v7569_v23  ;;  %v206_v10 = vld [vmem:[%s8047_s1 + $0x5f0] sm:$0xff] }
 0x1fc   :  { %3493 = vmatpush.msra.mxu0 %v7300_v58  ;;  %3594 = vmatpush.msra.mxu2 %v3425_v14  ;;  %v183_v14 = vld [vmem:[%s8047_s1 + $0x538] sm:$0xff]  ;;  %v7497_v58 = vand.u32 4294901760, %v184_v47  ;;  %v8177_v4 = vand.u32 4294901760, %v7471_v62  ;;  %v3702_v63 = vand.u32 4294901760, %v3701_v39 }
 0x1fd   :  { %3523 = vmatpush.msra.mxu1 %v7208_v15  ;;  %3633 = vmatpush.msra.mxu3 %v7221_v51  ;;  %v3694_v15 = vand.u32 4294901760, %v7437_v31  ;;  %v8178_v2 = vand.u32 4294901760, %v7465_v36  ;;  %v7511_v6 = vand.u32 4294901760, %v183_v14  ;;  %v3720_v43 = vand.u32 4294901760, %v3719_v24 }
 0x1fe   :  { %3496 = vmatmul.f32.vlgmr.msra.gmra.mxu0 %v7289_v49  ;;  %3598 = vmatpush.msra.mxu2 %v3431_v19  ;;  %v7530_v0 = vsub.f32 %v184_v47, %v7497_v58  ;;  %v7607_v47 = vsub.f32 %v179_v28, %v7575_v59 }
 0x1ff   :  { %3646 = vmatpush.msrb.mxu0 %v7401_v40  ;;  %3525 = vmatpush.msra.mxu1 %v7221_v51  ;;  %v3689_v51 = vsub.f32 %v7424_v5, %v3688_v48  ;;  %v3707_v42 = vsub.f32 %v7465_v36, %v8178_v2 }
 0x200   :  { %3635 = vmatpush.msra.mxu3 %v7244_v9  ;;  %3602 = vmatpush.msra.mxu2 %v3437_v60  ;;  %v8172_v17 = vand.u32 4294901760, %v7530_v0 }
 0x201   :  { %3648 = vmatpush.msrb.mxu0 %v7411_v38  ;;  %3527 = vmatpush.msra.mxu1 %v7244_v9  ;;  %v3695_v9 = vsub.f32 %v7437_v31, %v3694_v15  ;;  %v3690_v19 = vand.u32 4294901760, %v3689_v51  ;;  %v3708_v32 = vand.u32 4294901760, %v3707_v42  ;;  %v207_v51 = vld [vmem:[%s8047_s1 + $0x5f8] sm:$0xff]  ;;  %v7628_v42 = vsub.f32 %v178_v57, %v7587_v44 }
 0x202   :  { %3637 = vmatpush.msra.mxu3 %v7260_v21  ;;  %3604 = vmatmul.f32.vlgmr.msra.gmra.mxu2 %v7262_v29  ;;  %v3731_v20 = vsub.f32 %v7530_v0, %v8172_v17  ;;  %v7633_v26 = vand.u32 4294901760, %v207_v51 }
 0x203   :  { %3650 = vmatpush.msrb.mxu0 %v7421_v35  ;;  %3789 = vmatpush.msrb.mxu2 %v7424_v5  ;;  %v3696_v60 = vand.u32 4294901760, %v3695_v9  ;;  %v176_v9 = vld [vmem:[%s8047_s1 + $0x500] sm:$0xff]  ;;  %v199_v5 = vld [vmem:[%s8047_s1 + $0x5b8] sm:$0xff] }
 0x204   :  { %3529 = vmatpush.msra.mxu1 %v7260_v21  ;;  %3639 = vmatpush.msra.mxu3 %v7275_v54  ;;  %v7514_v21 = vsub.f32 %v185_v50, %v7481_v46  ;;  %v3732_v39 = vand.u32 4294901760, %v3731_v20  ;;  %8340 = vst [vmem:[#allocation3_spill] sm:$0xff] %v7633_v26  ;;  %v7642_v28 = vand.u32 4294901760, %v176_v9 }
 0x205   :  { %3641 = vmatmul.f32.vlgmr.msra.gmra.mxu3 %v7262_v29  ;;  %3652 = vmatpush.msrb.mxu0 %v7434_v11  ;;  %v181_v29 = vld [vmem:[%s8047_s1 + $0x528] sm:$0xff] }
 0x206   :  { %3792 = vmatpush.msrb.mxu2 %v7437_v31  ;;  %3842 = vmatpush.msrb.mxu3 %v7401_v40  ;;  %v7543_v3 = vand.u32 4294901760, %v181_v29  ;;  %v8174_v49 = vand.u32 4294901760, %v7514_v21  ;;  %8341 = vst [vmem:[#allocation2_spill] sm:$0xff] %v7642_v28  ;;  %v198_v31 = vld [vmem:[%s8047_s1 + $0x5b0] sm:$0xff] }
 0x207   :  { %3531 = vmatpush.msra.mxu1 %v7275_v54  ;;  %3654 = vmatpush.msrb.mxu0 %v7445_v45  ;;  %v3713_v54 = vsub.f32 %v7471_v62, %v8177_v4 }
 0x208   :  { %3535 = vmatmul.f32.vlgmr.msra.gmra.mxu1 %v3338_v30  ;;  %3795 = vmatpush.msrb.mxu2 %v7451_v56  ;;  %v7547_v30 = vsub.f32 %v183_v14, %v7511_v6  ;;  %v3725_v41 = vsub.f32 %v7514_v21, %v8174_v49  ;;  %v7579_v33 = vsub.f32 %v181_v29, %v7543_v3  ;;  %v7614_v14 = vand.u32 4294901760, %v177_v7 }
 0x209   :  { %3691 = vmatpush.msrb.mxu1 %v3690_v19  ;;  %3844 = vmatpush.msrb.mxu3 %v7411_v38  ;;  %v3714_v1 = vand.u32 4294901760, %v3713_v54  ;;  %v273_v19 = vpop.f32.mrf.mxu0  ;;  %v3743_v29 = vsub.f32 %v7562_v13, %v8170_v53  ;;  %v8180_v54 = vand.u32 4294901760, %v7599_v22 }
 0x20a   :  { %3656 = vmatpush.msrb.mxu0 %v7456_v52  ;;  %3798 = vmatpush.msrb.mxu2 %v7465_v36  ;;  %v8171_v12 = vand.u32 4294901760, %v7547_v30  ;;  %v3726_v27 = vand.u32 4294901760, %v3725_v41  ;;  %v8169_v50 = vand.u32 4294901760, %v7579_v33  ;;  %v7648_v57 = vsub.f32 %v177_v7, %v7614_v14  ;;  %v205_v41 = vld [vmem:[%s8047_s1 + $0x5e8] sm:$0xff]  ;;  %v204_v7 = vld [vmem:[%s8047_s1 + $0x5e0] sm:$0xff] }
 0x20b   :  { %3697 = vmatpush.msrb.mxu1 %v3696_v60  ;;  %3846 = vmatpush.msrb.mxu3 %v7421_v35  ;;  %v8168_v60 = vand.u32 4294901760, %v7591_v25  ;;  %v3744_v20 = vand.u32 4294901760, %v3743_v29  ;;  %v7678_v53 = vand.u32 4294901760, %v205_v41 }
 0x20c   :  { %3658 = vmatpush.msrb.mxu0 %v7481_v46  ;;  %3801 = vmatpush.msrb.mxu2 %v7471_v62  ;;  %v3737_v8 = vsub.f32 %v7547_v30, %v8171_v12  ;;  %v3749_v24 = vsub.f32 %v7579_v33, %v8169_v50  ;;  %v7676_v50 = vsub.f32 %v176_v9, %v7642_v28  ;;  %v203_v12 = vld [vmem:[%s8047_s1 + $0x5d8] sm:$0xff] }
 0x20d   :  { %3703 = vmatpush.msrb.mxu1 %v3702_v63  ;;  %3848 = vmatpush.msrb.mxu3 %v7434_v11  ;;  %v7698_v34 = vand.u32 4294901760, %v203_v12 }
 0x20e   :  { %3660 = vmatpush.msrb.mxu0 %v7497_v58  ;;  %3804 = vmatpush.msrb.mxu2 %v7487_v16  ;;  %v3738_v63 = vand.u32 4294901760, %v3737_v8  ;;  %v8176_v8 = vand.u32 4294901760, %v7628_v42  ;;  %v3750_v29 = vand.u32 4294901760, %v3749_v24  ;;  %v428_v24 = vpop.f32.mrf.mxu2 }
 0x20f   :  { %3709 = vmatpush.msrb.mxu1 %v3708_v32  ;;  %3850 = vmatpush.msrb.mxu3 %v7445_v45  ;;  %v8173_v32 = vand.u32 4294901760, %v7607_v47 }
 0x210   :  { %3662 = vmatpush.msrb.mxu0 %v7511_v6  ;;  %3807 = vmatpush.msrb.mxu2 %v7514_v21 }
 0x211   :  { %3715 = vmatpush.msrb.mxu1 %v3714_v1  ;;  %3852 = vmatpush.msrb.mxu3 %v7456_v52  ;;  %v274_v1 = vadd.f32 %v273_v19, %v208_v18  ;;  %v7658_v18 = vand.u32 4294901760, %v206_v10  ;;  %v3680_v19 = vsub.f32 %v7599_v22, %v8180_v54 }
 0x212   :  { %3664 = vmatpush.msrb.mxu0 %v7527_v55  ;;  %3810 = vmatpush.msrb.mxu2 %v7530_v0 }
 0x213   :  { %3721 = vmatpush.msrb.mxu1 %v3720_v43  ;;  %3854 = vmatpush.msrb.mxu3 %v7481_v46  ;;  %v374_v43 = vpop.f32.mrf.mxu1  ;;  %v7693_v49 = vsub.f32 %v206_v10, %v7658_v18  ;;  %v8183_v10 = vand.u32 4294901760, %v7676_v50 }
 0x214   :  { %3666 = vmatpush.msrb.mxu0 %v7543_v3  ;;  %3813 = vmatpush.msrb.mxu2 %v7547_v30  ;;  %v375_v17 = vadd.f32 %v374_v43, %v274_v1  ;;  %v3681_v1 = vand.u32 4294901760, %v3680_v19 }
 0x215   :  { %3727 = vmatpush.msrb.mxu1 %v3726_v27  ;;  %3856 = vmatpush.msrb.mxu3 %v7497_v58  ;;  %v3755_v27 = vsub.f32 %v7591_v25, %v8168_v60  ;;  %v3761_v60 = vsub.f32 %v7607_v47, %v8173_v32  ;;  %v3767_v32 = vsub.f32 %v7628_v42, %v8176_v8 }
 0x216   :  { %3668 = vmatpush.msrb.mxu0 %v7558_v37  ;;  %3816 = vmatpush.msrb.mxu2 %v7562_v13  ;;  %v7706_v8 = vsub.f32 %v205_v41, %v7678_v53  ;;  %v429_v4 = vadd.f32 %v428_v24, %v375_v17  ;;  %v8184_v41 = vand.u32 4294901760, %v7693_v49 }
 0x217   :  { %3733 = vmatpush.msrb.mxu1 %v3732_v39  ;;  %3858 = vmatpush.msrb.mxu3 %v7511_v6  ;;  %v7669_v39 = vsub.f32 %v207_v51, %v7633_v26  ;;  %v8179_v51 = vand.u32 4294901760, %v7648_v57  ;;  %v3756_v9 = vand.u32 4294901760, %v3755_v27  ;;  %v3762_v27 = vand.u32 4294901760, %v3761_v60  ;;  %v201_v60 = vld [vmem:[%s8047_s1 + $0x5c8] sm:$0xff] }
 0x218   :  { %3670 = vmatpush.msrb.mxu0 %v7575_v59  ;;  %3819 = vmatpush.msrb.mxu2 %v7579_v33  ;;  %v3768_v17 = vand.u32 4294901760, %v3767_v32  ;;  %v3779_v32 = vsub.f32 %v7676_v50, %v8183_v10  ;;  %v7739_v54 = vand.u32 4294901760, %v201_v60 }
 0x219   :  { %3739 = vmatpush.msrb.mxu1 %v3738_v63  ;;  %3860 = vmatpush.msrb.mxu3 %v7527_v55  ;;  %v7686_v63 = vand.u32 4294901760, %v204_v7  ;;  %v8181_v43 = vand.u32 4294901760, %v7669_v39  ;;  %v3773_v19 = vsub.f32 %v7648_v57, %v8179_v51  ;;  %v7728_v51 = vsub.f32 %v203_v12, %v7698_v34 }
 0x21a   :  { %3672 = vmatpush.msrb.mxu0 %v7587_v44  ;;  %3822 = vmatpush.msrb.mxu2 %v7591_v25  ;;  %8343 = vst [vmem:[#allocation5_spill] sm:$0xff] %v7739_v54 }
 0x21b   :  { %3745 = vmatpush.msrb.mxu1 %v3744_v20  ;;  %3862 = vmatpush.msrb.mxu3 %v7543_v3  ;;  %v202_v20 = vld [vmem:[%s8047_s1 + $0x5d0] sm:$0xff]  ;;  %v7714_v2 = vsub.f32 %v204_v7, %v7686_v63  ;;  %v4030_v7 = vsub.f32 %v7669_v39, %v8181_v43  ;;  %v3774_v12 = vand.u32 4294901760, %v3773_v19 }
 0x21c   :  { %3674 = vmatpush.msrb.mxu0 %v7614_v14  ;;  %3825 = vmatpush.msrb.mxu2 %v7607_v47  ;;  %v7721_v24 = vand.u32 4294901760, %v202_v20 }
 0x21d   :  { %3751 = vmatpush.msrb.mxu1 %v3750_v29  ;;  %3864 = vmatpush.msrb.mxu3 %v7558_v37  ;;  %v467_v29 = vpop.f32.mrf.mxu3  ;;  %v8188_v61 = vand.u32 4294901760, %v7714_v2  ;;  %v4031_v19 = vand.u32 4294901760, %v4030_v7  ;;  %v7772_v7 = vand.u32 4294901760, %v199_v5 }
 0x21e   :  { %3676 = vmatpush.msrb.mxu0 %v7642_v28  ;;  %3828 = vmatpush.msrb.mxu2 %v7628_v42  ;;  %8342 = vst [vmem:[#allocation4_spill] sm:$0xff] %v7721_v24  ;;  %v468_v43 = vadd.f32 %v467_v29, %v429_v4  ;;  %v4036_v4 = vsub.f32 %v7693_v49, %v8184_v41 }
 0x21f   :  { %3757 = vmatpush.msrb.mxu1 %v3756_v9  ;;  %3866 = vmatpush.msrb.mxu3 %v7575_v59  ;;  %v200_v9 = vld [vmem:[%s8047_s1 + $0x5c0] sm:$0xff]  ;;  %v7770_v41 = vsub.f32 %v201_v60, %v7739_v54  ;;  %v8346_v60 = vand.u32 4294901760, %v7465_v36 }
 0x220   :  { %3682 = vmatmul.f32.vlgmr.msrb.gmra.mxu0 %v3681_v1  ;;  %3831 = vmatpush.msrb.mxu2 %v7648_v57  ;;  %v8185_v1 = vand.u32 4294901760, %v7706_v8  ;;  %v7755_v29 = vand.u32 4294901760, %v200_v9  ;;  %v196_v36 = vld [vmem:[%s8047_s1 + $0x5a0] sm:$0xff] }
 0x221   :  { %3883 = vmatpush.msra.mxu0 %v3688_v48  ;;  %3763 = vmatpush.msrb.mxu1 %v3762_v27  ;;  %v536_v48 = vpop.f32.mrf.mxu0  ;;  %v7753_v27 = vsub.f32 %v202_v20, %v7721_v24  ;;  %v3780_v20 = vand.u32 4294901760, %v3779_v32  ;;  %v197_v32 = vld [vmem:[%s8047_s1 + $0x5a8] sm:$0xff] }
 0x222   :  { %3868 = vmatpush.msrb.mxu3 %v7587_v44  ;;  %3834 = vmatpush.msrb.mxu2 %v7676_v50  ;;  %v537_v10 = vadd.f32 %v536_v48, %v468_v43  ;;  %v7789_v48 = vand.u32 4294901760, %v198_v31 }
 0x223   :  { %3887 = vmatpush.msra.mxu0 %v3694_v15  ;;  %3769 = vmatpush.msrb.mxu1 %v3768_v17  ;;  %v8344_v15 = vand.u32 4294901760, %v7451_v56  ;;  %v4042_v17 = vsub.f32 %v7706_v8, %v8185_v1  ;;  %v4048_v56 = vsub.f32 %v7714_v2, %v8188_v61  ;;  %v8345_v1 = vand.u32 4294901760, %v7599_v22 }
 0x224   :  { %3870 = vmatpush.msrb.mxu3 %v7614_v14  ;;  %3837 = vmatmul.f32.vlgmr.msrb.gmra.mxu2 %v7599_v22  ;;  %v8190_v43 = vand.u32 4294901760, %v7753_v27  ;;  %v8347_v61 = vand.u32 4294901760, %v7728_v51  ;;  %v8348_v22 = vand.u32 4294901760, %v7471_v62  ;;  %v614_v62 = vpop.f32.mrf.mxu2 }
 0x225   :  { %3891 = vmatpush.msra.mxu0 %v8344_v15  ;;  %3987 = vmatpush.msra.mxu2 %v7633_v26  ;;  %v573_v15 = vpop.f32.mrf.mxu1  ;;  %v4037_v26 = vand.u32 4294901760, %v4036_v4  ;;  %v7802_v4 = vsub.f32 %v199_v5, %v7772_v7 }
 0x226   :  { %3775 = vmatpush.msrb.mxu1 %v3774_v12  ;;  %3872 = vmatpush.msrb.mxu3 %v7642_v28  ;;  %v7787_v12 = vsub.f32 %v200_v9, %v7755_v29  ;;  %v4054_v28 = vsub.f32 %v7728_v51, %v8347_v61  ;;  %v8191_v9 = vand.u32 4294901760, %v7770_v41  ;;  %v4049_v61 = vand.u32 4294901760, %v4048_v56 }
 0x227   :  { %3876 = vmatmul.f32.vlgmr.msrb.gmra.mxu3 %v8345_v1  ;;  %3895 = vmatpush.msra.mxu0 %v8346_v60  ;;  %v4043_v1 = vand.u32 4294901760, %v4042_v17  ;;  %v7804_v60 = vand.u32 4294901760, %v197_v32  ;;  %v4060_v5 = vsub.f32 %v7753_v27, %v8190_v43  ;;  %v8349_v56 = vand.u32 4294901760, %v7487_v16  ;;  %v194_v16 = vld [vmem:[%s8047_s1 + $0x590] sm:$0xff] }
 0x228   :  { %3989 = vmatpush.msra.mxu2 %v7658_v18  ;;  %4032 = vmatpush.msra.mxu3 %v4031_v19  ;;  %v574_v19 = vadd.f32 %v573_v15, %v537_v10  ;;  %v8192_v17 = vand.u32 4294901760, %v7787_v12  ;;  %v7817_v10 = vsub.f32 %v198_v31, %v7789_v48  ;;  %v7819_v15 = vand.u32 4294901760, %v196_v36 }
 0x229   :  { %3781 = vmatpush.msrb.mxu1 %v3780_v20  ;;  %3899 = vmatpush.msra.mxu0 %v8348_v22  ;;  %v195_v20 = vld [vmem:[%s8047_s1 + $0x598] sm:$0xff]  ;;  %v4055_v22 = vand.u32 4294901760, %v4054_v28  ;;  %v7830_v31 = vsub.f32 %v197_v32, %v7804_v60  ;;  %v8350_v28 = vand.u32 4294901760, %v7514_v21  ;;  %v4061_v32 = vand.u32 4294901760, %v4060_v5 }
 0x22a   :  { %3783 = vmatmul.f32.vlgmr.msrb.gmra.mxu1 %v7569_v23  ;;  %3991 = vmatpush.msra.mxu2 %v7678_v53  ;;  %v7832_v43 = vand.u32 4294901760, %v195_v20  ;;  %v7849_v21 = vsub.f32 %v196_v36, %v7819_v15 }
 0x22b   :  { %3950 = vmatpush.msra.mxu1 %v7401_v40  ;;  %4038 = vmatpush.msra.mxu3 %v4037_v26  ;;  %v4066_v40 = vsub.f32 %v7770_v41, %v8191_v9  ;;  %v715_v9 = vpop.f32.mrf.mxu3  ;;  %v4072_v26 = vsub.f32 %v7787_v12, %v8192_v17 }
 0x22c   :  { %3903 = vmatpush.msra.mxu0 %v8349_v56  ;;  %3993 = vmatpush.msra.mxu2 %v7686_v63  ;;  %v615_v56 = vadd.f32 %v614_v62, %v574_v19  ;;  %v193_v62 = vld [vmem:[%s8047_s1 + $0x588] sm:$0xff]  ;;  %v7865_v19 = vsub.f32 %v195_v20, %v7832_v43 }
 0x22d   :  { %3952 = vmatpush.msra.mxu1 %v7411_v38  ;;  %4044 = vmatpush.msra.mxu3 %v4043_v1  ;;  %v4357_v38 = vld [vmem:[%s8048_s0 + $0x8] sm:$0xf]  ;;  %v4067_v5 = vand.u32 4294901760, %v4066_v40  ;;  %v808_v40 = vpop.f32.mrf.mxu1  ;;  %v4073_v20 = vand.u32 4294901760, %v4072_v26  ;;  %v8356_v26 = vand.u32 4294901760, %v7830_v31 }
 0x22e   :  { %3907 = vmatpush.msra.mxu0 %v8350_v28  ;;  %3995 = vmatpush.msra.mxu2 %v7698_v34  ;;  %v222_v1 = vperm.slane %v4357_v38, 3  ;;  %v8351_v28 = vand.u32 4294901760, %v7530_v0  ;;  %v8352_v38 = vand.u32 4294901760, %v7802_v4  ;;  %v192_v0 = vld [vmem:[%s8047_s1 + $0x580] sm:$0xff] }
 0x22f   :  { %3954 = vmatpush.msra.mxu1 %v7421_v35  ;;  %4050 = vmatpush.msra.mxu3 %v4049_v61  ;;  %v7857_v35 = vand.u32 4294901760, %v194_v16  ;;  %v769_v61 = vpop.f32.mrf.mxu0 }
 0x230   :  { %3911 = vmatpush.msra.mxu0 %v8351_v28  ;;  %3997 = vmatpush.msra.mxu2 %v7721_v24  ;;  %v4078_v36 = vsub.f32 %v7802_v4, %v8352_v38  ;;  %v716_v28 = vadd.f32 %v715_v9, %v615_v56  ;;  %v8353_v24 = vand.u32 4294901760, %v7547_v30  ;;  %v8354_v38 = vand.u32 4294901760, %v7817_v10 }
 0x231   :  { %3956 = vmatpush.msra.mxu1 %v7434_v11  ;;  %4056 = vmatpush.msra.mxu3 %v4055_v22  ;;  %v7873_v11 = vand.u32 4294901760, %v193_v62  ;;  %v7875_v22 = vand.u32 4294901760, %v222_v1  ;;  %v4095_v9 = vand.u32 4294901760, %v7849_v21  ;;  %v8355_v30 = vand.u32 4294901760, %v7562_v13 }
 0x232   :  { %3915 = vmatpush.msra.mxu0 %v8353_v24  ;;  %3999 = vmatpush.msra.mxu2 %v7739_v54  ;;  %v4084_v17 = vsub.f32 %v7817_v10, %v8354_v38  ;;  %v770_v56 = vadd.f32 %v769_v61, %v716_v28  ;;  %v7886_v24 = vsub.f32 %v194_v16, %v7857_v35  ;;  %v7888_v54 = vand.u32 4294901760, %v192_v0 }
 0x233   :  { %3958 = vmatpush.msra.mxu1 %v7445_v45  ;;  %4062 = vmatpush.msra.mxu3 %v4061_v32  ;;  %v4079_v45 = vand.u32 4294901760, %v4078_v36  ;;  %v4090_v32 = vsub.f32 %v7830_v31, %v8356_v26  ;;  %v4101_v61 = vand.u32 4294901760, %v7865_v19  ;;  %v8357_v13 = vand.u32 4294901760, %v7579_v33 }
 0x234   :  { %3919 = vmatpush.msra.mxu0 %v8355_v30  ;;  %4001 = vmatpush.msra.mxu2 %v7755_v29  ;;  %v809_v28 = vadd.f32 %v808_v40, %v770_v56  ;;  %v7899_v16 = vsub.f32 %v193_v62, %v7873_v11  ;;  %v7902_v38 = vsub.f32 %v222_v1, %v7875_v22  ;;  %v8358_v33 = vand.u32 4294901760, %v7591_v25 }
 0x235   :  { %3960 = vmatpush.msra.mxu1 %v7456_v52  ;;  %4068 = vmatpush.msra.mxu3 %v4067_v5  ;;  %v877_v52 = vpop.f32.mrf.mxu2  ;;  %v4085_v5 = vand.u32 4294901760, %v4084_v17  ;;  %v4096_v36 = vsub.f32 %v7849_v21, %v4095_v9  ;;  %v4107_v62 = vand.u32 4294901760, %v7886_v24  ;;  %v7913_v40 = vsub.f32 %v192_v0, %v7888_v54  ;;  %v914_v0 = vpop.f32.mrf.mxu3 }
 0x236   :  { %3923 = vmatpush.msra.mxu0 %v8357_v13  ;;  %4003 = vmatpush.msra.mxu2 %v7772_v7  ;;  %v4102_v17 = vsub.f32 %v7865_v19, %v4101_v61  ;;  %v878_v1 = vadd.f32 %v877_v52, %v809_v28  ;;  %v4113_v25 = vand.u32 4294901760, %v7899_v16  ;;  %v4020_v56 = vand.u32 4294901760, %v7902_v38  ;;  %v1056_v52 = vpop.f32.mrf.mxu1 }
 0x237   :  { %3962 = vmatpush.msra.mxu1 %v7481_v46  ;;  %4074 = vmatpush.msra.mxu3 %v4073_v20  ;;  %v4091_v46 = vand.u32 4294901760, %v4090_v32  ;;  %v8359_v20 = vand.u32 4294901760, %v7607_v47  ;;  %v8360_v30 = vand.u32 4294901760, %v7628_v42  ;;  %v4108_v47 = vsub.f32 %v7886_v24, %v4107_v62  ;;  %v955_v26 = vpop.f32.mrf.mxu0 }
 0x238   :  { %3927 = vmatpush.msra.mxu0 %v8358_v33  ;;  %4005 = vmatpush.msra.mxu2 %v7789_v48  ;;  %v4103_v32 = vand.u32 4294901760, %v4102_v17  ;;  %v915_v28 = vadd.f32 %v914_v0, %v878_v1  ;;  %v4114_v42 = vsub.f32 %v7899_v16, %v4113_v25  ;;  %v4021_v13 = vsub.f32 %v7902_v38, %v4020_v56 }
 0x239   :  { %3964 = vmatpush.msra.mxu1 %v7497_v58  ;;  %4080 = vmatpush.msra.mxu3 %v4079_v45  ;;  %v4097_v58 = vand.u32 4294901760, %v4096_v36  ;;  %v4119_v45 = vand.u32 4294901760, %v7913_v40 }
 0x23a   :  { %3931 = vmatpush.msra.mxu0 %v8359_v20  ;;  %4007 = vmatpush.msra.mxu2 %v7804_v60  ;;  %v8363_v20 = vand.u32 4294901760, %v7669_v39 }
 0x23b   :  { %3966 = vmatpush.msra.mxu1 %v7511_v6  ;;  %4086 = vmatpush.msra.mxu3 %v4085_v5  ;;  %v8361_v6 = vand.u32 4294901760, %v7648_v57  ;;  %v8362_v5 = vand.u32 4294901760, %v7676_v50  ;;  %v4109_v57 = vand.u32 4294901760, %v4108_v47  ;;  %v4120_v36 = vsub.f32 %v7913_v40, %v4119_v45  ;;  %v8366_v47 = vld [vmem:[#allocation2_spill] sm:$0xff] }
 0x23c   :  { %3935 = vmatpush.msra.mxu0 %v8360_v30  ;;  %4009 = vmatpush.msra.mxu2 %v7819_v15 }
 0x23d   :  { %3968 = vmatpush.msra.mxu1 %v7527_v55  ;;  %4092 = vmatpush.msra.mxu3 %v4091_v46  ;;  %v956_v55 = vadd.f32 %v955_v26, %v915_v28  ;;  %v4022_v46 = vand.u32 4294901760, %v4021_v13  ;;  %v1110_v17 = vpop.f32.mrf.mxu2  ;;  %v4121_v50 = vand.u32 4294901760, %v4120_v36  ;;  %v1149_v1 = vpop.f32.mrf.mxu3 }
 0x23e   :  { %3939 = vmatpush.msra.mxu0 %v8361_v6  ;;  %4011 = vmatpush.msra.mxu2 %v7832_v43  ;;  %v1255_v30 = vpop.f32.mrf.mxu1 }
 0x23f   :  { %3970 = vmatpush.msra.mxu1 %v7543_v3  ;;  %4098 = vmatpush.msra.mxu3 %v4097_v58  ;;  %v1057_v33 = vadd.f32 %v1056_v52, %v956_v55  ;;  %v4115_v3 = vand.u32 4294901760, %v4114_v42  ;;  %v8365_v58 = vld [vmem:[#allocation3_spill] sm:$0xff] }
 0x240   :  { %3943 = vmatpush.msra.mxu0 %v8362_v5  ;;  %4013 = vmatpush.msra.mxu2 %v7857_v35 }
 0x241   :  { %3972 = vmatpush.msra.mxu1 %v7558_v37  ;;  %4104 = vmatpush.msra.mxu3 %v4103_v32  ;;  %v1111_v37 = vadd.f32 %v1110_v17, %v1057_v33 }
 0x242   :  { %3945 = vmatmul.f32.vlgmr.msra.gmra.mxu0 %v7569_v23  ;;  %4015 = vmatpush.msra.mxu2 %v7873_v11 }
 0x243   :  { %4130 = vmatpush.msrb.mxu0 %v7669_v39  ;;  %3974 = vmatpush.msra.mxu1 %v7575_v59  ;;  %v1218_v59 = vpop.f32.mrf.mxu0  ;;  %v1150_v0 = vadd.f32 %v1149_v1, %v1111_v37 }
 0x244   :  { %4110 = vmatpush.msra.mxu3 %v4109_v57  ;;  %4017 = vmatpush.msra.mxu2 %v7888_v54 }
 0x245   :  { %4133 = vmatpush.msrb.mxu0 %v7693_v49  ;;  %3976 = vmatpush.msra.mxu1 %v7587_v44  ;;  %v8364_v44 = vand.u32 4294901760, %v7693_v49  ;;  %v1219_v39 = vadd.f32 %v1218_v59, %v1150_v0  ;;  %v8368_v49 = vand.u32 4294901760, %v7714_v2  ;;  %v1296_v32 = vpop.f32.mrf.mxu2  ;;  %v1397_v28 = vpop.f32.mrf.mxu3 }
 0x246   :  { %4116 = vmatpush.msra.mxu3 %v4115_v3  ;;  %4023 = vmatmul.f32.vlgmr.msra.gmra.mxu2 %v4022_v46  ;;  %v1490_v42 = vpop.f32.mrf.mxu1 }
 0x247   :  { %4136 = vmatpush.msrb.mxu0 %v7706_v8  ;;  %4224 = vmatpush.msrb.mxu2 %v8363_v20  ;;  %v1256_v26 = vadd.f32 %v1255_v30, %v1219_v39 }
 0x248   :  { %3978 = vmatpush.msra.mxu1 %v7614_v14  ;;  %4122 = vmatpush.msra.mxu3 %v4121_v50  ;;  %v8367_v14 = vand.u32 4294901760, %v7706_v8 }
 0x249   :  { %4124 = vmatmul.f32.vlgmr.msra.gmra.mxu3 %v7875_v22  ;;  %4139 = vmatpush.msrb.mxu0 %v7714_v2  ;;  %v1297_v8 = vadd.f32 %v1296_v32, %v1256_v26  ;;  %v8370_v2 = vand.u32 4294901760, %v7753_v27 }
 0x24a   :  { %4228 = vmatpush.msrb.mxu2 %v8364_v44  ;;  %4291 = vmatpush.msrb.mxu3 %v8365_v58 }
 0x24b   :  { %3980 = vmatpush.msra.mxu1 %v8366_v47  ;;  %4142 = vmatpush.msrb.mxu0 %v7728_v51  ;;  %v1398_v6 = vadd.f32 %v1397_v28, %v1297_v8 }
 0x24c   :  { %3982 = vmatmul.f32.vlgmr.msra.gmra.mxu1 %v7569_v23  ;;  %4232 = vmatpush.msrb.mxu2 %v8367_v14  ;;  %v8369_v23 = vand.u32 4294901760, %v7728_v51  ;;  %v1451_v51 = vpop.f32.mrf.mxu0 }
 0x24d   :  { %4183 = vmatpush.msrb.mxu1 %v8365_v58  ;;  %4293 = vmatpush.msrb.mxu3 %v7658_v18  ;;  %v1452_v13 = vadd.f32 %v1451_v51, %v1398_v6  ;;  %v1559_v52 = vpop.f32.mrf.mxu2 }
 0x24e   :  { %4145 = vmatpush.msrb.mxu0 %v7753_v27  ;;  %4236 = vmatpush.msrb.mxu2 %v8368_v49  ;;  %v8373_v27 = vand.u32 4294901760, %v7787_v12 }
 0x24f   :  { %4185 = vmatpush.msrb.mxu1 %v7658_v18  ;;  %4295 = vmatpush.msrb.mxu3 %v7678_v53  ;;  %v8371_v18 = vand.u32 4294901760, %v7770_v41 }
 0x250   :  { %4148 = vmatpush.msrb.mxu0 %v7770_v41  ;;  %4240 = vmatpush.msrb.mxu2 %v8369_v23  ;;  %v8375_v41 = vand.u32 4294901760, %v7802_v4 }
 0x251   :  { %4187 = vmatpush.msrb.mxu1 %v7678_v53  ;;  %4297 = vmatpush.msrb.mxu3 %v7686_v63  ;;  %v8372_v53 = vld [vmem:[#allocation4_spill] sm:$0xff] }
 0x252   :  { %4151 = vmatpush.msrb.mxu0 %v7787_v12  ;;  %4244 = vmatpush.msrb.mxu2 %v8370_v2  ;;  %v8376_v12 = vand.u32 4294901760, %v7817_v10 }
 0x253   :  { %4189 = vmatpush.msrb.mxu1 %v7686_v63  ;;  %4299 = vmatpush.msrb.mxu3 %v7698_v34  ;;  %v8374_v63 = vld [vmem:[#allocation5_spill] sm:$0xff] }
 0x254   :  { %4154 = vmatpush.msrb.mxu0 %v7802_v4  ;;  %4248 = vmatpush.msrb.mxu2 %v8371_v18  ;;  %v8377_v4 = vand.u32 4294901760, %v7830_v31 }
 0x255   :  { %4191 = vmatpush.msrb.mxu1 %v7698_v34  ;;  %4301 = vmatpush.msrb.mxu3 %v8372_v53  ;;  %v1491_v34 = vadd.f32 %v1490_v42, %v1452_v13 }
 0x256   :  { %4157 = vmatpush.msrb.mxu0 %v7817_v10  ;;  %4252 = vmatpush.msrb.mxu2 %v8373_v27  ;;  %v1596_v10 = vpop.f32.mrf.mxu3 }
 0x257   :  { %4193 = vmatpush.msrb.mxu1 %v8372_v53  ;;  %4303 = vmatpush.msrb.mxu3 %v8374_v63  ;;  %v1560_v55 = vadd.f32 %v1559_v52, %v1491_v34 }
 0x258   :  { %4160 = vmatpush.msrb.mxu0 %v7830_v31  ;;  %4256 = vmatpush.msrb.mxu2 %v8375_v41  ;;  %v1738_v31 = vpop.f32.mrf.mxu1 }
 0x259   :  { %4195 = vmatpush.msrb.mxu1 %v8374_v63  ;;  %4305 = vmatpush.msrb.mxu3 %v7755_v29 }
 0x25a   :  { %4163 = vmatpush.msrb.mxu0 %v7849_v21  ;;  %4260 = vmatpush.msrb.mxu2 %v8376_v12 }
 0x25b   :  { %4197 = vmatpush.msrb.mxu1 %v7755_v29  ;;  %4307 = vmatpush.msrb.mxu3 %v7772_v7  ;;  %v1637_v29 = vpop.f32.mrf.mxu0 }
 0x25c   :  { %4166 = vmatpush.msrb.mxu0 %v7865_v19  ;;  %4264 = vmatpush.msrb.mxu2 %v8377_v4  ;;  %v1792_v19 = vpop.f32.mrf.mxu2 }
 0x25d   :  { %4199 = vmatpush.msrb.mxu1 %v7772_v7  ;;  %4309 = vmatpush.msrb.mxu3 %v7789_v48  ;;  %v1597_v7 = vadd.f32 %v1596_v10, %v1560_v55 }
 0x25e   :  { %4169 = vmatpush.msrb.mxu0 %v7886_v24  ;;  %4268 = vmatpush.msrb.mxu2 %v4095_v9 }
 0x25f   :  { %4201 = vmatpush.msrb.mxu1 %v7789_v48  ;;  %4311 = vmatpush.msrb.mxu3 %v7804_v60  ;;  %v1638_v48 = vadd.f32 %v1637_v29, %v1597_v7 }
 0x260   :  { %4172 = vmatpush.msrb.mxu0 %v7899_v16  ;;  %4272 = vmatpush.msrb.mxu2 %v4101_v61 }
 0x261   :  { %4203 = vmatpush.msrb.mxu1 %v7804_v60  ;;  %4313 = vmatpush.msrb.mxu3 %v7819_v15  ;;  %v1739_v60 = vadd.f32 %v1738_v31, %v1638_v48 }
 0x262   :  { %4175 = vmatpush.msrb.mxu0 %v7913_v40  ;;  %4276 = vmatpush.msrb.mxu2 %v4107_v62 }
 0x263   :  { %4205 = vmatpush.msrb.mxu1 %v7819_v15  ;;  %4315 = vmatpush.msrb.mxu3 %v7832_v43  ;;  %v1793_v15 = vadd.f32 %v1792_v19, %v1739_v60  ;;  %v1900_v21 = vpop.f32.mrf.mxu0 }
 0x264   :  { %4178 = vmatmul.f32.vlgmr.msrb.gmra.mxu0 %v7902_v38  ;;  %4280 = vmatpush.msrb.mxu2 %v4113_v25  ;;  %v1978_v16 = vpop.f32.mrf.mxu2 }
 0x265   :  { %4207 = vmatpush.msrb.mxu1 %v7832_v43  ;;  %4317 = vmatpush.msrb.mxu3 %v7857_v35  ;;  %v1831_v43 = vpop.f32.mrf.mxu3 }
 0x266   :  { %4284 = vmatpush.msrb.mxu2 %v4119_v45  ;;  %v1832_v9 = vadd.f32 %v1831_v43, %v1793_v15 }
 0x267   :  { %4209 = vmatpush.msrb.mxu1 %v7857_v35  ;;  %4319 = vmatpush.msrb.mxu3 %v7873_v11  ;;  %v1937_v35 = vpop.f32.mrf.mxu1 }
 0x268   :  { %4286 = vmatmul.f32.vlgmr.msrb.gmra.mxu2 %v7875_v22  ;;  %v1901_v24 = vadd.f32 %v1900_v21, %v1832_v9 }
 0x269   :  { %4211 = vmatpush.msrb.mxu1 %v7873_v11  ;;  %4321 = vmatpush.msrb.mxu3 %v7888_v54 }
 0x26a   :  { %4323 = vmatmul.f32.vlgmr.msrb.gmra.mxu3 %v7875_v22  ;;  %v1938_v61 = vadd.f32 %v1937_v35, %v1901_v24 }
 0x26b   :  { %4213 = vmatpush.msrb.mxu1 %v7888_v54  ;;  %v2133_v11 = vpop.f32.mrf.mxu0 }
 0x26c   :  { %4217 = vmatmul.f32.vlgmr.msrb.gmra.mxu1 %v4020_v56  ;;  %v1979_v62 = vadd.f32 %v1978_v16, %v1938_v61  ;;  %v2241_v22 = vpop.f32.mrf.mxu2 }
 0x26d   :  { %v2079_v40 = vpop.f32.mrf.mxu3 }
 0x26e   :  { %v2080_v25 = vadd.f32 %v2079_v40, %v1979_v62 }
 0x26f   :  { %v2172_v45 = vpop.f32.mrf.mxu1 }
 0x270   :  { %v2134_v5 = vadd.f32 %v2133_v11, %v2080_v25 }
 0x272   :  { %v2173_v57 = vadd.f32 %v2172_v45, %v2134_v5 }
 0x273   :  { %v2319_v54 = vpop.f32.mrf.mxu0 }
 0x274   :  { %v2242_v36 = vadd.f32 %v2241_v22, %v2173_v57  ;;  %v2474_v17 = vpop.f32.mrf.mxu2 }
 0x275   :  { %v2278_v33 = vpop.f32.mrf.mxu3 }
 0x276   :  { %v2279_v3 = vadd.f32 %v2278_v33, %v2242_v36 }
 0x277   :  { %v2420_v38 = vpop.f32.mrf.mxu1 }
 0x278   :  { %v2320_v56 = vadd.f32 %v2319_v54, %v2279_v3 }
 0x27a   :  { %v2421_v46 = vadd.f32 %v2420_v38, %v2320_v56 }
 0x27b   :  { %v2582_v1 = vpop.f32.mrf.mxu0 }
 0x27c   :  { %v2475_v50 = vadd.f32 %v2474_v17, %v2421_v46  ;;  %v2660_v58 = vpop.f32.mrf.mxu2 }
 0x27d   :  { %v2513_v37 = vpop.f32.mrf.mxu3 }
 0x27e   :  { %v2514_v20 = vadd.f32 %v2513_v37, %v2475_v50 }
 0x27f   :  { %v2619_v59 = vpop.f32.mrf.mxu1 }
 0x280   :  { %v2583_v0 = vadd.f32 %v2582_v1, %v2514_v20 }
 0x282   :  { %v2620_v44 = vadd.f32 %v2619_v59, %v2583_v0 }
 0x283   :  { %v2815_v39 = vpop.f32.mrf.mxu0 }
 0x284   :  { %v2661_v30 = vadd.f32 %v2660_v58, %v2620_v44  ;;  %v2923_v23 = vpop.f32.mrf.mxu2 }
 0x285   :  { %v2761_v47 = vpop.f32.mrf.mxu3 }
 0x286   :  { %v2762_v14 = vadd.f32 %v2761_v47, %v2661_v30 }
 0x287   :  { %v2854_v26 = vpop.f32.mrf.mxu1 }
 0x288   :  { %v2816_v49 = vadd.f32 %v2815_v39, %v2762_v14 }
 0x28a   :  { %v2855_v32 = vadd.f32 %v2854_v26, %v2816_v49 }
 0x28b   :  { %v3001_v28 = vpop.f32.mrf.mxu0 }
 0x28c   :  { %v2924_v8 = vadd.f32 %v2923_v23, %v2855_v32  ;;  %v3156_v27 = vpop.f32.mrf.mxu2 }
 0x28d   :  { %v2960_v2 = vpop.f32.mrf.mxu3 }
 0x28e   :  { %v2961_v18 = vadd.f32 %v2960_v2, %v2924_v8 }
 0x28f   :  { %v3102_v51 = vpop.f32.mrf.mxu1 }
 0x290   :  { %v3002_v53 = vadd.f32 %v3001_v28, %v2961_v18 }
 0x292   :  { %v3103_v6 = vadd.f32 %v3102_v51, %v3002_v53 }
 0x293   :  { %v3264_v13 = vpop.f32.mrf.mxu0 }
 0x294   :  { %v3157_v42 = vadd.f32 %v3156_v27, %v3103_v6  ;;  %v3342_v4 = vpop.f32.mrf.mxu2 }
 0x295   :  { %v3195_v63 = vpop.f32.mrf.mxu3 }
 0x296   :  { %v3196_v41 = vadd.f32 %v3195_v63, %v3157_v42 }
 0x297   :  { %v3301_v34 = vpop.f32.mrf.mxu1 }
 0x298   :  { %v3265_v12 = vadd.f32 %v3264_v13, %v3196_v41 }
 0x29a   :  { %v3302_v52 = vadd.f32 %v3301_v34, %v3265_v12 }
 0x29b   :  { %v3497_v29 = vpop.f32.mrf.mxu0 }
 0x29c   :  { %v3343_v55 = vadd.f32 %v3342_v4, %v3302_v52  ;;  %v3605_v19 = vpop.f32.mrf.mxu2 }
 0x29d   :  { %v3443_v10 = vpop.f32.mrf.mxu3 }
 0x29e   :  { %v3444_v7 = vadd.f32 %v3443_v10, %v3343_v55 }
 0x29f   :  { %v3536_v31 = vpop.f32.mrf.mxu1 }
 0x2a0   :  { %v3498_v48 = vadd.f32 %v3497_v29, %v3444_v7 }
 0x2a2   :  { %v3537_v60 = vadd.f32 %v3536_v31, %v3498_v48 }
 0x2a3   :  { %v3683_v21 = vpop.f32.mrf.mxu0 }
 0x2a4   :  { %v3606_v15 = vadd.f32 %v3605_v19, %v3537_v60 }
 0x2a5   :  { %v3642_v43 = vpop.f32.mrf.mxu3 }
 0x2a6   :  { %v3643_v9 = vadd.f32 %v3642_v43, %v3606_v15 }
 0x2a7   :  { %v3784_v35 = vpop.f32.mrf.mxu1  ;;  %v3838_v16 = vpop.f32.mrf.mxu2 }
 0x2a8   :  { %v3684_v24 = vadd.f32 %v3683_v21, %v3643_v9 }
 0x2aa   :  { %v3785_v61 = vadd.f32 %v3784_v35, %v3684_v24 }
 0x2ac   :  { %v3839_v62 = vadd.f32 %v3838_v16, %v3785_v61 }
 0x2ad   :  { %v3877_v40 = vpop.f32.mrf.mxu3 }
 0x2ae   :  { %v3878_v25 = vadd.f32 %v3877_v40, %v3839_v62 }
 0x2bf   :  { %v3946_v11 = vpop.f32.mrf.mxu0 }
 0x2c0   :  { %v3947_v5 = vadd.f32 %v3946_v11, %v3878_v25 }
 0x2c9   :  { %v3983_v45 = vpop.f32.mrf.mxu1  ;;  %v4024_v22 = vpop.f32.mrf.mxu2 }
 0x2ca   :  { %v3984_v57 = vadd.f32 %v3983_v45, %v3947_v5 }
 0x2cc   :  { %v4025_v36 = vadd.f32 %v4024_v22, %v3984_v57  ;;  %v4125_v33 = vpop.f32.mrf.mxu3 }
 0x2ce   :  { %v4126_v3 = vadd.f32 %v4125_v33, %v4025_v36 }
 0x2e1   :  { %v4179_v54 = vpop.f32.mrf.mxu0 }
 0x2e2   :  { %v4180_v38 = vadd.f32 %v4179_v54, %v4126_v3 }
 0x2e9   :  { %v4218_v56 = vpop.f32.mrf.mxu1 }
 0x2ea   :  { %v4219_v46 = vadd.f32 %v4218_v56, %v4180_v38 }
 0x2eb   :  { %v4287_v17 = vpop.f32.mrf.mxu2 }
 0x2ec   :  { %v4288_v50 = vadd.f32 %v4287_v17, %v4219_v46 }
 0x2ed   :  { %v4324_v37 = vpop.f32.mrf.mxu3 }
 0x2ee   :  { %v4325_v1 = vadd.f32 %v4324_v37, %v4288_v50 }
 0x2f0   :  { %v4327_v20 = vsub.f32 0.0, %v4325_v1 }
 0x2f2   :  { %v4328_v59 = vmul.f32 1.442695, %v4327_v20 }
 0x2f4   :  { %4351 = vpow2.f32 %v4328_v59 }
 0x2fa   :  { %v4352_v0 = vpop.eup %4351 }
 0x2fb   :  { %v4330_v44 = vadd.f32 1.0, %v4352_v0 }
 0x2fd   :  { %4353 = vrcp.f32 %v4330_v44  ;;  %v4342_v39 = vand.u32 2147483648, %v4330_v44  ;;  %v4340_v26 = vand.u32 2147483647, %v4330_v44  ;;  %vm4336_vm1 = vweird.f32 %v4330_v44 }
 0x2ff   :  { %v4343_v32 = vor.u32 1.1754944e-38, %v4342_v39  ;;  %vm4341_vm3 = vcmp.eq.f32.partialorder %v4340_v26, 8.507059e+37 }
 0x303   :  { %v4354_v58 = vpop.eup %4353 }
 0x304   :  { %v4332_v30 = vmul.f32 %v4354_v58, %v4330_v44  ;;  %vm4337_vm0 = vweird.f32 %v4354_v58 }
 0x305   :  { %vm4338_vm2 = vmor %vm4336_vm1, %vm4337_vm0 }
 0x306   :  { %v4333_v47 = vsub.f32 1.0, %v4332_v30 }
 0x308   :  { %v4334_v14 = vmul.f32 %v4354_v58, %v4333_v47 }
 0x30a   :  { %v4335_v49 = vadd.f32 %v4354_v58, %v4334_v14 }
 0x30c   :  { %v4339_v23 = vsel %vm4338_vm2, %v4354_v58, %v4335_v49 }
 0x30d   :  { %v4344_v8 = vsel %vm4341_vm3, %v4343_v32, %v4339_v23 }
 0x30e   :  { %4346 = vst [vmem:[%s8050_s3] sm:$0x1] %v4344_v8 }

</bundles_post_ra>
